<compile_context>
chip_gen: v5e
topology: v5e:2x2
jax: 0.10.0
libtpu: 0.0.40
codegen_flags: <defaults>
</compile_context>

<pallas_src>
import jax
import jax.numpy as jnp
from jax import lax
from jax.experimental import pallas as pl
from jax.experimental.pallas import tpu as pltpu


def _round_up(x: int, m: int) -> int:
    return ((x + m - 1) // m) * m


def _device_kind() -> str:
    try:
        return jax.devices()[0].device_kind.lower()
    except Exception:
        return ""


def _batch_tile_cap() -> int:
    # v5e MXUs are 4x128^2 (matched at 128); v6e/v7x MXUs are 256-wide.
    return 128 if "v5" in _device_kind() else 256


def _vmem_cap_bytes() -> int:
    # v7x has 64 MiB physical VMEM per TC -> leave compiler headroom.
    # v5e/v6e have 128 MiB and can use a much larger scoped budget.
    return (56 << 20) if "7" in _device_kind() else (100 << 20)


# torch LSTM gate order (i, f, g, o) -> kernel order (i, f, o, g):
# sigmoid applies to one contiguous [0:3H] lane range, tanh to [3H:4H].
_GATE_ORDER = (0, 1, 3, 2)


def _make_kernel(seq_len: int, s_chunk: int, hidden_p: int,
                 needs_mask: bool, unroll: int):
    H = hidden_p

    def kernel(gx_ref, whh_ref, watt_ref, wfc_ref, bfc_ref, out_ref,
               h_sc, c_sc, m_sc, l_sc, acc_sc):
        """Streamed LSTM recurrence + online-softmax attention + final linear.

          gx_ref  : (S_CHUNK, Bt, 4Hp) bf16  precomputed x@W_ih + b (gate-padded)
          whh_ref : (Hp, 4Hp)          bf16  hidden->gates weights
          watt_ref: (1, Hp)            f32   attention vector
          wfc_ref : (Hp, Cp)           bf16  fc weight
          bfc_ref : (1, Cp)            f32   fc bias
          out_ref : (Bt, Cp)           f32   logits (lane-dense)
          scratch : h, c (Bt,Hp) / m, l (Bt,1) / acc (Bt,Hp) carried across
                    sequence chunks.
        """
        s_idx = pl.program_id(1)

        @pl.when(s_idx == 0)
        def _():
            h_sc[...] = jnp.zeros_like(h_sc)
            c_sc[...] = jnp.zeros_like(c_sc)
            m_sc[...] = jnp.full_like(m_sc, -jnp.inf)
            l_sc[...] = jnp.zeros_like(l_sc)
            acc_sc[...] = jnp.zeros_like(acc_sc)

        base_t = s_idx * s_chunk  # global timestep offset of this chunk

        def step(t, carry):
            h, c, m, l, acc = carry
            # Recurrent projection: bf16 operands, f32 accumulation; whh is
            # read at the call site (not hoisted) to keep vreg pressure low.
            gates = gx_ref[t].astype(jnp.float32) + jnp.dot(
                h.astype(jnp.bfloat16), whh_ref[...],
                preferred_element_type=jnp.float32)
            # Gate math in f32 (v5e has no bf16 VPU/EUP path).
            sig = jax.nn.sigmoid(gates[:, :3 * H])     # contiguous (i, f, o)
            i_g = sig[:, 0 * H:1 * H]
            f_g = sig[:, 1 * H:2 * H]
            o_g = sig[:, 2 * H:3 * H]
            g_g = jnp.tanh(gates[:, 3 * H:4 * H])
            c_new = f_g * c + i_g * g_g
            h_new = o_g * jnp.tanh(c_new)

            # Online (flash-style) softmax attention over the sequence axis.
            # w_att multiplies as a (1, Hp) row (sublane broadcast, no
            # broadcast_to pinning vregs).
            s_t = jnp.sum(jnp.tanh(h_new) * watt_ref[...], axis=-1,
                          keepdims=True)               # (Bt, 1)
            m_new = jnp.maximum(m, s_t)
            alpha = jnp.exp(m - m_new)
            p = jnp.exp(s_t - m_new)
            l_new = alpha * l + p
            acc_new = alpha * acc + p * h_new

            if needs_mask:   # static: only when S was padded to a chunk multiple
                valid = (base_t + t) < seq_len
                h_new = jnp.where(valid, h_new, h)
                c_new = jnp.where(valid, c_new, c)
                m_new = jnp.where(valid, m_new, m)
                l_new = jnp.where(valid, l_new, l)
                acc_new = jnp.where(valid, acc_new, acc)
            return (h_new, c_new, m_new, l_new, acc_new)

        carry0 = (h_sc[...], c_sc[...], m_sc[...], l_sc[...], acc_sc[...])
        h, c, m, l, acc = lax.fori_loop(0, s_chunk, step, carry0, unroll=unroll)
        h_sc[...] = h
        c_sc[...] = c
        m_sc[...] = m
        l_sc[...] = l
        acc_sc[...] = acc

        @pl.when(s_idx == pl.num_programs(1) - 1)
        def _():
            att = acc_sc[...] / l_sc[...]       # exact normalization, runs once
            attn_out = jnp.tanh(att)
            out_ref[...] = (jnp.dot(attn_out.astype(jnp.bfloat16), wfc_ref[...],
                                    preferred_element_type=jnp.float32)
                            + bfc_ref[...])

    return kernel


def prepare_kernel_params(params):
    """One-time layout prep: reorder gates to (i,f,o,g), transpose, pad, cast.

    The input-projection weights stay unpadded f32 (they feed a plain XLA GEMM
    outside the kernel); only the kernel-side weights are padded to lane tiles
    and cast to bf16 for native MXU passes.
    """
    E = params["embedding"].shape[1]
    H = params["w_hh"].shape[1]
    C = params["fc_w"].shape[0]
    Hp = _round_up(H, 128)
    Cp = _round_up(C, 128)

    whh_t = params["w_hh"].T.astype(jnp.float32)                  # (H, 4H)
    whh_blocks = [jnp.pad(whh_t[:, k * H:(k + 1) * H],
                          ((0, Hp - H), (0, Hp - H))) for k in _GATE_ORDER]

    return {
        "embedding": params["embedding"].astype(jnp.float32),     # (V, E) unpadded
        "wih_t": params["w_ih"].T.astype(jnp.float32),            # (E, 4H) unpadded
        "b": (params["b_ih"] + params["b_hh"]).astype(jnp.float32),  # (4H,)
        "whh": jnp.concatenate(whh_blocks, axis=1).astype(jnp.bfloat16),  # (Hp,4Hp)
        "watt": jnp.pad(params["w_att"].reshape(1, H).astype(jnp.float32),
                        ((0, 0), (0, Hp - H))),                   # (1, Hp) f32
        "wfc": jnp.pad(params["fc_w"].T.astype(jnp.float32),
                       ((0, Hp - H), (0, Cp - C))).astype(jnp.bfloat16),  # (Hp,Cp)
        "bfc": jnp.pad(params["fc_b"].astype(jnp.float32),
                       (0, Cp - C))[None, :],                     # (1, Cp) f32
        "dims": (E, H, C, Hp, Cp),
    }


def lstm_w_attention_forward(tokens, prep):
    """tokens: (B, S) int32 token ids; prep: output of prepare_kernel_params."""
    E, H, C, Hp, Cp = prep["dims"]
    B, S = tokens.shape

    # ---- Batch tiling: multiple of 16 (bf16 sublane packing), per-generation
    # cap, and >=2 batch programs when B permits (v7x megacore sharding). ----
    B_TILE = min(_round_up(B, 16), _batch_tile_cap())
    if B_TILE > 16 and _round_up(B, B_TILE) // B_TILE < 2:
        B_TILE = max(16, _round_up(B_TILE // 2, 16))
    Bp = _round_up(B, B_TILE)

    # ---- Sequence chunking: keep the double-buffered gates_x chunk <= ~8 MiB
    # so kernel VMEM is independent of S. ----
    gx_row_bytes = B_TILE * 4 * Hp * 2                 # one timestep, bf16
    S_CHUNK = max(1, min(S, (8 << 20) // (2 * gx_row_bytes), 64))
    Sp = _round_up(S, S_CHUNK)
    needs_mask = Sp != S
    unroll = min(S_CHUNK, 8)

    # ---- JAX glue (outside the kernel): embedding gather on the UNPADDED
    # table + the input projection as one big parallel XLA GEMM. ----
    x = prep["embedding"][tokens]                                    # (B, S, E)
    gx = jnp.einsum("bse,eg->bsg", x, prep["wih_t"]) + prep["b"]     # (B, S, 4H)
    gx = jnp.take(gx.reshape(B, S, 4, H), jnp.array(_GATE_ORDER), axis=2)
    gx = jnp.pad(gx, ((0, 0), (0, 0), (0, 0), (0, Hp - H)))          # per-gate pad
    gx = jnp.transpose(gx.reshape(B, S, 4 * Hp), (1, 0, 2))          # (S, B, 4Hp)
    gx = jnp.pad(gx, ((0, Sp - S), (0, Bp - B), (0, 0))).astype(jnp.bfloat16)

    # ---- VMEM budget: actual footprint + headroom, generation-aware cap. ----
    block_bytes = (2 * S_CHUNK * B_TILE * 4 * Hp * 2     # gx chunk (bf16, x2 buf)
                   + 2 * Hp * 4 * Hp * 2                 # whh (bf16)
                   + 2 * Hp * 4                          # watt (f32)
                   + 2 * Hp * Cp * 2                     # wfc (bf16)
                   + 2 * Cp * 4                          # bfc (f32)
                   + 2 * B_TILE * Cp * 4)                # out (f32)
    scratch_bytes = (3 * B_TILE * Hp + 2 * B_TILE) * 4
    vmem_limit = int(min(max(block_bytes + scratch_bytes + (8 << 20), 16 << 20),
                         _vmem_cap_bytes()))

    cost = pl.CostEstimate(
        flops=2 * Sp * Bp * Hp * 4 * Hp + 2 * Bp * Hp * Cp,
        transcendentals=Sp * Bp * (6 * Hp + 2) + Bp * Hp,
        bytes_accessed=(Sp * Bp * 4 * Hp * 2 + Hp * 4 * Hp * 2
                        + Hp * Cp * 2 + Bp * Cp * 4),
    )

    kernel = _make_kernel(S, S_CHUNK, Hp, needs_mask, unroll)

    logits_p = pl.pallas_call(
        kernel,
        out_shape=jax.ShapeDtypeStruct((Bp, Cp), jnp.float32),
        grid_spec=pltpu.PrefetchScalarGridSpec(
            num_scalar_prefetch=0,
            grid=(Bp // B_TILE, Sp // S_CHUNK),          # (batch, seq-chunk)
            in_specs=[
                pl.BlockSpec((S_CHUNK, B_TILE, 4 * Hp), lambda b, s: (s, b, 0)),
                pl.BlockSpec((Hp, 4 * Hp), lambda b, s: (0, 0)),
                pl.BlockSpec((1, Hp), lambda b, s: (0, 0)),
                pl.BlockSpec((Hp, Cp), lambda b, s: (0, 0)),
                pl.BlockSpec((1, Cp), lambda b, s: (0, 0)),
            ],
            out_specs=pl.BlockSpec((B_TILE, Cp), lambda b, s: (b, 0)),
            scratch_shapes=[
                pltpu.VMEM((B_TILE, Hp), jnp.float32),   # h
                pltpu.VMEM((B_TILE, Hp), jnp.float32),   # c
                pltpu.VMEM((B_TILE, 1), jnp.float32),    # running max m
                pltpu.VMEM((B_TILE, 1), jnp.float32),    # running denom l
                pltpu.VMEM((B_TILE, Hp), jnp.float32),   # running numerator acc
            ],
        ),
        compiler_params=pltpu.CompilerParams(
            dimension_semantics=("parallel", "arbitrary"),
            vmem_limit_bytes=vmem_limit,
        ),
        cost_estimate=cost,
    )(gx, prep["whh"], prep["watt"], prep["wfc"], prep["bfc"])

    # Slice off batch / class padding (kernel-side store stays lane-dense).
    return logits_p[:B, :C]


def reference_forward(tokens, params):
    """Pure-JAX f32 reference mirroring the PyTorch forward (eval mode)."""
    emb = params["embedding"][tokens]                      # (B, S, E)
    B, S, E = emb.shape
    H = params["w_hh"].shape[1]
    wih, whh = params["w_ih"], params["w_hh"]
    b = params["b_ih"] + params["b_hh"]

    def step(carry, x_t):
        h, c = carry
        g = x_t @ wih.T + h @ whh.T + b
        i = jax.nn.sigmoid(g[:, :H])
        f = jax.nn.sigmoid(g[:, H:2 * H])
        gg = jnp.tanh(g[:, 2 * H:3 * H])
        o = jax.nn.sigmoid(g[:, 3 * H:])
        c = f * c + i * gg
        h = o * jnp.tanh(c)
        return (h, c), h

    (_, _), hs = lax.scan(step,
                          (jnp.zeros((B, H)), jnp.zeros((B, H))),
                          jnp.transpose(emb, (1, 0, 2)))
    lstm_out = jnp.transpose(hs, (1, 0, 2))                # (B, S, H)
    w = params["w_att"].reshape(H)
    scores = jnp.einsum('bsh,h->bs', jnp.tanh(lstm_out), w)
    a = jax.nn.softmax(scores, axis=1)
    att = jnp.einsum('bsh,bs->bh', lstm_out, a)
    out = jnp.tanh(att)
    return out @ params["fc_w"].T + params["fc_b"]


def make_params(key, vocab_size, embedding_length, hidden_size, num_classes):
    ks = jax.random.split(key, 8)
    s = 0.1
    return {
        "embedding": jax.random.normal(ks[0], (vocab_size, embedding_length), jnp.float32),
        "w_ih": s * jax.random.normal(ks[1], (4 * hidden_size, embedding_length), jnp.float32),
        "w_hh": s * jax.random.normal(ks[2], (4 * hidden_size, hidden_size), jnp.float32),
        "b_ih": s * jax.random.normal(ks[3], (4 * hidden_size,), jnp.float32),
        "b_hh": s * jax.random.normal(ks[4], (4 * hidden_size,), jnp.float32),
        "w_att": jax.random.normal(ks[5], (1, hidden_size, 1), jnp.float32),
        "fc_w": s * jax.random.normal(ks[6], (num_classes, hidden_size), jnp.float32),
        "fc_b": s * jax.random.normal(ks[7], (num_classes,), jnp.float32),
    }


if __name__ == "__main__":
    B, S = 2, 8
    VOCAB, EMB, HID, CLASSES = 50, 16, 32, 4

    key = jax.random.PRNGKey(0)
    k_tok, k_par = jax.random.split(key)
    tokens = jax.random.randint(k_tok, (B, S), 0, VOCAB, dtype=jnp.int32)
    params = make_params(k_par, VOCAB, EMB, HID, CLASSES)

    prep = prepare_kernel_params(params)          # one-time weight layout prep
    logits = jax.block_until_ready(lstm_w_attention_forward(tokens, prep))

    ref = jax.block_until_ready(reference_forward(tokens, params))
    assert logits.shape == (B, CLASSES)
    # bf16 MXU operands (f32 accumulation) -> parity vs the f32 reference is
    # at the ~1e-2 level rather than 1e-3.
    assert jnp.allclose(logits, ref, atol=5e-2, rtol=5e-2), (logits, ref)

    print("KERNEL_OK")
</pallas_src>

<mosaic_0001>
module attributes {stable_mosaic.version = 11 : i64} {
  func.func @kernel(%arg0: i32, %arg1: i32, %arg2: memref<8x16x512xbf16, #tpu.memory_space<vmem>>, %arg3: memref<128x512xbf16, #tpu.memory_space<vmem>>, %arg4: memref<1x128xf32, #tpu.memory_space<vmem>>, %arg5: memref<128x128xbf16, #tpu.memory_space<vmem>>, %arg6: memref<1x128xf32, #tpu.memory_space<vmem>>, %arg7: memref<16x128xf32, #tpu.memory_space<vmem>>, %arg8: memref<16x128xf32, #tpu.memory_space<vmem>>, %arg9: memref<16x128xf32, #tpu.memory_space<vmem>>, %arg10: memref<16x1xf32, #tpu.memory_space<vmem>>, %arg11: memref<16x1xf32, #tpu.memory_space<vmem>>, %arg12: memref<16x128xf32, #tpu.memory_space<vmem>>) attributes {dimension_semantics = [#tpu.dimension_semantics<parallel>, #tpu.dimension_semantics<arbitrary>], iteration_bounds = array<i64: 1, 1>, scalar_prefetch = 0 : i64, scratch_operands = 5 : i64, tpu.core_type = #tpu.core_type<tc>, window_params = [{transform_indices = @transform_0, window_bounds = array<i64: 8, 16, 512>}, {pipeline_mode = #tpu.pipeline_mode<synchronous>, transform_indices = @transform_1, window_bounds = array<i64: 128, 512>}, {pipeline_mode = #tpu.pipeline_mode<synchronous>, transform_indices = @transform_2, window_bounds = array<i64: 1, 128>}, {pipeline_mode = #tpu.pipeline_mode<synchronous>, transform_indices = @transform_3, window_bounds = array<i64: 128, 128>}, {pipeline_mode = #tpu.pipeline_mode<synchronous>, transform_indices = @transform_4, window_bounds = array<i64: 1, 128>}, {transform_indices = @transform_5, window_bounds = array<i64: 16, 128>}]} {
    %c0_i32 = arith.constant 0 : i32
    %0 = arith.cmpi eq, %arg1, %c0_i32 : i32
    %1 = arith.extui %0 : i1 to i32
    %c0_i32_0 = arith.constant 0 : i32
    %2 = arith.cmpi ne, %1, %c0_i32_0 : i32
    scf.if %2 {
      %cst_94 = arith.constant 0.000000e+00 : f32
      %352 = vector.broadcast %cst_94 : f32 to vector<16x128xf32>
      %c0_95 = arith.constant 0 : index
      %c0_96 = arith.constant 0 : index
      %353 = vector.load %arg8[%c0_95, %c0_96] : memref<16x128xf32, #tpu.memory_space<vmem>>, vector<16x128xf32>
      tpu.vector_store %arg8[%c0_95, %c0_96], %352 {strides = array<i32>} : memref<16x128xf32, #tpu.memory_space<vmem>>, vector<16x128xf32>,
      %cst_97 = arith.constant 0.000000e+00 : f32
      %354 = vector.broadcast %cst_97 : f32 to vector<16x128xf32>
      %c0_98 = arith.constant 0 : index
      %c0_99 = arith.constant 0 : index
      %355 = vector.load %arg9[%c0_98, %c0_99] : memref<16x128xf32, #tpu.memory_space<vmem>>, vector<16x128xf32>
      tpu.vector_store %arg9[%c0_98, %c0_99], %354 {strides = array<i32>} : memref<16x128xf32, #tpu.memory_space<vmem>>, vector<16x128xf32>,
      %cst_100 = arith.constant 0xFF800000 : f32
      %356 = vector.broadcast %cst_100 : f32 to vector<16x1xf32>
      %c0_101 = arith.constant 0 : index
      %c0_102 = arith.constant 0 : index
      %357 = vector.load %arg10[%c0_101, %c0_102] : memref<16x1xf32, #tpu.memory_space<vmem>>, vector<16x1xf32>
      tpu.vector_store %arg10[%c0_101, %c0_102], %356 {strides = array<i32>} : memref<16x1xf32, #tpu.memory_space<vmem>>, vector<16x1xf32>,
      %cst_103 = arith.constant 0.000000e+00 : f32
      %358 = vector.broadcast %cst_103 : f32 to vector<16x1xf32>
      %c0_104 = arith.constant 0 : index
      %c0_105 = arith.constant 0 : index
      %359 = vector.load %arg11[%c0_104, %c0_105] : memref<16x1xf32, #tpu.memory_space<vmem>>, vector<16x1xf32>
      tpu.vector_store %arg11[%c0_104, %c0_105], %358 {strides = array<i32>} : memref<16x1xf32, #tpu.memory_space<vmem>>, vector<16x1xf32>,
      %cst_106 = arith.constant 0.000000e+00 : f32
      %360 = vector.broadcast %cst_106 : f32 to vector<16x128xf32>
      %c0_107 = arith.constant 0 : index
      %c0_108 = arith.constant 0 : index
      %361 = vector.load %arg12[%c0_107, %c0_108] : memref<16x128xf32, #tpu.memory_space<vmem>>, vector<16x128xf32>
      tpu.vector_store %arg12[%c0_107, %c0_108], %360 {strides = array<i32>} : memref<16x128xf32, #tpu.memory_space<vmem>>, vector<16x128xf32>,
    } else {
    }
    %c0 = arith.constant 0 : index
    %c0_1 = arith.constant 0 : index
    %3 = vector.load %arg8[%c0, %c0_1] : memref<16x128xf32, #tpu.memory_space<vmem>>, vector<16x128xf32>
    %c0_2 = arith.constant 0 : index
    %c0_3 = arith.constant 0 : index
    %4 = vector.load %arg9[%c0_2, %c0_3] : memref<16x128xf32, #tpu.memory_space<vmem>>, vector<16x128xf32>
    %c0_4 = arith.constant 0 : index
    %c0_5 = arith.constant 0 : index
    %5 = vector.load %arg10[%c0_4, %c0_5] : memref<16x1xf32, #tpu.memory_space<vmem>>, vector<16x1xf32>
    %c0_6 = arith.constant 0 : index
    %c0_7 = arith.constant 0 : index
    %6 = vector.load %arg11[%c0_6, %c0_7] : memref<16x1xf32, #tpu.memory_space<vmem>>, vector<16x1xf32>
    %c0_8 = arith.constant 0 : index
    %c0_9 = arith.constant 0 : index
    %7 = vector.load %arg12[%c0_8, %c0_9] : memref<16x128xf32, #tpu.memory_space<vmem>>, vector<16x128xf32>
    %c0_i32_10 = arith.constant 0 : i32
    %8 = arith.index_cast %c0_i32_10 : i32 to index
    %c0_11 = arith.constant 0 : index
    %c0_12 = arith.constant 0 : index
    %9 = vector.load %arg2[%8, %c0_11, %c0_12] : memref<8x16x512xbf16, #tpu.memory_space<vmem>>, vector<1x16x512xbf16>
    %10 = vector.shape_cast %9 : vector<1x16x512xbf16> to vector<16x512xbf16>
    %11 = arith.extf %10 : vector<16x512xbf16> to vector<16x512xf32>
    %12 = arith.truncf %3 : vector<16x128xf32> to vector<16x128xbf16>
    %c0_13 = arith.constant 0 : index
    %c0_14 = arith.constant 0 : index
    %13 = vector.load %arg3[%c0_13, %c0_14] : memref<128x512xbf16, #tpu.memory_space<vmem>>, vector<128x512xbf16>
    %cst = arith.constant dense<0.000000e+00> : vector<16x512xf32>
    %14 = tpu.matmul %12, %13, %cst {dimension_numbers = #tpu.dot_dimension_numbers<[1], [0], [0], [1], [0, 0, 1, 1], [], []>} : vector<16x128xbf16>, vector<128x512xbf16>, vector<16x512xf32> -> vector<16x512xf32>
    %15 = arith.addf %11, %14 : vector<16x512xf32>
    %16 = vector.extract_strided_slice %15 {offsets = [0, 0], sizes = [16, 384], strides = [1, 1]} : vector<16x512xf32> to vector<16x384xf32>
    %17 = arith.negf %16 : vector<16x384xf32>
    %18 = math.exp %17 : vector<16x384xf32>
    %cst_15 = arith.constant 1.000000e+00 : f32
    %19 = vector.broadcast %cst_15 : f32 to vector<16x384xf32>
    %20 = arith.addf %19, %18 : vector<16x384xf32>
    %21 = arith.divf %19, %20 : vector<16x384xf32>
    %22 = vector.extract_strided_slice %21 {offsets = [0, 0], sizes = [16, 128], strides = [1, 1]} : vector<16x384xf32> to vector<16x128xf32>
    %23 = vector.extract_strided_slice %21 {offsets = [0, 128], sizes = [16, 128], strides = [1, 1]} : vector<16x384xf32> to vector<16x128xf32>
    %24 = vector.extract_strided_slice %21 {offsets = [0, 256], sizes = [16, 128], strides = [1, 1]} : vector<16x384xf32> to vector<16x128xf32>
    %25 = vector.extract_strided_slice %15 {offsets = [0, 384], sizes = [16, 128], strides = [1, 1]} : vector<16x512xf32> to vector<16x128xf32>
    %26 = math.tanh %25 : vector<16x128xf32>
    %27 = arith.mulf %23, %4 : vector<16x128xf32>
    %28 = arith.mulf %22, %26 : vector<16x128xf32>
    %29 = arith.addf %27, %28 : vector<16x128xf32>
    %30 = math.tanh %29 : vector<16x128xf32>
    %31 = arith.mulf %24, %30 : vector<16x128xf32>
    %32 = math.tanh %31 : vector<16x128xf32>
    %c0_16 = arith.constant 0 : index
    %c0_17 = arith.constant 0 : index
    %33 = vector.load %arg4[%c0_16, %c0_17] : memref<1x128xf32, #tpu.memory_space<vmem>>, vector<1x128xf32>
    %34 = vector.broadcast %33 : vector<1x128xf32> to vector<16x128xf32>
    %35 = arith.mulf %32, %34 : vector<16x128xf32>
    %cst_18 = arith.constant dense<0.000000e+00> : vector<16xf32>
    %36 = vector.multi_reduction <add>, %35, %cst_18 [1] : vector<16x128xf32> to vector<16xf32>
    %37 = vector.shape_cast %36 : vector<16xf32> to vector<16x1xf32>
    %38 = arith.maximumf %5, %37 : vector<16x1xf32>
    %39 = arith.subf %5, %38 : vector<16x1xf32>
    %40 = math.exp %39 : vector<16x1xf32>
    %41 = arith.subf %37, %38 : vector<16x1xf32>
    %42 = math.exp %41 : vector<16x1xf32>
    %43 = arith.mulf %40, %6 : vector<16x1xf32>
    %44 = arith.addf %43, %42 : vector<16x1xf32>
    %45 = vector.broadcast %40 : vector<16x1xf32> to vector<16x128xf32>
    %46 = arith.mulf %45, %7 : vector<16x128xf32>
    %47 = vector.broadcast %42 : vector<16x1xf32> to vector<16x128xf32>
    %48 = arith.mulf %47, %31 : vector<16x128xf32>
    %49 = arith.addf %46, %48 : vector<16x128xf32>
    %c1_i32 = arith.constant 1 : i32
    %50 = arith.index_cast %c1_i32 : i32 to index
    %c0_19 = arith.constant 0 : index
    %c0_20 = arith.constant 0 : index
    %51 = vector.load %arg2[%50, %c0_19, %c0_20] : memref<8x16x512xbf16, #tpu.memory_space<vmem>>, vector<1x16x512xbf16>
    %52 = vector.shape_cast %51 : vector<1x16x512xbf16> to vector<16x512xbf16>
    %53 = arith.extf %52 : vector<16x512xbf16> to vector<16x512xf32>
    %54 = arith.truncf %31 : vector<16x128xf32> to vector<16x128xbf16>
    %c0_21 = arith.constant 0 : index
    %c0_22 = arith.constant 0 : index
    %55 = vector.load %arg3[%c0_21, %c0_22] : memref<128x512xbf16, #tpu.memory_space<vmem>>, vector<128x512xbf16>
    %cst_23 = arith.constant dense<0.000000e+00> : vector<16x512xf32>
    %56 = tpu.matmul %54, %55, %cst_23 {dimension_numbers = #tpu.dot_dimension_numbers<[1], [0], [0], [1], [0, 0, 1, 1], [], []>} : vector<16x128xbf16>, vector<128x512xbf16>, vector<16x512xf32> -> vector<16x512xf32>
    %57 = arith.addf %53, %56 : vector<16x512xf32>
    %58 = vector.extract_strided_slice %57 {offsets = [0, 0], sizes = [16, 384], strides = [1, 1]} : vector<16x512xf32> to vector<16x384xf32>
    %59 = arith.negf %58 : vector<16x384xf32>
    %60 = math.exp %59 : vector<16x384xf32>
    %cst_24 = arith.constant 1.000000e+00 : f32
    %61 = vector.broadcast %cst_24 : f32 to vector<16x384xf32>
    %62 = arith.addf %61, %60 : vector<16x384xf32>
    %63 = arith.divf %61, %62 : vector<16x384xf32>
    %64 = vector.extract_strided_slice %63 {offsets = [0, 0], sizes = [16, 128], strides = [1, 1]} : vector<16x384xf32> to vector<16x128xf32>
    %65 = vector.extract_strided_slice %63 {offsets = [0, 128], sizes = [16, 128], strides = [1, 1]} : vector<16x384xf32> to vector<16x128xf32>
    %66 = vector.extract_strided_slice %63 {offsets = [0, 256], sizes = [16, 128], strides = [1, 1]} : vector<16x384xf32> to vector<16x128xf32>
    %67 = vector.extract_strided_slice %57 {offsets = [0, 384], sizes = [16, 128], strides = [1, 1]} : vector<16x512xf32> to vector<16x128xf32>
    %68 = math.tanh %67 : vector<16x128xf32>
    %69 = arith.mulf %65, %29 : vector<16x128xf32>
    %70 = arith.mulf %64, %68 : vector<16x128xf32>
    %71 = arith.addf %69, %70 : vector<16x128xf32>
    %72 = math.tanh %71 : vector<16x128xf32>
    %73 = arith.mulf %66, %72 : vector<16x128xf32>
    %74 = math.tanh %73 : vector<16x128xf32>
    %c0_25 = arith.constant 0 : index
    %c0_26 = arith.constant 0 : index
    %75 = vector.load %arg4[%c0_25, %c0_26] : memref<1x128xf32, #tpu.memory_space<vmem>>, vector<1x128xf32>
    %76 = vector.broadcast %75 : vector<1x128xf32> to vector<16x128xf32>
    %77 = arith.mulf %74, %76 : vector<16x128xf32>
    %cst_27 = arith.constant dense<0.000000e+00> : vector<16xf32>
    %78 = vector.multi_reduction <add>, %77, %cst_27 [1] : vector<16x128xf32> to vector<16xf32>
    %79 = vector.shape_cast %78 : vector<16xf32> to vector<16x1xf32>
    %80 = arith.maximumf %38, %79 : vector<16x1xf32>
    %81 = arith.subf %38, %80 : vector<16x1xf32>
    %82 = math.exp %81 : vector<16x1xf32>
    %83 = arith.subf %79, %80 : vector<16x1xf32>
    %84 = math.exp %83 : vector<16x1xf32>
    %85 = arith.mulf %82, %44 : vector<16x1xf32>
    %86 = arith.addf %85, %84 : vector<16x1xf32>
    %87 = vector.broadcast %82 : vector<16x1xf32> to vector<16x128xf32>
    %88 = arith.mulf %87, %49 : vector<16x128xf32>
    %89 = vector.broadcast %84 : vector<16x1xf32> to vector<16x128xf32>
    %90 = arith.mulf %89, %73 : vector<16x128xf32>
    %91 = arith.addf %88, %90 : vector<16x128xf32>
    %c2_i32 = arith.constant 2 : i32
    %92 = arith.index_cast %c2_i32 : i32 to index
    %c0_28 = arith.constant 0 : index
    %c0_29 = arith.constant 0 : index
    %93 = vector.load %arg2[%92, %c0_28, %c0_29] : memref<8x16x512xbf16, #tpu.memory_space<vmem>>, vector<1x16x512xbf16>
    %94 = vector.shape_cast %93 : vector<1x16x512xbf16> to vector<16x512xbf16>
    %95 = arith.extf %94 : vector<16x512xbf16> to vector<16x512xf32>
    %96 = arith.truncf %73 : vector<16x128xf32> to vector<16x128xbf16>
    %c0_30 = arith.constant 0 : index
    %c0_31 = arith.constant 0 : index
    %97 = vector.load %arg3[%c0_30, %c0_31] : memref<128x512xbf16, #tpu.memory_space<vmem>>, vector<128x512xbf16>
    %cst_32 = arith.constant dense<0.000000e+00> : vector<16x512xf32>
    %98 = tpu.matmul %96, %97, %cst_32 {dimension_numbers = #tpu.dot_dimension_numbers<[1], [0], [0], [1], [0, 0, 1, 1], [], []>} : vector<16x128xbf16>, vector<128x512xbf16>, vector<16x512xf32> -> vector<16x512xf32>
    %99 = arith.addf %95, %98 : vector<16x512xf32>
    %100 = vector.extract_strided_slice %99 {offsets = [0, 0], sizes = [16, 384], strides = [1, 1]} : vector<16x512xf32> to vector<16x384xf32>
    %101 = arith.negf %100 : vector<16x384xf32>
    %102 = math.exp %101 : vector<16x384xf32>
    %cst_33 = arith.constant 1.000000e+00 : f32
    %103 = vector.broadcast %cst_33 : f32 to vector<16x384xf32>
    %104 = arith.addf %103, %102 : vector<16x384xf32>
    %105 = arith.divf %103, %104 : vector<16x384xf32>
    %106 = vector.extract_strided_slice %105 {offsets = [0, 0], sizes = [16, 128], strides = [1, 1]} : vector<16x384xf32> to vector<16x128xf32>
    %107 = vector.extract_strided_slice %105 {offsets = [0, 128], sizes = [16, 128], strides = [1, 1]} : vector<16x384xf32> to vector<16x128xf32>
    %108 = vector.extract_strided_slice %105 {offsets = [0, 256], sizes = [16, 128], strides = [1, 1]} : vector<16x384xf32> to vector<16x128xf32>
    %109 = vector.extract_strided_slice %99 {offsets = [0, 384], sizes = [16, 128], strides = [1, 1]} : vector<16x512xf32> to vector<16x128xf32>
    %110 = math.tanh %109 : vector<16x128xf32>
    %111 = arith.mulf %107, %71 : vector<16x128xf32>
    %112 = arith.mulf %106, %110 : vector<16x128xf32>
    %113 = arith.addf %111, %112 : vector<16x128xf32>
    %114 = math.tanh %113 : vector<16x128xf32>
    %115 = arith.mulf %108, %114 : vector<16x128xf32>
    %116 = math.tanh %115 : vector<16x128xf32>
    %c0_34 = arith.constant 0 : index
    %c0_35 = arith.constant 0 : index
    %117 = vector.load %arg4[%c0_34, %c0_35] : memref<1x128xf32, #tpu.memory_space<vmem>>, vector<1x128xf32>
    %118 = vector.broadcast %117 : vector<1x128xf32> to vector<16x128xf32>
    %119 = arith.mulf %116, %118 : vector<16x128xf32>
    %cst_36 = arith.constant dense<0.000000e+00> : vector<16xf32>
    %120 = vector.multi_reduction <add>, %119, %cst_36 [1] : vector<16x128xf32> to vector<16xf32>
    %121 = vector.shape_cast %120 : vector<16xf32> to vector<16x1xf32>
    %122 = arith.maximumf %80, %121 : vector<16x1xf32>
    %123 = arith.subf %80, %122 : vector<16x1xf32>
    %124 = math.exp %123 : vector<16x1xf32>
    %125 = arith.subf %121, %122 : vector<16x1xf32>
    %126 = math.exp %125 : vector<16x1xf32>
    %127 = arith.mulf %124, %86 : vector<16x1xf32>
    %128 = arith.addf %127, %126 : vector<16x1xf32>
    %129 = vector.broadcast %124 : vector<16x1xf32> to vector<16x128xf32>
    %130 = arith.mulf %129, %91 : vector<16x128xf32>
    %131 = vector.broadcast %126 : vector<16x1xf32> to vector<16x128xf32>
    %132 = arith.mulf %131, %115 : vector<16x128xf32>
    %133 = arith.addf %130, %132 : vector<16x128xf32>
    %c3_i32 = arith.constant 3 : i32
    %134 = arith.index_cast %c3_i32 : i32 to index
    %c0_37 = arith.constant 0 : index
    %c0_38 = arith.constant 0 : index
    %135 = vector.load %arg2[%134, %c0_37, %c0_38] : memref<8x16x512xbf16, #tpu.memory_space<vmem>>, vector<1x16x512xbf16>
    %136 = vector.shape_cast %135 : vector<1x16x512xbf16> to vector<16x512xbf16>
    %137 = arith.extf %136 : vector<16x512xbf16> to vector<16x512xf32>
    %138 = arith.truncf %115 : vector<16x128xf32> to vector<16x128xbf16>
    %c0_39 = arith.constant 0 : index
    %c0_40 = arith.constant 0 : index
    %139 = vector.load %arg3[%c0_39, %c0_40] : memref<128x512xbf16, #tpu.memory_space<vmem>>, vector<128x512xbf16>
    %cst_41 = arith.constant dense<0.000000e+00> : vector<16x512xf32>
    %140 = tpu.matmul %138, %139, %cst_41 {dimension_numbers = #tpu.dot_dimension_numbers<[1], [0], [0], [1], [0, 0, 1, 1], [], []>} : vector<16x128xbf16>, vector<128x512xbf16>, vector<16x512xf32> -> vector<16x512xf32>
    %141 = arith.addf %137, %140 : vector<16x512xf32>
    %142 = vector.extract_strided_slice %141 {offsets = [0, 0], sizes = [16, 384], strides = [1, 1]} : vector<16x512xf32> to vector<16x384xf32>
    %143 = arith.negf %142 : vector<16x384xf32>
    %144 = math.exp %143 : vector<16x384xf32>
    %cst_42 = arith.constant 1.000000e+00 : f32
    %145 = vector.broadcast %cst_42 : f32 to vector<16x384xf32>
    %146 = arith.addf %145, %144 : vector<16x384xf32>
    %147 = arith.divf %145, %146 : vector<16x384xf32>
    %148 = vector.extract_strided_slice %147 {offsets = [0, 0], sizes = [16, 128], strides = [1, 1]} : vector<16x384xf32> to vector<16x128xf32>
    %149 = vector.extract_strided_slice %147 {offsets = [0, 128], sizes = [16, 128], strides = [1, 1]} : vector<16x384xf32> to vector<16x128xf32>
    %150 = vector.extract_strided_slice %147 {offsets = [0, 256], sizes = [16, 128], strides = [1, 1]} : vector<16x384xf32> to vector<16x128xf32>
    %151 = vector.extract_strided_slice %141 {offsets = [0, 384], sizes = [16, 128], strides = [1, 1]} : vector<16x512xf32> to vector<16x128xf32>
    %152 = math.tanh %151 : vector<16x128xf32>
    %153 = arith.mulf %149, %113 : vector<16x128xf32>
    %154 = arith.mulf %148, %152 : vector<16x128xf32>
    %155 = arith.addf %153, %154 : vector<16x128xf32>
    %156 = math.tanh %155 : vector<16x128xf32>
    %157 = arith.mulf %150, %156 : vector<16x128xf32>
    %158 = math.tanh %157 : vector<16x128xf32>
    %c0_43 = arith.constant 0 : index
    %c0_44 = arith.constant 0 : index
    %159 = vector.load %arg4[%c0_43, %c0_44] : memref<1x128xf32, #tpu.memory_space<vmem>>, vector<1x128xf32>
    %160 = vector.broadcast %159 : vector<1x128xf32> to vector<16x128xf32>
    %161 = arith.mulf %158, %160 : vector<16x128xf32>
    %cst_45 = arith.constant dense<0.000000e+00> : vector<16xf32>
    %162 = vector.multi_reduction <add>, %161, %cst_45 [1] : vector<16x128xf32> to vector<16xf32>
    %163 = vector.shape_cast %162 : vector<16xf32> to vector<16x1xf32>
    %164 = arith.maximumf %122, %163 : vector<16x1xf32>
    %165 = arith.subf %122, %164 : vector<16x1xf32>
    %166 = math.exp %165 : vector<16x1xf32>
    %167 = arith.subf %163, %164 : vector<16x1xf32>
    %168 = math.exp %167 : vector<16x1xf32>
    %169 = arith.mulf %166, %128 : vector<16x1xf32>
    %170 = arith.addf %169, %168 : vector<16x1xf32>
    %171 = vector.broadcast %166 : vector<16x1xf32> to vector<16x128xf32>
    %172 = arith.mulf %171, %133 : vector<16x128xf32>
    %173 = vector.broadcast %168 : vector<16x1xf32> to vector<16x128xf32>
    %174 = arith.mulf %173, %157 : vector<16x128xf32>
    %175 = arith.addf %172, %174 : vector<16x128xf32>
    %c4_i32 = arith.constant 4 : i32
    %176 = arith.index_cast %c4_i32 : i32 to index
    %c0_46 = arith.constant 0 : index
    %c0_47 = arith.constant 0 : index
    %177 = vector.load %arg2[%176, %c0_46, %c0_47] : memref<8x16x512xbf16, #tpu.memory_space<vmem>>, vector<1x16x512xbf16>
    %178 = vector.shape_cast %177 : vector<1x16x512xbf16> to vector<16x512xbf16>
    %179 = arith.extf %178 : vector<16x512xbf16> to vector<16x512xf32>
    %180 = arith.truncf %157 : vector<16x128xf32> to vector<16x128xbf16>
    %c0_48 = arith.constant 0 : index
    %c0_49 = arith.constant 0 : index
    %181 = vector.load %arg3[%c0_48, %c0_49] : memref<128x512xbf16, #tpu.memory_space<vmem>>, vector<128x512xbf16>
    %cst_50 = arith.constant dense<0.000000e+00> : vector<16x512xf32>
    %182 = tpu.matmul %180, %181, %cst_50 {dimension_numbers = #tpu.dot_dimension_numbers<[1], [0], [0], [1], [0, 0, 1, 1], [], []>} : vector<16x128xbf16>, vector<128x512xbf16>, vector<16x512xf32> -> vector<16x512xf32>
    %183 = arith.addf %179, %182 : vector<16x512xf32>
    %184 = vector.extract_strided_slice %183 {offsets = [0, 0], sizes = [16, 384], strides = [1, 1]} : vector<16x512xf32> to vector<16x384xf32>
    %185 = arith.negf %184 : vector<16x384xf32>
    %186 = math.exp %185 : vector<16x384xf32>
    %cst_51 = arith.constant 1.000000e+00 : f32
    %187 = vector.broadcast %cst_51 : f32 to vector<16x384xf32>
    %188 = arith.addf %187, %186 : vector<16x384xf32>
    %189 = arith.divf %187, %188 : vector<16x384xf32>
    %190 = vector.extract_strided_slice %189 {offsets = [0, 0], sizes = [16, 128], strides = [1, 1]} : vector<16x384xf32> to vector<16x128xf32>
    %191 = vector.extract_strided_slice %189 {offsets = [0, 128], sizes = [16, 128], strides = [1, 1]} : vector<16x384xf32> to vector<16x128xf32>
    %192 = vector.extract_strided_slice %189 {offsets = [0, 256], sizes = [16, 128], strides = [1, 1]} : vector<16x384xf32> to vector<16x128xf32>
    %193 = vector.extract_strided_slice %183 {offsets = [0, 384], sizes = [16, 128], strides = [1, 1]} : vector<16x512xf32> to vector<16x128xf32>
    %194 = math.tanh %193 : vector<16x128xf32>
    %195 = arith.mulf %191, %155 : vector<16x128xf32>
    %196 = arith.mulf %190, %194 : vector<16x128xf32>
    %197 = arith.addf %195, %196 : vector<16x128xf32>
    %198 = math.tanh %197 : vector<16x128xf32>
    %199 = arith.mulf %192, %198 : vector<16x128xf32>
    %200 = math.tanh %199 : vector<16x128xf32>
    %c0_52 = arith.constant 0 : index
    %c0_53 = arith.constant 0 : index
    %201 = vector.load %arg4[%c0_52, %c0_53] : memref<1x128xf32, #tpu.memory_space<vmem>>, vector<1x128xf32>
    %202 = vector.broadcast %201 : vector<1x128xf32> to vector<16x128xf32>
    %203 = arith.mulf %200, %202 : vector<16x128xf32>
    %cst_54 = arith.constant dense<0.000000e+00> : vector<16xf32>
    %204 = vector.multi_reduction <add>, %203, %cst_54 [1] : vector<16x128xf32> to vector<16xf32>
    %205 = vector.shape_cast %204 : vector<16xf32> to vector<16x1xf32>
    %206 = arith.maximumf %164, %205 : vector<16x1xf32>
    %207 = arith.subf %164, %206 : vector<16x1xf32>
    %208 = math.exp %207 : vector<16x1xf32>
    %209 = arith.subf %205, %206 : vector<16x1xf32>
    %210 = math.exp %209 : vector<16x1xf32>
    %211 = arith.mulf %208, %170 : vector<16x1xf32>
    %212 = arith.addf %211, %210 : vector<16x1xf32>
    %213 = vector.broadcast %208 : vector<16x1xf32> to vector<16x128xf32>
    %214 = arith.mulf %213, %175 : vector<16x128xf32>
    %215 = vector.broadcast %210 : vector<16x1xf32> to vector<16x128xf32>
    %216 = arith.mulf %215, %199 : vector<16x128xf32>
    %217 = arith.addf %214, %216 : vector<16x128xf32>
    %c5_i32 = arith.constant 5 : i32
    %218 = arith.index_cast %c5_i32 : i32 to index
    %c0_55 = arith.constant 0 : index
    %c0_56 = arith.constant 0 : index
    %219 = vector.load %arg2[%218, %c0_55, %c0_56] : memref<8x16x512xbf16, #tpu.memory_space<vmem>>, vector<1x16x512xbf16>
    %220 = vector.shape_cast %219 : vector<1x16x512xbf16> to vector<16x512xbf16>
    %221 = arith.extf %220 : vector<16x512xbf16> to vector<16x512xf32>
    %222 = arith.truncf %199 : vector<16x128xf32> to vector<16x128xbf16>
    %c0_57 = arith.constant 0 : index
    %c0_58 = arith.constant 0 : index
    %223 = vector.load %arg3[%c0_57, %c0_58] : memref<128x512xbf16, #tpu.memory_space<vmem>>, vector<128x512xbf16>
    %cst_59 = arith.constant dense<0.000000e+00> : vector<16x512xf32>
    %224 = tpu.matmul %222, %223, %cst_59 {dimension_numbers = #tpu.dot_dimension_numbers<[1], [0], [0], [1], [0, 0, 1, 1], [], []>} : vector<16x128xbf16>, vector<128x512xbf16>, vector<16x512xf32> -> vector<16x512xf32>
    %225 = arith.addf %221, %224 : vector<16x512xf32>
    %226 = vector.extract_strided_slice %225 {offsets = [0, 0], sizes = [16, 384], strides = [1, 1]} : vector<16x512xf32> to vector<16x384xf32>
    %227 = arith.negf %226 : vector<16x384xf32>
    %228 = math.exp %227 : vector<16x384xf32>
    %cst_60 = arith.constant 1.000000e+00 : f32
    %229 = vector.broadcast %cst_60 : f32 to vector<16x384xf32>
    %230 = arith.addf %229, %228 : vector<16x384xf32>
    %231 = arith.divf %229, %230 : vector<16x384xf32>
    %232 = vector.extract_strided_slice %231 {offsets = [0, 0], sizes = [16, 128], strides = [1, 1]} : vector<16x384xf32> to vector<16x128xf32>
    %233 = vector.extract_strided_slice %231 {offsets = [0, 128], sizes = [16, 128], strides = [1, 1]} : vector<16x384xf32> to vector<16x128xf32>
    %234 = vector.extract_strided_slice %231 {offsets = [0, 256], sizes = [16, 128], strides = [1, 1]} : vector<16x384xf32> to vector<16x128xf32>
    %235 = vector.extract_strided_slice %225 {offsets = [0, 384], sizes = [16, 128], strides = [1, 1]} : vector<16x512xf32> to vector<16x128xf32>
    %236 = math.tanh %235 : vector<16x128xf32>
    %237 = arith.mulf %233, %197 : vector<16x128xf32>
    %238 = arith.mulf %232, %236 : vector<16x128xf32>
    %239 = arith.addf %237, %238 : vector<16x128xf32>
    %240 = math.tanh %239 : vector<16x128xf32>
    %241 = arith.mulf %234, %240 : vector<16x128xf32>
    %242 = math.tanh %241 : vector<16x128xf32>
    %c0_61 = arith.constant 0 : index
    %c0_62 = arith.constant 0 : index
    %243 = vector.load %arg4[%c0_61, %c0_62] : memref<1x128xf32, #tpu.memory_space<vmem>>, vector<1x128xf32>
    %244 = vector.broadcast %243 : vector<1x128xf32> to vector<16x128xf32>
    %245 = arith.mulf %242, %244 : vector<16x128xf32>
    %cst_63 = arith.constant dense<0.000000e+00> : vector<16xf32>
    %246 = vector.multi_reduction <add>, %245, %cst_63 [1] : vector<16x128xf32> to vector<16xf32>
    %247 = vector.shape_cast %246 : vector<16xf32> to vector<16x1xf32>
    %248 = arith.maximumf %206, %247 : vector<16x1xf32>
    %249 = arith.subf %206, %248 : vector<16x1xf32>
    %250 = math.exp %249 : vector<16x1xf32>
    %251 = arith.subf %247, %248 : vector<16x1xf32>
    %252 = math.exp %251 : vector<16x1xf32>
    %253 = arith.mulf %250, %212 : vector<16x1xf32>
    %254 = arith.addf %253, %252 : vector<16x1xf32>
    %255 = vector.broadcast %250 : vector<16x1xf32> to vector<16x128xf32>
    %256 = arith.mulf %255, %217 : vector<16x128xf32>
    %257 = vector.broadcast %252 : vector<16x1xf32> to vector<16x128xf32>
    %258 = arith.mulf %257, %241 : vector<16x128xf32>
    %259 = arith.addf %256, %258 : vector<16x128xf32>
    %c6_i32 = arith.constant 6 : i32
    %260 = arith.index_cast %c6_i32 : i32 to index
    %c0_64 = arith.constant 0 : index
    %c0_65 = arith.constant 0 : index
    %261 = vector.load %arg2[%260, %c0_64, %c0_65] : memref<8x16x512xbf16, #tpu.memory_space<vmem>>, vector<1x16x512xbf16>
    %262 = vector.shape_cast %261 : vector<1x16x512xbf16> to vector<16x512xbf16>
    %263 = arith.extf %262 : vector<16x512xbf16> to vector<16x512xf32>
    %264 = arith.truncf %241 : vector<16x128xf32> to vector<16x128xbf16>
    %c0_66 = arith.constant 0 : index
    %c0_67 = arith.constant 0 : index
    %265 = vector.load %arg3[%c0_66, %c0_67] : memref<128x512xbf16, #tpu.memory_space<vmem>>, vector<128x512xbf16>
    %cst_68 = arith.constant dense<0.000000e+00> : vector<16x512xf32>
    %266 = tpu.matmul %264, %265, %cst_68 {dimension_numbers = #tpu.dot_dimension_numbers<[1], [0], [0], [1], [0, 0, 1, 1], [], []>} : vector<16x128xbf16>, vector<128x512xbf16>, vector<16x512xf32> -> vector<16x512xf32>
    %267 = arith.addf %263, %266 : vector<16x512xf32>
    %268 = vector.extract_strided_slice %267 {offsets = [0, 0], sizes = [16, 384], strides = [1, 1]} : vector<16x512xf32> to vector<16x384xf32>
    %269 = arith.negf %268 : vector<16x384xf32>
    %270 = math.exp %269 : vector<16x384xf32>
    %cst_69 = arith.constant 1.000000e+00 : f32
    %271 = vector.broadcast %cst_69 : f32 to vector<16x384xf32>
    %272 = arith.addf %271, %270 : vector<16x384xf32>
    %273 = arith.divf %271, %272 : vector<16x384xf32>
    %274 = vector.extract_strided_slice %273 {offsets = [0, 0], sizes = [16, 128], strides = [1, 1]} : vector<16x384xf32> to vector<16x128xf32>
    %275 = vector.extract_strided_slice %273 {offsets = [0, 128], sizes = [16, 128], strides = [1, 1]} : vector<16x384xf32> to vector<16x128xf32>
    %276 = vector.extract_strided_slice %273 {offsets = [0, 256], sizes = [16, 128], strides = [1, 1]} : vector<16x384xf32> to vector<16x128xf32>
    %277 = vector.extract_strided_slice %267 {offsets = [0, 384], sizes = [16, 128], strides = [1, 1]} : vector<16x512xf32> to vector<16x128xf32>
    %278 = math.tanh %277 : vector<16x128xf32>
    %279 = arith.mulf %275, %239 : vector<16x128xf32>
    %280 = arith.mulf %274, %278 : vector<16x128xf32>
    %281 = arith.addf %279, %280 : vector<16x128xf32>
    %282 = math.tanh %281 : vector<16x128xf32>
    %283 = arith.mulf %276, %282 : vector<16x128xf32>
    %284 = math.tanh %283 : vector<16x128xf32>
    %c0_70 = arith.constant 0 : index
    %c0_71 = arith.constant 0 : index
    %285 = vector.load %arg4[%c0_70, %c0_71] : memref<1x128xf32, #tpu.memory_space<vmem>>, vector<1x128xf32>
    %286 = vector.broadcast %285 : vector<1x128xf32> to vector<16x128xf32>
    %287 = arith.mulf %284, %286 : vector<16x128xf32>
    %cst_72 = arith.constant dense<0.000000e+00> : vector<16xf32>
    %288 = vector.multi_reduction <add>, %287, %cst_72 [1] : vector<16x128xf32> to vector<16xf32>
    %289 = vector.shape_cast %288 : vector<16xf32> to vector<16x1xf32>
    %290 = arith.maximumf %248, %289 : vector<16x1xf32>
    %291 = arith.subf %248, %290 : vector<16x1xf32>
    %292 = math.exp %291 : vector<16x1xf32>
    %293 = arith.subf %289, %290 : vector<16x1xf32>
    %294 = math.exp %293 : vector<16x1xf32>
    %295 = arith.mulf %292, %254 : vector<16x1xf32>
    %296 = arith.addf %295, %294 : vector<16x1xf32>
    %297 = vector.broadcast %292 : vector<16x1xf32> to vector<16x128xf32>
    %298 = arith.mulf %297, %259 : vector<16x128xf32>
    %299 = vector.broadcast %294 : vector<16x1xf32> to vector<16x128xf32>
    %300 = arith.mulf %299, %283 : vector<16x128xf32>
    %301 = arith.addf %298, %300 : vector<16x128xf32>
    %c7_i32 = arith.constant 7 : i32
    %302 = arith.index_cast %c7_i32 : i32 to index
    %c0_73 = arith.constant 0 : index
    %c0_74 = arith.constant 0 : index
    %303 = vector.load %arg2[%302, %c0_73, %c0_74] : memref<8x16x512xbf16, #tpu.memory_space<vmem>>, vector<1x16x512xbf16>
    %304 = vector.shape_cast %303 : vector<1x16x512xbf16> to vector<16x512xbf16>
    %305 = arith.extf %304 : vector<16x512xbf16> to vector<16x512xf32>
    %306 = arith.truncf %283 : vector<16x128xf32> to vector<16x128xbf16>
    %c0_75 = arith.constant 0 : index
    %c0_76 = arith.constant 0 : index
    %307 = vector.load %arg3[%c0_75, %c0_76] : memref<128x512xbf16, #tpu.memory_space<vmem>>, vector<128x512xbf16>
    %cst_77 = arith.constant dense<0.000000e+00> : vector<16x512xf32>
    %308 = tpu.matmul %306, %307, %cst_77 {dimension_numbers = #tpu.dot_dimension_numbers<[1], [0], [0], [1], [0, 0, 1, 1], [], []>} : vector<16x128xbf16>, vector<128x512xbf16>, vector<16x512xf32> -> vector<16x512xf32>
    %309 = arith.addf %305, %308 : vector<16x512xf32>
    %310 = vector.extract_strided_slice %309 {offsets = [0, 0], sizes = [16, 384], strides = [1, 1]} : vector<16x512xf32> to vector<16x384xf32>
    %311 = arith.negf %310 : vector<16x384xf32>
    %312 = math.exp %311 : vector<16x384xf32>
    %cst_78 = arith.constant 1.000000e+00 : f32
    %313 = vector.broadcast %cst_78 : f32 to vector<16x384xf32>
    %314 = arith.addf %313, %312 : vector<16x384xf32>
    %315 = arith.divf %313, %314 : vector<16x384xf32>
    %316 = vector.extract_strided_slice %315 {offsets = [0, 0], sizes = [16, 128], strides = [1, 1]} : vector<16x384xf32> to vector<16x128xf32>
    %317 = vector.extract_strided_slice %315 {offsets = [0, 128], sizes = [16, 128], strides = [1, 1]} : vector<16x384xf32> to vector<16x128xf32>
    %318 = vector.extract_strided_slice %315 {offsets = [0, 256], sizes = [16, 128], strides = [1, 1]} : vector<16x384xf32> to vector<16x128xf32>
    %319 = vector.extract_strided_slice %309 {offsets = [0, 384], sizes = [16, 128], strides = [1, 1]} : vector<16x512xf32> to vector<16x128xf32>
    %320 = math.tanh %319 : vector<16x128xf32>
    %321 = arith.mulf %317, %281 : vector<16x128xf32>
    %322 = arith.mulf %316, %320 : vector<16x128xf32>
    %323 = arith.addf %321, %322 : vector<16x128xf32>
    %324 = math.tanh %323 : vector<16x128xf32>
    %325 = arith.mulf %318, %324 : vector<16x128xf32>
    %326 = math.tanh %325 : vector<16x128xf32>
    %c0_79 = arith.constant 0 : index
    %c0_80 = arith.constant 0 : index
    %327 = vector.load %arg4[%c0_79, %c0_80] : memref<1x128xf32, #tpu.memory_space<vmem>>, vector<1x128xf32>
    %328 = vector.broadcast %327 : vector<1x128xf32> to vector<16x128xf32>
    %329 = arith.mulf %326, %328 : vector<16x128xf32>
    %cst_81 = arith.constant dense<0.000000e+00> : vector<16xf32>
    %330 = vector.multi_reduction <add>, %329, %cst_81 [1] : vector<16x128xf32> to vector<16xf32>
    %331 = vector.shape_cast %330 : vector<16xf32> to vector<16x1xf32>
    %332 = arith.maximumf %290, %331 : vector<16x1xf32>
    %333 = arith.subf %290, %332 : vector<16x1xf32>
    %334 = math.exp %333 : vector<16x1xf32>
    %335 = arith.subf %331, %332 : vector<16x1xf32>
    %336 = math.exp %335 : vector<16x1xf32>
    %337 = arith.mulf %334, %296 : vector<16x1xf32>
    %338 = arith.addf %337, %336 : vector<16x1xf32>
    %339 = vector.broadcast %334 : vector<16x1xf32> to vector<16x128xf32>
    %340 = arith.mulf %339, %301 : vector<16x128xf32>
    %341 = vector.broadcast %336 : vector<16x1xf32> to vector<16x128xf32>
    %342 = arith.mulf %341, %325 : vector<16x128xf32>
    %343 = arith.addf %340, %342 : vector<16x128xf32>
    %c8_i32 = arith.constant 8 : i32
    %c0_82 = arith.constant 0 : index
    %c0_83 = arith.constant 0 : index
    %344 = vector.load %arg8[%c0_82, %c0_83] : memref<16x128xf32, #tpu.memory_space<vmem>>, vector<16x128xf32>
    tpu.vector_store %arg8[%c0_82, %c0_83], %325 {strides = array<i32>} : memref<16x128xf32, #tpu.memory_space<vmem>>, vector<16x128xf32>,
    %c0_84 = arith.constant 0 : index
    %c0_85 = arith.constant 0 : index
    %345 = vector.load %arg9[%c0_84, %c0_85] : memref<16x128xf32, #tpu.memory_space<vmem>>, vector<16x128xf32>
    tpu.vector_store %arg9[%c0_84, %c0_85], %323 {strides = array<i32>} : memref<16x128xf32, #tpu.memory_space<vmem>>, vector<16x128xf32>,
    %c0_86 = arith.constant 0 : index
    %c0_87 = arith.constant 0 : index
    %346 = vector.load %arg10[%c0_86, %c0_87] : memref<16x1xf32, #tpu.memory_space<vmem>>, vector<16x1xf32>
    tpu.vector_store %arg10[%c0_86, %c0_87], %332 {strides = array<i32>} : memref<16x1xf32, #tpu.memory_space<vmem>>, vector<16x1xf32>,
    %c0_88 = arith.constant 0 : index
    %c0_89 = arith.constant 0 : index
    %347 = vector.load %arg11[%c0_88, %c0_89] : memref<16x1xf32, #tpu.memory_space<vmem>>, vector<16x1xf32>
    tpu.vector_store %arg11[%c0_88, %c0_89], %338 {strides = array<i32>} : memref<16x1xf32, #tpu.memory_space<vmem>>, vector<16x1xf32>,
    %c0_90 = arith.constant 0 : index
    %c0_91 = arith.constant 0 : index
    %348 = vector.load %arg12[%c0_90, %c0_91] : memref<16x128xf32, #tpu.memory_space<vmem>>, vector<16x128xf32>
    tpu.vector_store %arg12[%c0_90, %c0_91], %343 {strides = array<i32>} : memref<16x128xf32, #tpu.memory_space<vmem>>, vector<16x128xf32>,
    %c0_i32_92 = arith.constant 0 : i32
    %349 = arith.cmpi eq, %arg1, %c0_i32_92 : i32
    %350 = arith.extui %349 : i1 to i32
    %c0_i32_93 = arith.constant 0 : i32
    %351 = arith.cmpi ne, %350, %c0_i32_93 : i32
    scf.if %351 {
      %c0_94 = arith.constant 0 : index
      %c0_95 = arith.constant 0 : index
      %352 = vector.load %arg12[%c0_94, %c0_95] : memref<16x128xf32, #tpu.memory_space<vmem>>, vector<16x128xf32>
      %c0_96 = arith.constant 0 : index
      %c0_97 = arith.constant 0 : index
      %353 = vector.load %arg11[%c0_96, %c0_97] : memref<16x1xf32, #tpu.memory_space<vmem>>, vector<16x1xf32>
      %354 = vector.broadcast %353 : vector<16x1xf32> to vector<16x128xf32>
      %355 = arith.divf %352, %354 : vector<16x128xf32>
      %356 = math.tanh %355 : vector<16x128xf32>
      %357 = arith.truncf %356 : vector<16x128xf32> to vector<16x128xbf16>
      %c0_98 = arith.constant 0 : index
      %c0_99 = arith.constant 0 : index
      %358 = vector.load %arg5[%c0_98, %c0_99] : memref<128x128xbf16, #tpu.memory_space<vmem>>, vector<128x128xbf16>
      %cst_100 = arith.constant dense<0.000000e+00> : vector<16x128xf32>
      %359 = tpu.matmul %357, %358, %cst_100 {dimension_numbers = #tpu.dot_dimension_numbers<[1], [0], [0], [1], [0, 0, 1, 1], [], []>} : vector<16x128xbf16>, vector<128x128xbf16>, vector<16x128xf32> -> vector<16x128xf32>
      %c0_101 = arith.constant 0 : index
      %c0_102 = arith.constant 0 : index
      %360 = vector.load %arg6[%c0_101, %c0_102] : memref<1x128xf32, #tpu.memory_space<vmem>>, vector<1x128xf32>
      %361 = vector.broadcast %360 : vector<1x128xf32> to vector<16x128xf32>
      %362 = arith.addf %359, %361 : vector<16x128xf32>
      %c0_103 = arith.constant 0 : index
      %c0_104 = arith.constant 0 : index
      %363 = vector.load %arg7[%c0_103, %c0_104] : memref<16x128xf32, #tpu.memory_space<vmem>>, vector<16x128xf32>
      tpu.vector_store %arg7[%c0_103, %c0_104], %362 {strides = array<i32>} : memref<16x128xf32, #tpu.memory_space<vmem>>, vector<16x128xf32>,
    } else {
    }
    return
  }
  func.func @transform_0(%arg0: i32, %arg1: i32) -> (i32, i32, i32) {
    %c0_i32 = arith.constant 0 : i32
    %c0_i32_0 = arith.constant 0 : i32
    return %arg1, %arg0, %c0_i32 : i32, i32, i32
  }
  func.func @transform_1(%arg0: i32, %arg1: i32) -> (i32, i32) {
    %c0_i32 = arith.constant 0 : i32
    %c0_i32_0 = arith.constant 0 : i32
    %c0_i32_1 = arith.constant 0 : i32
    return %c0_i32, %c0_i32_0 : i32, i32
  }
  func.func @transform_2(%arg0: i32, %arg1: i32) -> (i32, i32) {
    %c0_i32 = arith.constant 0 : i32
    %c0_i32_0 = arith.constant 0 : i32
    %c0_i32_1 = arith.constant 0 : i32
    return %c0_i32, %c0_i32_0 : i32, i32
  }
  func.func @transform_3(%arg0: i32, %arg1: i32) -> (i32, i32) {
    %c0_i32 = arith.constant 0 : i32
    %c0_i32_0 = arith.constant 0 : i32
    %c0_i32_1 = arith.constant 0 : i32
    return %c0_i32, %c0_i32_0 : i32, i32
  }
  func.func @transform_4(%arg0: i32, %arg1: i32) -> (i32, i32) {
    %c0_i32 = arith.constant 0 : i32
    %c0_i32_0 = arith.constant 0 : i32
    %c0_i32_1 = arith.constant 0 : i32
    return %c0_i32, %c0_i32_0 : i32, i32
  }
  func.func @transform_5(%arg0: i32, %arg1: i32) -> (i32, i32) {
    %c0_i32 = arith.constant 0 : i32
    %c0_i32_0 = arith.constant 0 : i32
    return %arg0, %c0_i32 : i32, i32
  }
}

</mosaic_0001>

<bundles_post_ra>
// kernel: tpu_custom_call.1
= control target key start
LH: loop header
LB: loop body
LE: loop exit
PB: predicated region body
PF: predicated region fallthrough
CT: control target
= control target key end

     0   :  { %10 = vsyncpa [#allocation8], 0  ;;  %s4353_s0 = inlined_call_operand.hbm [shape: bf16[8,16,512], index: 0, kind: input, shape index: {}]   ;;  %s4354_s1 = inlined_call_operand.hbm [shape: bf16[128,512], index: 1, kind: input, shape index: {}]   ;;  %s4355_s2 = inlined_call_operand.vmem [shape: f32[1,128], index: 2, kind: input, shape index: {}]   ;;  %s4356_s3 = inlined_call_operand.hbm [shape: bf16[128,128], index: 3, kind: input, shape index: {}]   ;;  %s4357_s4 = inlined_call_operand.vmem [shape: f32[1,128], index: 4, kind: input, shape index: {}]   ;;  %s4358_s5 = inlined_call_operand.hbm [shape: f32[16,128], index: 5, kind: output, shape index: {}]  }
   0x1   :  { %11 = vsyncpa [#allocation11], 0 }
   0x2   :  { %12 = vsyncpa [#allocation9], 0  ;;  %s30_s20 = sshll.u32 %s4354_s1, 4  ;;  %s3232_s21 = smov [#allocation10]   ;;  %s31_s20 = int_to_ptr.hbm [resolvable:$true] %s30_s20 }
   0x3   :  { %s32_s22 = sshll.u32 %s3232_s21, 4  ;;  %s17_s25 = sshll.u32 %s4353_s0, 4  ;;  %s33_s22 = int_to_ptr.vmem [resolvable:$true] %s32_s22  ;;  %s18_s25 = int_to_ptr.hbm [resolvable:$true] %s17_s25 }
   0x4   :  { %s3233_s26 = smov 256   ;;  %s3234_s27 = smov 16  }
   0x5   :  { %38 = dma.hbm_to_vmem [thread:$0]  %s31_s20, 4096, %s33_s22, [#allocation11], %s3233_s26, %s3233_s26, %s3234_s27  }
   0x6   :  { %s3235_s28 = smov [#allocation7]   ;;  %s45_s7 = sshll.u32 %s4356_s3, 4  ;;  %s46_s7 = int_to_ptr.hbm [resolvable:$true] %s45_s7 }
   0x7   :  { %s19_s29 = sshll.u32 %s3235_s28, 4  ;;  %s3236_s1 = smov [#allocation12]   ;;  %s20_s29 = int_to_ptr.vmem [resolvable:$true] %s19_s29 }
   0x8   :  { %25 = dma.hbm_to_vmem [thread:$0]  %s18_s25, 4096, %s20_s29, [#allocation8], %s3233_s26, %s3233_s26, %s3234_s27  }
   0x9   :  { %s47_s8 = sshll.u32 %s3236_s1, 4  ;;  %s3237_s9 = smov 64   ;;  %s48_s8 = int_to_ptr.vmem [resolvable:$true] %s47_s8 }
   0xa   :  { %s3238_s10 = smov 4  }
   0xb   :  { %53 = dma.hbm_to_vmem [thread:$0]  %s46_s7, 1024, %s48_s8, [#allocation11], %s3237_s9, %s3237_s9, %s3238_s10  }
   0xc   :  { %3226 = dma.done.wait [#allocation8], 4096  }
   0xd   :  { %3227 = vsyncadd [#allocation8], 4294963200 }
   0xe   :  { %3228 = dma.done.wait [#allocation11], 5120  }
   0xf   :  { %3229 = vsyncadd [#allocation11], 4294962176  ;;  %v2615_v0 = vld [vmem:[#allocation10 + $0xe0] sm:$0xf]  ;;  %v2739_v1 = vld [vmem:[#allocation10 + $0xec] sm:$0xf0] }
  0x10   :  { %v2737_v2 = vld [vmem:[#allocation10 + $0xe4] sm:$0xf]  ;;  %v3285_v3 = vor.u32 %v2739_v1, %v2615_v0  ;;  %v2617_v4 = vld [vmem:[#allocation10 + $0xf0] sm:$0xf0]  ;;  %v2623_v5 = vld [vmem:[#allocation10 + $0xe8] sm:$0xf] }
  0x11   :  { %v2740_v6 = vld [vmem:[#allocation10 + $0xf4] sm:$0xf0]  ;;  %v3287_v7 = vor.u32 %v2737_v2, %v2617_v4  ;;  %v2599_v9 = vld [vmem:[#allocation10 + $0xc0] sm:$0xf]  ;;  %v2735_v10 = vld [vmem:[#allocation10 + $0xcc] sm:$0xf0] }
  0x12   :  { %v3289_v8 = vor.u32 %v2740_v6, %v2623_v5  ;;  %v2733_v11 = vld [vmem:[#allocation10 + $0xc4] sm:$0xf]  ;;  %298 = vmatpush.bf16.msra.mxu0 %v3285_v3  ;;  %v3292_v12 = vor.u32 %v2735_v10, %v2599_v9  ;;  %v2601_v13 = vld [vmem:[#allocation10 + $0xd0] sm:$0xf0]  ;;  %v2607_v14 = vld [vmem:[#allocation10 + $0xc8] sm:$0xf] }
  0x13   :  { %v2736_v15 = vld [vmem:[#allocation10 + $0xd4] sm:$0xf0]  ;;  %312 = vmatpush.bf16.msra.mxu1 %v3287_v7  ;;  %v3296_v16 = vor.u32 %v2733_v11, %v2601_v13  ;;  %v2738_v18 = vld [vmem:[#allocation10 + $0xec] sm:$0xf]  ;;  %v2625_v19 = vld [vmem:[#allocation10 + $0xf8] sm:$0xf0] }
  0x14   :  { %326 = vmatpush.bf16.msra.mxu2 %v3289_v8  ;;  %v3298_v17 = vor.u32 %v2736_v15, %v2607_v14  ;;  %v2583_v20 = vld [vmem:[#allocation10 + $0xa0] sm:$0xf]  ;;  %v3300_v21 = vor.u32 %v2738_v18, %v2625_v19  ;;  %v2731_v22 = vld [vmem:[#allocation10 + $0xac] sm:$0xf0]  ;;  %v2729_v23 = vld [vmem:[#allocation10 + $0xa4] sm:$0xf] }
  0x15   :  { %v2585_v24 = vld [vmem:[#allocation10 + $0xb0] sm:$0xf0]  ;;  %v2591_v25 = vld [vmem:[#allocation10 + $0xa8] sm:$0xf]  ;;  %v2732_v26 = vld [vmem:[#allocation10 + $0xb4] sm:$0xf0]  ;;  %v3304_v28 = vor.u32 %v2731_v22, %v2583_v20 }
  0x16   :  { %v2734_v27 = vld [vmem:[#allocation10 + $0xcc] sm:$0xf]  ;;  %299 = vmatpush.bf16.msra.mxu0 %v3292_v12  ;;  %340 = vmatpush.bf16.msra.mxu3 %v3300_v21  ;;  %v2609_v29 = vld [vmem:[#allocation10 + $0xd8] sm:$0xf0]  ;;  %v2567_v30 = vld [vmem:[#allocation10 + $0x80] sm:$0xf]  ;;  %v3308_v32 = vor.u32 %v2729_v23, %v2585_v24  ;;  %v3310_v33 = vor.u32 %v2732_v26, %v2591_v25 }
  0x17   :  { %v2727_v31 = vld [vmem:[#allocation10 + $0x8c] sm:$0xf0]  ;;  %313 = vmatpush.bf16.msra.mxu1 %v3296_v16  ;;  %v3312_v34 = vor.u32 %v2734_v27, %v2609_v29  ;;  %v2725_v35 = vld [vmem:[#allocation10 + $0x84] sm:$0xf]  ;;  %v2569_v36 = vld [vmem:[#allocation10 + $0x90] sm:$0xf0] }
  0x18   :  { %327 = vmatpush.bf16.msra.mxu2 %v3298_v17  ;;  %v2575_v37 = vld [vmem:[#allocation10 + $0x88] sm:$0xf]  ;;  %v2728_v38 = vld [vmem:[#allocation10 + $0x94] sm:$0xf0]  ;;  %v2730_v39 = vld [vmem:[#allocation10 + $0xac] sm:$0xf]  ;;  %v3316_v41 = vor.u32 %v2727_v31, %v2567_v30  ;;  %v3322_v45 = vor.u32 %v2725_v35, %v2569_v36 }
  0x19   :  { %v2593_v40 = vld [vmem:[#allocation10 + $0xb8] sm:$0xf0]  ;;  %v2551_v43 = vld [vmem:[#allocation10 + $0x60] sm:$0xf]  ;;  %v2723_v44 = vld [vmem:[#allocation10 + $0x6c] sm:$0xf0]  ;;  %v3324_v46 = vor.u32 %v2728_v38, %v2575_v37 }
  0x1a   :  { %300 = vmatpush.bf16.msra.mxu0 %v3304_v28  ;;  %341 = vmatpush.bf16.msra.mxu3 %v3312_v34  ;;  %v3318_v42 = vor.u32 %v2730_v39, %v2593_v40  ;;  %v2721_v47 = vld [vmem:[#allocation10 + $0x64] sm:$0xf]  ;;  %v2726_v48 = vld [vmem:[#allocation10 + $0x8c] sm:$0xf]  ;;  %v2577_v49 = vld [vmem:[#allocation10 + $0x98] sm:$0xf0]  ;;  %v3328_v53 = vor.u32 %v2723_v44, %v2551_v43 }
  0x1b   :  { %314 = vmatpush.bf16.msra.mxu1 %v3308_v32  ;;  %v2553_v50 = vld [vmem:[#allocation10 + $0x70] sm:$0xf0]  ;;  %v2559_v51 = vld [vmem:[#allocation10 + $0x68] sm:$0xf]  ;;  %v2724_v52 = vld [vmem:[#allocation10 + $0x74] sm:$0xf0]  ;;  %v3330_v54 = vor.u32 %v2726_v48, %v2577_v49 }
  0x1c   :  { %328 = vmatpush.bf16.msra.mxu2 %v3310_v33  ;;  %v2535_v55 = vld [vmem:[#allocation10 + $0x40] sm:$0xf]  ;;  %v2719_v56 = vld [vmem:[#allocation10 + $0x4c] sm:$0xf0]  ;;  %v3334_v57 = vor.u32 %v2721_v47, %v2553_v50  ;;  %v3336_v58 = vor.u32 %v2724_v52, %v2559_v51  ;;  %v2717_v59 = vld [vmem:[#allocation10 + $0x44] sm:$0xf] }
  0x1d   :  { %v2722_v60 = vld [vmem:[#allocation10 + $0x6c] sm:$0xf]  ;;  %v2561_v61 = vld [vmem:[#allocation10 + $0x78] sm:$0xf0]  ;;  %v2537_v62 = vld [vmem:[#allocation10 + $0x50] sm:$0xf0]  ;;  %v3340_v1 = vor.u32 %v2719_v56, %v2535_v55 }
  0x1e   :  { %301 = vmatpush.bf16.msra.mxu0 %v3316_v41  ;;  %342 = vmatpush.bf16.msra.mxu3 %v3318_v42  ;;  %v2543_v63 = vld [vmem:[#allocation10 + $0x48] sm:$0xf]  ;;  %v2720_v0 = vld [vmem:[#allocation10 + $0x54] sm:$0xf0]  ;;  %v3342_v2 = vor.u32 %v2722_v60, %v2561_v61  ;;  %v2519_v4 = vld [vmem:[#allocation10 + $0x20] sm:$0xf]  ;;  %v3346_v9 = vor.u32 %v2717_v59, %v2537_v62 }
  0x1f   :  { %315 = vmatpush.bf16.msra.mxu1 %v3322_v45  ;;  %v2715_v5 = vld [vmem:[#allocation10 + $0x2c] sm:$0xf0]  ;;  %v2713_v6 = vld [vmem:[#allocation10 + $0x24] sm:$0xf]  ;;  %v3348_v10 = vor.u32 %v2720_v0, %v2543_v63  ;;  %v2521_v11 = vld [vmem:[#allocation10 + $0x30] sm:$0xf0] }
  0x20   :  { %329 = vmatpush.bf16.msra.mxu2 %v3324_v46  ;;  %v2718_v13 = vld [vmem:[#allocation10 + $0x4c] sm:$0xf]  ;;  %v2545_v14 = vld [vmem:[#allocation10 + $0x58] sm:$0xf0]  ;;  %v2527_v15 = vld [vmem:[#allocation10 + $0x28] sm:$0xf]  ;;  %v3352_v19 = vor.u32 %v2715_v5, %v2519_v4  ;;  %v3358_v24 = vor.u32 %v2713_v6, %v2521_v11 }
  0x21   :  { %v2716_v18 = vld [vmem:[#allocation10 + $0x34] sm:$0xf0]  ;;  %v3354_v20 = vor.u32 %v2718_v13, %v2545_v14  ;;  %v2503_v22 = vld [vmem:[#allocation10] sm:$0xf]  ;;  %v2711_v23 = vld [vmem:[#allocation10 + $0xc] sm:$0xf0] }
  0x22   :  { %302 = vmatpush.bf16.msra.mxu0 %v3328_v53  ;;  %343 = vmatpush.bf16.msra.mxu3 %v3330_v54  ;;  %v3360_v25 = vor.u32 %v2716_v18, %v2527_v15  ;;  %v2709_v26 = vld [vmem:[#allocation10 + $0x4] sm:$0xf]  ;;  %v2714_v27 = vld [vmem:[#allocation10 + $0x2c] sm:$0xf]  ;;  %v2529_v29 = vld [vmem:[#allocation10 + $0x38] sm:$0xf0]  ;;  %v3364_v36 = vor.u32 %v2711_v23, %v2503_v22 }
  0x23   :  { %316 = vmatpush.bf16.msra.mxu1 %v3334_v57  ;;  %v2505_v30 = vld [vmem:[#allocation10 + $0x10] sm:$0xf0]  ;;  %v2511_v31 = vld [vmem:[#allocation10 + $0x8] sm:$0xf]  ;;  %v2712_v35 = vld [vmem:[#allocation10 + $0x14] sm:$0xf0]  ;;  %v3366_v37 = vor.u32 %v2714_v27, %v2529_v29 }
  0x24   :  { %330 = vmatpush.bf16.msra.mxu2 %v3336_v58  ;;  %v3370_v38 = vor.u32 %v2709_v26, %v2505_v30  ;;  %v3372_v39 = vor.u32 %v2712_v35, %v2511_v31  ;;  %v2710_v40 = vld [vmem:[#allocation10 + $0xc] sm:$0xf]  ;;  %v2513_v43 = vld [vmem:[#allocation10 + $0x18] sm:$0xf0]  ;;  %v3239_v47 = vmov 0.0|0.0   ;;  %v93_v48 = vld [vmem:[#allocation7] sm:$0xff] }
  0x25   :  { %v3378_v44 = vor.u32 %v2710_v40, %v2513_v43  ;;  %v97_v49 = vunpack.c.l.bf16 %v93_v48  ;;  %v98_v50 = vunpack.c.h.bf16 %v93_v48  ;;  %v94_v56 = vld [vmem:[#allocation7 + $0x8] sm:$0xff]  ;;  %v95_v60 = vld [vmem:[#allocation7 + $0x10] sm:$0xff]  ;;  %v3445_v15 = vld [vmem:[#allocation7 + $0x18] sm:$0xff]  ;;  %vm76_vm10 = vcmask 7168   ;;  %s3243_s16 = smov [#allocation13]   ;;  %s2487_s20 = sshll.u32 %s4358_s5, 4  ;;  %s2488_s20 = int_to_ptr.hbm [resolvable:$true] %s2487_s20 }
  0x26   :  { %303 = vmatpush.bf16.msra.mxu0 %v3340_v1  ;;  %344 = vmatpush.bf16.msra.mxu3 %v3342_v2  ;;  %4384 = vst [vmem:[#allocation17_spill] sm:$0xff] %v3372_v39  ;;  %v99_v63 = vunpack.c.l.bf16 %v94_v56  ;;  %v101_v0 = vunpack.c.l.bf16 %v95_v60  ;;  %v102_v4 = vunpack.c.h.bf16 %v95_v60  ;;  %v100_v27 = vunpack.c.h.bf16 %v94_v56  ;;  %s2485_s17 = sshll.u32 %s3243_s16, 4  ;;  %s3244_s21 = smov 128   ;;  %s2486_s17 = int_to_ptr.vmem [resolvable:$true] %s2485_s17 }
  0x27   :  { %317 = vmatpush.bf16.msra.mxu1 %v3346_v9  ;;  %4385 = vst [vmem:[#allocation18_spill] sm:$0xff] %v3378_v44  ;;  %v103_v35 = vunpack.c.l.bf16 %v3445_v15  ;;  %s3245_s22 = smov 8  }
  0x28   :  { %331 = vmatpush.bf16.msra.mxu2 %v3348_v10 }
  0x2a   :  { %304 = vmatpush.bf16.msra.mxu0 %v3352_v19  ;;  %345 = vmatpush.bf16.msra.mxu3 %v3354_v20 }
  0x2b   :  { %318 = vmatpush.bf16.msra.mxu1 %v3358_v24 }
  0x2c   :  { %332 = vmatpush.bf16.msra.mxu2 %v3360_v25 }
  0x2e   :  { %305 = vmatpush.bf16.msra.mxu0 %v3364_v36  ;;  %346 = vmatpush.bf16.msra.mxu3 %v3366_v37 }
  0x2f   :  { %319 = vmatpush.bf16.msra.mxu1 %v3370_v38 }
  0x30   :  { %333 = vmatpush.bf16.msra.mxu2 %v3372_v39 }
  0x31   :  { %306 = vmatmul.bf16.vlgmr.msra.gmra.mxu0 %v3239_v47 }
  0x32   :  { %558 = vmatpush.bf16.msrb.mxu0 %v3285_v3  ;;  %320 = vmatmul.bf16.vlgmr.msra.gmra.mxu1 %v3239_v47 }
  0x33   :  { %572 = vmatpush.bf16.msrb.mxu1 %v3287_v7  ;;  %334 = vmatmul.bf16.vlgmr.msra.gmra.mxu2 %v3239_v47 }
  0x34   :  { %586 = vmatpush.bf16.msrb.mxu2 %v3289_v8  ;;  %347 = vmatpush.bf16.msra.mxu3 %v3378_v44 }
  0x36   :  { %559 = vmatpush.bf16.msrb.mxu0 %v3292_v12 }
  0x37   :  { %573 = vmatpush.bf16.msrb.mxu1 %v3296_v16  ;;  %348 = vmatmul.bf16.vlgmr.msra.gmra.mxu3 %v3239_v47 }
  0x38   :  { %600 = vmatpush.bf16.msrb.mxu3 %v3300_v21  ;;  %587 = vmatpush.bf16.msrb.mxu2 %v3298_v17 }
  0x3a   :  { %560 = vmatpush.bf16.msrb.mxu0 %v3304_v28 }
  0x3b   :  { %574 = vmatpush.bf16.msrb.mxu1 %v3308_v32 }
  0x3c   :  { %601 = vmatpush.bf16.msrb.mxu3 %v3312_v34  ;;  %588 = vmatpush.bf16.msrb.mxu2 %v3310_v33 }
  0x3e   :  { %561 = vmatpush.bf16.msrb.mxu0 %v3316_v41 }
  0x3f   :  { %575 = vmatpush.bf16.msrb.mxu1 %v3322_v45 }
  0x40   :  { %602 = vmatpush.bf16.msrb.mxu3 %v3318_v42  ;;  %589 = vmatpush.bf16.msrb.mxu2 %v3324_v46 }
  0x42   :  { %562 = vmatpush.bf16.msrb.mxu0 %v3328_v53 }
  0x43   :  { %576 = vmatpush.bf16.msrb.mxu1 %v3334_v57 }
  0x44   :  { %603 = vmatpush.bf16.msrb.mxu3 %v3330_v54  ;;  %590 = vmatpush.bf16.msrb.mxu2 %v3336_v58 }
  0x46   :  { %563 = vmatpush.bf16.msrb.mxu0 %v3340_v1 }
  0x47   :  { %577 = vmatpush.bf16.msrb.mxu1 %v3346_v9 }
  0x48   :  { %604 = vmatpush.bf16.msrb.mxu3 %v3342_v2  ;;  %591 = vmatpush.bf16.msrb.mxu2 %v3348_v10 }
  0x4a   :  { %564 = vmatpush.bf16.msrb.mxu0 %v3352_v19 }
  0x4b   :  { %578 = vmatpush.bf16.msrb.mxu1 %v3358_v24 }
  0x4c   :  { %605 = vmatpush.bf16.msrb.mxu3 %v3354_v20  ;;  %592 = vmatpush.bf16.msrb.mxu2 %v3360_v25 }
  0x4e   :  { %565 = vmatpush.bf16.msrb.mxu0 %v3364_v36 }
  0x4f   :  { %579 = vmatpush.bf16.msrb.mxu1 %v3370_v38 }
  0x50   :  { %606 = vmatpush.bf16.msrb.mxu3 %v3366_v37  ;;  %593 = vmatpush.bf16.msrb.mxu2 %v3372_v39 }
  0x52   :  { %814 = vmatpush.bf16.msra.mxu0 %v3285_v3 }
  0x53   :  { %828 = vmatpush.bf16.msra.mxu1 %v3287_v7 }
  0x54   :  { %842 = vmatpush.bf16.msra.mxu2 %v3289_v8  ;;  %607 = vmatpush.bf16.msrb.mxu3 %v3378_v44 }
  0x56   :  { %815 = vmatpush.bf16.msra.mxu0 %v3292_v12 }
  0x57   :  { %829 = vmatpush.bf16.msra.mxu1 %v3296_v16 }
  0x58   :  { %856 = vmatpush.bf16.msra.mxu3 %v3300_v21  ;;  %843 = vmatpush.bf16.msra.mxu2 %v3298_v17 }
  0x5a   :  { %816 = vmatpush.bf16.msra.mxu0 %v3304_v28 }
  0x5b   :  { %830 = vmatpush.bf16.msra.mxu1 %v3308_v32 }
  0x5c   :  { %857 = vmatpush.bf16.msra.mxu3 %v3312_v34  ;;  %844 = vmatpush.bf16.msra.mxu2 %v3310_v33 }
  0x5e   :  { %817 = vmatpush.bf16.msra.mxu0 %v3316_v41 }
  0x5f   :  { %831 = vmatpush.bf16.msra.mxu1 %v3322_v45 }
  0x60   :  { %858 = vmatpush.bf16.msra.mxu3 %v3318_v42  ;;  %845 = vmatpush.bf16.msra.mxu2 %v3324_v46 }
  0x62   :  { %818 = vmatpush.bf16.msra.mxu0 %v3328_v53 }
  0x63   :  { %832 = vmatpush.bf16.msra.mxu1 %v3334_v57 }
  0x64   :  { %859 = vmatpush.bf16.msra.mxu3 %v3330_v54  ;;  %846 = vmatpush.bf16.msra.mxu2 %v3336_v58 }
  0x66   :  { %819 = vmatpush.bf16.msra.mxu0 %v3340_v1 }
  0x67   :  { %833 = vmatpush.bf16.msra.mxu1 %v3346_v9 }
  0x68   :  { %860 = vmatpush.bf16.msra.mxu3 %v3342_v2  ;;  %847 = vmatpush.bf16.msra.mxu2 %v3348_v10 }
  0x6a   :  { %820 = vmatpush.bf16.msra.mxu0 %v3352_v19 }
  0x6b   :  { %834 = vmatpush.bf16.msra.mxu1 %v3358_v24 }
  0x6c   :  { %861 = vmatpush.bf16.msra.mxu3 %v3354_v20  ;;  %848 = vmatpush.bf16.msra.mxu2 %v3360_v25 }
  0x6e   :  { %821 = vmatpush.bf16.msra.mxu0 %v3364_v36 }
  0x6f   :  { %835 = vmatpush.bf16.msra.mxu1 %v3370_v38 }
  0x70   :  { %862 = vmatpush.bf16.msra.mxu3 %v3366_v37  ;;  %849 = vmatpush.bf16.msra.mxu2 %v3372_v39 }
  0x74   :  { %863 = vmatpush.bf16.msra.mxu3 %v3378_v44 }
  0xae   :  { %v307_v51 = vpop.f32.mrf.mxu0 }
  0xaf   :  { %v354_v52 = vadd.f32 %v307_v51, %v97_v49  ;;  %v321_v55 = vpop.f32.mrf.mxu1 }
  0xb0   :  { %v355_v59 = vadd.f32 %v321_v55, %v98_v50 }
  0xb1   :  { %v2629_v61 = vmul.f32 -1.442695, %v354_v52 }
  0xb2   :  { %v2630_v62 = vmul.f32 -1.442695, %v355_v59 }
  0xb3   :  { %2768 = vpow2.f32 %v2629_v61 }
  0xb4   :  { %2770 = vpow2.f32 %v2630_v62 }
  0xb6   :  { %v335_v5 = vpop.f32.mrf.mxu2  ;;  %v309_v11 = vpop.f32.mrf.mxu0 }
  0xb7   :  { %v356_v6 = vadd.f32 %v335_v5, %v99_v63  ;;  %v358_v13 = vadd.f32 %v309_v11, %v101_v0  ;;  %v323_v14 = vpop.f32.mrf.mxu1 }
  0xb8   :  { %v359_v22 = vadd.f32 %v323_v14, %v102_v4 }
  0xb9   :  { %v2631_v18 = vmul.f32 -1.442695, %v356_v6  ;;  %v2769_v23 = vpop.eup %2768  ;;  %v2632_v26 = vmul.f32 -1.442695, %v358_v13 }
  0xba   :  { %v2771_v29 = vpop.eup %2770  ;;  %v380_v30 = vadd.f32 1.0, %v2769_v23  ;;  %v2633_v31 = vmul.f32 -1.442695, %v359_v22  ;;  %v349_v43 = vpop.f32.mrf.mxu3 }
  0xbb   :  { %2772 = vpow2.f32 %v2631_v18  ;;  %v381_v40 = vadd.f32 1.0, %v2771_v29  ;;  %v357_v47 = vadd.f32 %v349_v43, %v100_v27  ;;  %v104_v18 = vunpack.c.h.bf16 %v3445_v15 }
  0xbc   :  { %2774 = vpow2.f32 %v2632_v26  ;;  %v395_v0 = vand.u32 2147483647, %v380_v30  ;;  %v397_v4 = vand.u32 2147483648, %v380_v30  ;;  %vm391_vm0 = vweird.f32 %v380_v30 }
  0xbd   :  { %2776 = vrcp.f32 %v380_v30  ;;  %v412_v6 = vand.u32 2147483648, %v381_v40  ;;  %v410_v13 = vand.u32 2147483647, %v381_v40  ;;  %vm406_vm1 = vweird.f32 %v381_v40 }
  0xbe   :  { %2778 = vrcp.f32 %v381_v40  ;;  %v337_v48 = vpop.f32.mrf.mxu2  ;;  %vm3458_vm3 = vcmp.eq.f32.partialorder %v395_v0, 8.507059e+37 }
  0xbf   :  { %2780 = vpow2.f32 %v2633_v31  ;;  %v360_v49 = vadd.f32 %v337_v48, %v103_v35  ;;  %v398_v35 = vor.u32 1.1754944e-38, %v397_v4  ;;  %vm3464_vm5 = vcmp.eq.f32.partialorder %v410_v13, 8.507059e+37 }
  0xc0   :  { %2782 = vtanh.f32 %v357_v47  ;;  %v413_v47 = vor.u32 1.1754944e-38, %v412_v6 }
  0xc1   :  { %v2773_v50 = vpop.eup %2772  ;;  %v2634_v51 = vmul.f32 -1.442695, %v360_v49 }
  0xc2   :  { %v2775_v52 = vpop.eup %2774  ;;  %v3448_v55 = vadd.f32 1.0, %v2773_v50  ;;  %v351_v26 = vpop.f32.mrf.mxu3 }
  0xc3   :  { %v2777_v56 = vpop.eup %2776  ;;  %v3450_v59 = vadd.f32 1.0, %v2775_v52  ;;  %2784 = vpow2.f32 %v2634_v51 }
  0xc4   :  { %v2779_v60 = vpop.eup %2778  ;;  %v387_v61 = vmul.f32 %v2777_v56, %v380_v30  ;;  %2786 = vrcp.f32 %v3448_v55  ;;  %vm392_vm2 = vweird.f32 %v2777_v56  ;;  %v427_v52 = vand.u32 2147483648, %v3448_v55 }
  0xc5   :  { %v2781_v62 = vpop.eup %2780  ;;  %v402_v63 = vmul.f32 %v2779_v60, %v381_v40  ;;  %2788 = vrcp.f32 %v3450_v59  ;;  %vm407_vm4 = vweird.f32 %v2779_v60  ;;  %vm393_vm6 = vmor %vm391_vm0, %vm392_vm2  ;;  %v442_v4 = vand.u32 2147483648, %v3450_v59 }
  0xc6   :  { %v388_v5 = vsub.f32 1.0, %v387_v61  ;;  %v3454_v11 = vadd.f32 1.0, %v2781_v62  ;;  %v2783_v22 = vpop.eup %2782  ;;  %v361_v62 = vadd.f32 %v351_v26, %v104_v18  ;;  %vm408_vm7 = vmor %vm406_vm1, %vm407_vm4  ;;  %vm436_vm8 = vweird.f32 %v3450_v59 }
  0xc7   :  { %v403_v14 = vsub.f32 1.0, %v402_v63  ;;  %v440_v40 = vand.u32 2147483647, %v3450_v59  ;;  %vm421_vm14 = vweird.f32 %v3448_v55 }
  0xc8   :  { %2790 = vrcp.f32 %v3454_v11  ;;  %v389_v23 = vmul.f32 %v2777_v56, %v388_v5  ;;  %v455_v15 = vand.u32 2147483647, %v3454_v11  ;;  %vm451_vm1 = vweird.f32 %v3454_v11 }
  0xc9   :  { %v2785_v27 = vpop.eup %2784  ;;  %v404_v29 = vmul.f32 %v2779_v60, %v403_v14  ;;  %vm441_vm15 = vcmp.eq.f32.partialorder %v440_v40, 8.507059e+37 }
  0xca   :  { %v3462_v43 = vpop.eup %2786  ;;  %v390_v48 = vadd.f32 %v2777_v56, %v389_v23  ;;  %v3468_v49 = vadd.f32 1.0, %v2785_v27 }
  0xcb   :  { %v2789_v50 = vpop.eup %2788  ;;  %v417_v51 = vmul.f32 %v3462_v43, %v3448_v55  ;;  %v405_v61 = vadd.f32 %v2779_v60, %v404_v29  ;;  %v457_v29 = vand.u32 2147483648, %v3454_v11  ;;  %vm422_vm11 = vweird.f32 %v3462_v43 }
  0xcc   :  { %v432_v63 = vmul.f32 %v2789_v50, %v3450_v59  ;;  %v394_v0 = vsel %vm393_vm6, %v2777_v56, %v390_v48  ;;  %2792 = vrcp.f32 %v3468_v49  ;;  %vm437_vm9 = vweird.f32 %v2789_v50  ;;  %vm3503_vm0 = vmor %vm421_vm14, %vm422_vm11 }
  0xcd   :  { %v418_v5 = vsub.f32 1.0, %v417_v51  ;;  %v399_v6 = vsel %vm3458_vm3, %v398_v35, %v394_v0  ;;  %v409_v13 = vsel %vm408_vm7, %v2779_v60, %v405_v61  ;;  %2794 = vtanh.f32 %v361_v62  ;;  %vm438_vm12 = vmor %vm436_vm8, %vm437_vm9 }
  0xce   :  { %v2791_v30 = vpop.eup %2790  ;;  %v433_v14 = vsub.f32 1.0, %v432_v63  ;;  %v414_v18 = vsel %vm3464_vm5, %v413_v47, %v409_v13  ;;  %v480_v23 = vmul.f32 %v2783_v22, %v399_v6  ;;  %v443_v60 = vor.u32 1.1754944e-38, %v442_v4 }
  0xcf   :  { %v419_v56 = vmul.f32 %v3462_v43, %v418_v5  ;;  %v447_v26 = vmul.f32 %v2791_v30, %v3454_v11  ;;  %v478_v27 = vmul.f32 0.0, %v414_v18  ;;  %vm452_vm13 = vweird.f32 %v2791_v30 }
  0xd0   :  { %v434_v31 = vmul.f32 %v2789_v50, %v433_v14  ;;  %v3240_v63 = vmov -inf   ;;  %v425_v4 = vand.u32 2147483647, %v3448_v55  ;;  %v458_v18 = vor.u32 1.1754944e-38, %v457_v29  ;;  %vm453_vm2 = vmor %vm451_vm1, %vm452_vm13 }
  0xd1   :  { %v448_v35 = vsub.f32 1.0, %v447_v26  ;;  %v3488_v48 = vadd.f32 %v480_v23, %v478_v27  ;;  %v420_v51 = vadd.f32 %v3462_v43, %v419_v56  ;;  %77 = vst.msk [vmem:[#allocation4] sm:$0xff] %vm76_vm10, %v3240_v63  ;;  %vm456_vm3 = vcmp.eq.f32.partialorder %v455_v15, 8.507059e+37 }
  0xd2   :  { %v2793_v22 = vpop.eup %2792  ;;  %v435_v47 = vadd.f32 %v2789_v50, %v434_v31  ;;  %78 = vst.msk [vmem:[#allocation4 + $0x8] sm:$0xff] %vm76_vm10, %v3240_v63  ;;  %vm426_vm4 = vcmp.eq.f32.partialorder %v425_v4, 8.507059e+37  ;;  %vm466_vm6 = vweird.f32 %v3468_v49  ;;  %v3242_v6 = vmov 0  }
  0xd3   :  { %v449_v61 = vmul.f32 %v2791_v30, %v448_v35  ;;  %2796 = vtanh.f32 %v3488_v48  ;;  %v462_v62 = vmul.f32 %v2793_v22, %v3468_v49  ;;  %v2795_v5 = vpop.eup %2794  ;;  %v424_v55 = vsel %vm3503_vm0, %v3462_v43, %v420_v51  ;;  %2764 = vset.pattern.permute.xlu2 %v3242_v6  ;;  %2763 = vset.pattern.permute.xlu1 %v3242_v6 }
  0xd4   :  { %v439_v0 = vsel %vm438_vm12, %v2789_v50, %v435_v47  ;;  %v428_v50 = vor.u32 1.1754944e-38, %v427_v52  ;;  %vm467_vm5 = vweird.f32 %v2793_v22  ;;  %v472_v43 = vand.u32 2147483648, %v3468_v49  ;;  %2765 = vset.pattern.permute.xlu0 %v3242_v6  ;;  %v547_v6 = vld [vmem:[#allocation7 + $0x30] sm:$0xff] }
  0xd5   :  { %v463_v59 = vsub.f32 1.0, %v462_v62  ;;  %v444_v13 = vsel %vm441_vm15, %v443_v60, %v439_v0  ;;  %v450_v14 = vadd.f32 %v2791_v30, %v449_v61  ;;  %v470_v52 = vand.u32 2147483647, %v3468_v49  ;;  %vm468_vm7 = vmor %vm466_vm6, %vm467_vm5 }
  0xd6   :  { %v481_v40 = vmul.f32 %v2795_v5, %v444_v13  ;;  %v429_v11 = vsel %vm426_vm4, %v428_v50, %v424_v55  ;;  %v473_v47 = vor.u32 1.1754944e-38, %v472_v43  ;;  %v3241_v5 = vmov 0.0  }
  0xd7   :  { %v454_v23 = vsel %vm453_vm2, %v2791_v30, %v450_v14  ;;  %v464_v56 = vmul.f32 %v2793_v22, %v463_v59  ;;  %v3524_v30 = vld [vmem:[%s4355_s2] ss:$0 sm:$0xff]  ;;  %vm471_vm8 = vcmp.eq.f32.partialorder %v470_v52, 8.507059e+37  ;;  %80 = vst.msk [vmem:[#allocation5 + $0x8] sm:$0xff] %vm76_vm10, %v3241_v5 }
  0xd8   :  { %v459_v26 = vsel %vm456_vm3, %v458_v18, %v454_v23  ;;  %79 = vst.msk [vmem:[#allocation5] sm:$0xff] %vm76_vm10, %v3241_v5  ;;  %v87_v59 = vld [vmem:[#allocation4] sm:$0xff] }
  0xd9   :  { %v2797_v27 = vpop.eup %2796  ;;  %v479_v31 = vmul.f32 0.0, %v459_v26  ;;  %v465_v29 = vadd.f32 %v2793_v22, %v464_v56  ;;  %v88_v56 = vld [vmem:[#allocation4 + $0x8] sm:$0xff] }
  0xda   :  { %v3512_v35 = vmul.f32 %v2797_v27, %v429_v11 }
  0xdb   :  { %v3514_v60 = vadd.f32 %v481_v40, %v479_v31  ;;  %v469_v15 = vsel %vm468_vm7, %v2793_v22, %v465_v29  ;;  %v545_v40 = vld [vmem:[#allocation7 + $0x20] sm:$0xff] }
  0xdc   :  { %2798 = vtanh.f32 %v3512_v35  ;;  %v474_v63 = vsel %vm471_vm8, %v473_v47, %v469_v15  ;;  %v549_v27 = vunpack.c.l.bf16 %v545_v40  ;;  %v550_v31 = vunpack.c.h.bf16 %v545_v40 }
  0xdd   :  { %2800 = vtanh.f32 %v3514_v60 }
  0xdf   :  { %v89_v29 = vld [vmem:[#allocation5] sm:$0xff] }
  0xe2   :  { %v2799_v51 = vpop.eup %2798 }
  0xe3   :  { %v2801_v61 = vpop.eup %2800  ;;  %v494_v62 = vmul.f32 %v2799_v51, %v3524_v30 }
  0xe4   :  { %v3527_v0 = vmul.f32 %v2801_v61, %v474_v63 }
  0xe5   :  { %496 = vadd.xlane.f32.xlu0 %v494_v62 }
  0xe6   :  { %4392 = vst [vmem:[#allocation19_spill] sm:$0xff] %v3527_v0  ;;  %v557_v49 = vpack.c.bf16 %v3527_v0, %v3512_v35  ;;  %2802 = vtanh.f32 %v3527_v0 }
  0xe8   :  { %566 = vmatmul.bf16.vlgmr.msrb.gmra.mxu0 %v557_v49  ;;  %580 = vmatmul.bf16.vlgmr.msrb.gmra.mxu1 %v557_v49 }
  0xe9   :  { %594 = vmatmul.bf16.vlgmr.msrb.gmra.mxu2 %v557_v49  ;;  %608 = vmatmul.bf16.vlgmr.msrb.gmra.mxu3 %v557_v49  ;;  %v546_v49 = vld [vmem:[#allocation7 + $0x28] sm:$0xff] }
  0xea   :  { %1070 = vmatpush.bf16.msrb.mxu0 %v3285_v3  ;;  %1084 = vmatpush.bf16.msrb.mxu1 %v3287_v7 }
  0xeb   :  { %1098 = vmatpush.bf16.msrb.mxu2 %v3289_v8  ;;  %1112 = vmatpush.bf16.msrb.mxu3 %v3300_v21 }
  0xec   :  { %v2803_v22 = vpop.eup %2802 }
  0xed   :  { %v495_v4 = vmul.f32 %v2803_v22, %v3524_v30 }
  0xee   :  { %1071 = vmatpush.bf16.msrb.mxu0 %v3292_v12  ;;  %1085 = vmatpush.bf16.msrb.mxu1 %v3296_v16 }
  0xef   :  { %498 = vadd.xlane.f32.xlu0 %v495_v4  ;;  %1099 = vmatpush.bf16.msrb.mxu2 %v3298_v17 }
  0xf0   :  { %1113 = vmatpush.bf16.msrb.mxu3 %v3312_v34 }
  0xf2   :  { %1072 = vmatpush.bf16.msrb.mxu0 %v3304_v28  ;;  %1086 = vmatpush.bf16.msrb.mxu1 %v3308_v32 }
  0xf3   :  { %1100 = vmatpush.bf16.msrb.mxu2 %v3310_v33 }
  0xf4   :  { %1114 = vmatpush.bf16.msrb.mxu3 %v3318_v42 }
  0xf6   :  { %1073 = vmatpush.bf16.msrb.mxu0 %v3316_v41  ;;  %1087 = vmatpush.bf16.msrb.mxu1 %v3322_v45 }
  0xf7   :  { %1101 = vmatpush.bf16.msrb.mxu2 %v3324_v46 }
  0xf8   :  { %1115 = vmatpush.bf16.msrb.mxu3 %v3330_v54 }
  0xfa   :  { %1074 = vmatpush.bf16.msrb.mxu0 %v3328_v53  ;;  %1088 = vmatpush.bf16.msrb.mxu1 %v3334_v57 }
  0xfb   :  { %1102 = vmatpush.bf16.msrb.mxu2 %v3336_v58 }
  0xfc   :  { %1116 = vmatpush.bf16.msrb.mxu3 %v3342_v2 }
  0xfe   :  { %1075 = vmatpush.bf16.msrb.mxu0 %v3340_v1  ;;  %1089 = vmatpush.bf16.msrb.mxu1 %v3346_v9 }
  0xff   :  { %1103 = vmatpush.bf16.msrb.mxu2 %v3348_v10 }
 0x100   :  { %1117 = vmatpush.bf16.msrb.mxu3 %v3354_v20 }
 0x102   :  { %1076 = vmatpush.bf16.msrb.mxu0 %v3352_v19  ;;  %1090 = vmatpush.bf16.msrb.mxu1 %v3358_v24 }
 0x103   :  { %1104 = vmatpush.bf16.msrb.mxu2 %v3360_v25 }
 0x104   :  { %1118 = vmatpush.bf16.msrb.mxu3 %v3366_v37 }
 0x106   :  { %1077 = vmatpush.bf16.msrb.mxu0 %v3364_v36  ;;  %1091 = vmatpush.bf16.msrb.mxu1 %v3370_v38 }
 0x107   :  { %1105 = vmatpush.bf16.msrb.mxu2 %v3372_v39 }
 0x108   :  { %1119 = vmatpush.bf16.msrb.mxu3 %v3378_v44 }
 0x158   :  { %v497_v13 = vpop.xlane.xlu0 %496 }
 0x159   :  { %v3567_v14 = vmax.f32 %v87_v59, %v497_v13 }
 0x15b   :  { %4393 = vst [vmem:[#allocation20_spill] sm:$0xff] %v3567_v14  ;;  %v502_v18 = vsub.f32 %v87_v59, %v3567_v14  ;;  %v508_v55 = vsub.f32 %v497_v13, %v3567_v14 }
 0x15d   :  { %v504_v50 = vmul.f32 1.442695, %v502_v18  ;;  %v510_v23 = vmul.f32 1.442695, %v508_v55  ;;  %v551_v18 = vunpack.c.l.bf16 %v546_v49 }
 0x15f   :  { %2804 = vpow2.f32 %v510_v23  ;;  %v554_v23 = vunpack.c.h.bf16 %v547_v6 }
 0x160   :  { %2806 = vpow2.f32 %v504_v50  ;;  %v553_v50 = vunpack.c.l.bf16 %v547_v6 }
 0x162   :  { %v499_v26 = vpop.xlane.xlu0 %498 }
 0x163   :  { %v3571_v11 = vmax.f32 %v88_v56, %v499_v26 }
 0x165   :  { %4394 = vst [vmem:[#allocation21_spill] sm:$0xff] %v3571_v11  ;;  %v2805_v43 = vpop.eup %2804  ;;  %v503_v52 = vsub.f32 %v88_v56, %v3571_v11  ;;  %v509_v15 = vsub.f32 %v499_v26, %v3571_v11  ;;  %v567_v47 = vpop.f32.mrf.mxu0  ;;  %v90_v56 = vld [vmem:[#allocation5 + $0x8] sm:$0xff] }
 0x166   :  { %v581_v51 = vpop.f32.mrf.mxu1  ;;  %v2807_v61 = vpop.eup %2806  ;;  %v614_v62 = vadd.f32 %v567_v47, %v549_v27  ;;  %532 = vperm.xlu2 %2764, %v2805_v43  }
 0x167   :  { %v615_v63 = vadd.f32 %v581_v51, %v550_v31  ;;  %v506_v22 = vmul.f32 1.442695, %v503_v52  ;;  %v512_v4 = vmul.f32 1.442695, %v509_v15  ;;  %520 = vperm.xlu1 %2763, %v2807_v61   ;;  %v514_v5 = vmul.f32 %v2807_v61, %v89_v29  ;;  %v548_v51 = vld [vmem:[#allocation7 + $0x38] sm:$0xff] }
 0x168   :  { %v2635_v59 = vmul.f32 -1.442695, %v614_v62 }
 0x169   :  { %v2636_v13 = vmul.f32 -1.442695, %v615_v63  ;;  %2808 = vpow2.f32 %v506_v22  ;;  %v3575_v55 = vadd.f32 %v2805_v43, %v514_v5 }
 0x16a   :  { %2810 = vpow2.f32 %v512_v4 }
 0x16b   :  { %4395 = vst [vmem:[#allocation22_spill] sm:$0xff] %v3575_v55  ;;  %2812 = vpow2.f32 %v2635_v59 }
 0x16c   :  { %2814 = vpow2.f32 %v2636_v13  ;;  %v595_v40 = vpop.f32.mrf.mxu2  ;;  %v609_v4 = vpop.f32.mrf.mxu3  ;;  %v555_v13 = vunpack.c.l.bf16 %v548_v51 }
 0x16d   :  { %v616_v26 = vadd.f32 %v595_v40, %v551_v18  ;;  %v569_v27 = vpop.f32.mrf.mxu0 }
 0x16e   :  { %v583_v31 = vpop.f32.mrf.mxu1  ;;  %v618_v52 = vadd.f32 %v569_v27, %v553_v50 }
 0x16f   :  { %v619_v15 = vadd.f32 %v583_v31, %v554_v23  ;;  %v2809_v29 = vpop.eup %2808  ;;  %v2637_v47 = vmul.f32 -1.442695, %v616_v26  ;;  %v552_v23 = vunpack.c.h.bf16 %v546_v49 }
 0x170   :  { %v2811_v61 = vpop.eup %2810  ;;  %v515_v62 = vmul.f32 %v2809_v29, %v90_v56  ;;  %v2638_v63 = vmul.f32 -1.442695, %v618_v52  ;;  %525 = vperm.xlu1 %2763, %v2809_v29  }
 0x171   :  { %v2639_v43 = vmul.f32 -1.442695, %v619_v15  ;;  %v2813_v22 = vpop.eup %2812  ;;  %2816 = vpow2.f32 %v2637_v47  ;;  %537 = vperm.xlu2 %2764, %v2811_v61   ;;  %v617_v47 = vadd.f32 %v609_v4, %v552_v23 }
 0x172   :  { %v2815_v5 = vpop.eup %2814  ;;  %v3577_v6 = vadd.f32 %v2811_v61, %v515_v62  ;;  %v640_v59 = vadd.f32 1.0, %v2813_v22  ;;  %2818 = vpow2.f32 %v2638_v63  ;;  %v556_v61 = vunpack.c.h.bf16 %v548_v51 }
 0x173   :  { %v641_v18 = vadd.f32 1.0, %v2815_v5  ;;  %2820 = vpow2.f32 %v2639_v43 }
 0x174   :  { %4396 = vst [vmem:[#allocation23_spill] sm:$0xff] %v3577_v6  ;;  %2822 = vrcp.f32 %v640_v59  ;;  %v597_v50 = vpop.f32.mrf.mxu2  ;;  %v611_v49 = vpop.f32.mrf.mxu3  ;;  %v655_v5 = vand.u32 2147483647, %v640_v59  ;;  %vm651_vm9 = vweird.f32 %v640_v59 }
 0x175   :  { %2824 = vrcp.f32 %v641_v18  ;;  %v620_v40 = vadd.f32 %v597_v50, %v555_v13  ;;  %v672_v50 = vand.u32 2147483648, %v641_v18  ;;  %v621_v4 = vadd.f32 %v611_v49, %v556_v61 }
 0x176   :  { %vm666_vm12 = vweird.f32 %v641_v18  ;;  %vm3590_vm14 = vcmp.eq.f32.partialorder %v655_v5, 8.507059e+37 }
 0x177   :  { %v2817_v56 = vpop.eup %2816  ;;  %v2640_v31 = vmul.f32 -1.442695, %v620_v40  ;;  %v657_v40 = vand.u32 2147483648, %v640_v59 }
 0x178   :  { %v2819_v26 = vpop.eup %2818  ;;  %v3579_v27 = vadd.f32 1.0, %v2817_v56 }
 0x179   :  { %v2821_v52 = vpop.eup %2820  ;;  %v3581_v15 = vadd.f32 1.0, %v2819_v26  ;;  %v670_v26 = vand.u32 2147483647, %v641_v18 }
 0x17a   :  { %v2823_v29 = vpop.eup %2822  ;;  %2826 = vrcp.f32 %v3579_v27  ;;  %v3585_v43 = vadd.f32 1.0, %v2821_v52  ;;  %vm681_vm2 = vweird.f32 %v3579_v27 }
 0x17b   :  { %v2825_v62 = vpop.eup %2824  ;;  %v647_v63 = vmul.f32 %v2823_v29, %v640_v59  ;;  %2828 = vrcp.f32 %v3581_v15  ;;  %vm652_vm11 = vweird.f32 %v2823_v29  ;;  %vm3596_vm0 = vcmp.eq.f32.partialorder %v670_v26, 8.507059e+37 }
 0x17c   :  { %v662_v22 = vmul.f32 %v2825_v62, %v641_v18  ;;  %2830 = vpow2.f32 %v2640_v31  ;;  %vm667_vm13 = vweird.f32 %v2825_v62  ;;  %vm653_vm15 = vmor %vm651_vm9, %vm652_vm11  ;;  %v702_v0 = vand.u32 2147483648, %v3581_v15 }
 0x17d   :  { %v648_v13 = vsub.f32 1.0, %v647_v63  ;;  %2832 = vrcp.f32 %v3585_v43  ;;  %v673_v63 = vor.u32 1.1754944e-38, %v672_v50  ;;  %vm668_vm1 = vmor %vm666_vm12, %vm667_vm13  ;;  %vm696_vm6 = vweird.f32 %v3581_v15 }
 0x17e   :  { %v663_v56 = vsub.f32 1.0, %v662_v22  ;;  %2834 = vtanh.f32 %v617_v47  ;;  %v658_v47 = vor.u32 1.1754944e-38, %v657_v40  ;;  %vm711_vm7 = vweird.f32 %v3585_v43 }
 0x17f   :  { %v649_v51 = vmul.f32 %v2823_v29, %v648_v13  ;;  %2836 = vtanh.f32 %v621_v4  ;;  %v687_v4 = vand.u32 2147483648, %v3579_v27  ;;  %v703_v49 = vor.u32 1.1754944e-38, %v702_v0 }
 0x180   :  { %v3588_v23 = vpop.eup %2826  ;;  %v664_v52 = vmul.f32 %v2825_v62, %v663_v56 }
 0x181   :  { %v2829_v31 = vpop.eup %2828  ;;  %v677_v22 = vmul.f32 %v3588_v23, %v3579_v27  ;;  %v650_v6 = vadd.f32 %v2823_v29, %v649_v51  ;;  %vm682_vm5 = vweird.f32 %v3588_v23 }
 0x182   :  { %v2831_v61 = vpop.eup %2830  ;;  %v665_v59 = vadd.f32 %v2825_v62, %v664_v52  ;;  %v692_v13 = vmul.f32 %v2829_v31, %v3581_v15  ;;  %vm697_vm3 = vweird.f32 %v2829_v31  ;;  %vm683_vm12 = vmor %vm681_vm2, %vm682_vm5 }
 0x183   :  { %v2833_v5 = vpop.eup %2832  ;;  %v678_v56 = vsub.f32 1.0, %v677_v22  ;;  %v654_v50 = vsel %vm653_vm15, %v2823_v29, %v650_v6  ;;  %v3603_v55 = vadd.f32 1.0, %v2831_v61  ;;  %v700_v61 = vand.u32 2147483647, %v3581_v15  ;;  %vm698_vm8 = vmor %vm696_vm6, %vm697_vm3 }
 0x184   :  { %v2835_v40 = vpop.eup %2834  ;;  %v659_v51 = vsel %vm3590_vm14, %v658_v47, %v654_v50  ;;  %v669_v26 = vsel %vm668_vm1, %v2825_v62, %v665_v59  ;;  %v693_v52 = vsub.f32 1.0, %v692_v13  ;;  %v707_v11 = vmul.f32 %v2833_v5, %v3585_v43 }
 0x185   :  { %v679_v14 = vmul.f32 %v3588_v23, %v678_v56  ;;  %v674_v18 = vsel %vm3596_vm0, %v673_v63, %v669_v26  ;;  %v740_v22 = vmul.f32 %v2835_v40, %v659_v51  ;;  %2838 = vrcp.f32 %v3603_v55  ;;  %v2837_v59 = vpop.eup %2836 }
 0x186   :  { %v738_v6 = vmul.f32 %v674_v18, %v3488_v48  ;;  %v708_v29 = vsub.f32 1.0, %v707_v11  ;;  %v717_v62 = vand.u32 2147483648, %v3585_v43  ;;  %v694_v47 = vmul.f32 %v2829_v31, %v693_v52 }
 0x187   :  { %vm712_vm4 = vweird.f32 %v2833_v5  ;;  %v715_v63 = vand.u32 2147483647, %v3585_v43  ;;  %v680_v48 = vadd.f32 %v3588_v23, %v679_v14  ;;  %v685_v40 = vand.u32 2147483647, %v3579_v27 }
 0x188   :  { %v3617_v13 = vadd.f32 %v740_v22, %v738_v6  ;;  %v709_v56 = vmul.f32 %v2833_v5, %v708_v29  ;;  %v695_v11 = vadd.f32 %v2829_v31, %v694_v47  ;;  %vm713_vm9 = vmor %vm711_vm7, %vm712_vm4  ;;  %v718_v51 = vor.u32 1.1754944e-38, %v717_v62 }
 0x189   :  { %vm701_vm11 = vcmp.eq.f32.partialorder %v700_v61, 8.507059e+37  ;;  %vm716_vm13 = vcmp.eq.f32.partialorder %v715_v63, 8.507059e+37  ;;  %v684_v6 = vsel %vm683_vm12, %v3588_v23, %v680_v48  ;;  %v688_v29 = vor.u32 1.1754944e-38, %v687_v4 }
 0x18a   :  { %2840 = vtanh.f32 %v3617_v13  ;;  %v710_v50 = vadd.f32 %v2833_v5, %v709_v56  ;;  %v699_v26 = vsel %vm698_vm8, %v2829_v31, %v695_v11  ;;  %vm686_vm14 = vcmp.eq.f32.partialorder %v685_v40, 8.507059e+37 }
 0x18b   :  { %v2839_v52 = vpop.eup %2838  ;;  %v704_v14 = vsel %vm701_vm11, %v703_v49, %v699_v26  ;;  %v689_v61 = vsel %vm686_vm14, %v688_v29, %v684_v6  ;;  %vm726_vm0 = vweird.f32 %v3603_v55  ;;  %v4405_v6 = vld [vmem:[#allocation20_spill] sm:$0xff] }
 0x18c   :  { %v714_v18 = vsel %vm713_vm9, %v2833_v5, %v710_v50  ;;  %v722_v15 = vmul.f32 %v2839_v52, %v3603_v55  ;;  %v741_v43 = vmul.f32 %v2837_v59, %v704_v14  ;;  %vm727_vm15 = vweird.f32 %v2839_v52 }
 0x18d   :  { %v719_v22 = vsel %vm716_vm13, %v718_v51, %v714_v18  ;;  %v732_v5 = vand.u32 2147483648, %v3603_v55  ;;  %vm728_vm1 = vmor %vm726_vm0, %vm727_vm15 }
 0x18e   :  { %v739_v0 = vmul.f32 %v719_v22, %v3514_v60  ;;  %v723_v47 = vsub.f32 1.0, %v722_v15  ;;  %v730_v60 = vand.u32 2147483647, %v3603_v55 }
 0x18f   :  { %v733_v59 = vor.u32 1.1754944e-38, %v732_v5 }
 0x190   :  { %v2841_v31 = vpop.eup %2840  ;;  %v3631_v62 = vadd.f32 %v741_v43, %v739_v0  ;;  %v724_v27 = vmul.f32 %v2839_v52, %v723_v47  ;;  %vm731_vm2 = vcmp.eq.f32.partialorder %v730_v60, 8.507059e+37  ;;  %v4407_v60 = vld [vmem:[#allocation21_spill] sm:$0xff] }
 0x191   :  { %v3633_v56 = vmul.f32 %v2841_v31, %v689_v61 }
 0x192   :  { %2842 = vtanh.f32 %v3631_v62  ;;  %v725_v23 = vadd.f32 %v2839_v52, %v724_v27  ;;  %v801_v27 = vld [vmem:[#allocation7 + $0x40] sm:$0xff] }
 0x193   :  { %4401 = vst [vmem:[#allocation24_spill] sm:$0xff] %v3633_v56  ;;  %2844 = vtanh.f32 %v3633_v56 }
 0x194   :  { %v729_v4 = vsel %vm728_vm1, %v2839_v52, %v725_v23  ;;  %v806_v23 = vunpack.c.h.bf16 %v801_v27 }
 0x195   :  { %v734_v48 = vsel %vm731_vm2, %v733_v59, %v729_v4 }
 0x198   :  { %v2843_v63 = vpop.eup %2842 }
 0x199   :  { %v2845_v11 = vpop.eup %2844  ;;  %v3640_v49 = vmul.f32 %v2843_v63, %v734_v48 }
 0x19a   :  { %v750_v50 = vmul.f32 %v2845_v11, %v3524_v30 }
 0x19b   :  { %4402 = vst [vmem:[#allocation25_spill] sm:$0xff] %v3640_v49  ;;  %v813_v40 = vpack.c.bf16 %v3640_v49, %v3633_v56  ;;  %2846 = vtanh.f32 %v3640_v49 }
 0x19c   :  { %752 = vadd.xlane.f32.xlu0 %v750_v50 }
 0x19d   :  { %822 = vmatmul.bf16.vlgmr.msra.gmra.mxu0 %v813_v40  ;;  %836 = vmatmul.bf16.vlgmr.msra.gmra.mxu1 %v813_v40 }
 0x19e   :  { %850 = vmatmul.bf16.vlgmr.msra.gmra.mxu2 %v813_v40  ;;  %864 = vmatmul.bf16.vlgmr.msra.gmra.mxu3 %v813_v40 }
 0x19f   :  { %1326 = vmatpush.bf16.msra.mxu0 %v3285_v3  ;;  %1340 = vmatpush.bf16.msra.mxu1 %v3287_v7 }
 0x1a0   :  { %1354 = vmatpush.bf16.msra.mxu2 %v3289_v8  ;;  %1368 = vmatpush.bf16.msra.mxu3 %v3300_v21 }
 0x1a1   :  { %v2847_v55 = vpop.eup %2846 }
 0x1a2   :  { %v751_v51 = vmul.f32 %v2847_v55, %v3524_v30  ;;  %v802_v55 = vld [vmem:[#allocation7 + $0x48] sm:$0xff] }
 0x1a3   :  { %1327 = vmatpush.bf16.msra.mxu0 %v3292_v12  ;;  %1341 = vmatpush.bf16.msra.mxu1 %v3296_v16 }
 0x1a4   :  { %754 = vadd.xlane.f32.xlu1 %v751_v51  ;;  %1355 = vmatpush.bf16.msra.mxu2 %v3298_v17 }
 0x1a5   :  { %1369 = vmatpush.bf16.msra.mxu3 %v3312_v34 }
 0x1a7   :  { %1328 = vmatpush.bf16.msra.mxu0 %v3304_v28  ;;  %1342 = vmatpush.bf16.msra.mxu1 %v3308_v32 }
 0x1a8   :  { %1356 = vmatpush.bf16.msra.mxu2 %v3310_v33 }
 0x1a9   :  { %1370 = vmatpush.bf16.msra.mxu3 %v3318_v42 }
 0x1ab   :  { %1329 = vmatpush.bf16.msra.mxu0 %v3316_v41  ;;  %1343 = vmatpush.bf16.msra.mxu1 %v3322_v45 }
 0x1ac   :  { %1357 = vmatpush.bf16.msra.mxu2 %v3324_v46 }
 0x1ad   :  { %1371 = vmatpush.bf16.msra.mxu3 %v3330_v54 }
 0x1af   :  { %1330 = vmatpush.bf16.msra.mxu0 %v3328_v53  ;;  %1344 = vmatpush.bf16.msra.mxu1 %v3334_v57 }
 0x1b0   :  { %1358 = vmatpush.bf16.msra.mxu2 %v3336_v58 }
 0x1b1   :  { %1372 = vmatpush.bf16.msra.mxu3 %v3342_v2 }
 0x1b3   :  { %1331 = vmatpush.bf16.msra.mxu0 %v3340_v1  ;;  %1345 = vmatpush.bf16.msra.mxu1 %v3346_v9 }
 0x1b4   :  { %1359 = vmatpush.bf16.msra.mxu2 %v3348_v10 }
 0x1b5   :  { %1373 = vmatpush.bf16.msra.mxu3 %v3354_v20 }
 0x1b7   :  { %1332 = vmatpush.bf16.msra.mxu0 %v3352_v19  ;;  %1346 = vmatpush.bf16.msra.mxu1 %v3358_v24 }
 0x1b8   :  { %1360 = vmatpush.bf16.msra.mxu2 %v3360_v25 }
 0x1b9   :  { %1374 = vmatpush.bf16.msra.mxu3 %v3366_v37 }
 0x1bb   :  { %1333 = vmatpush.bf16.msra.mxu0 %v3364_v36  ;;  %1347 = vmatpush.bf16.msra.mxu1 %v3370_v38 }
 0x1bc   :  { %1361 = vmatpush.bf16.msra.mxu2 %v3372_v39 }
 0x1bd   :  { %1375 = vmatpush.bf16.msra.mxu3 %v3378_v44 }
 0x1c0   :  { %v533_v26 = vpop.permute.xlu2 %532 }
 0x1c1   :  { %v540_v14 = vmul.f32 %v533_v26, %v3512_v35  ;;  %v805_v35 = vunpack.c.l.bf16 %v801_v27 }
 0x1d9   :  { %v521_v52 = vpop.permute.xlu1 %520 }
 0x1da   :  { %v528_v18 = vmul.f32 0.0, %v521_v52 }
 0x1dc   :  { %v3680_v15 = vadd.f32 %v540_v14, %v528_v18  ;;  %v803_v14 = vld [vmem:[#allocation7 + $0x50] sm:$0xff]  ;;  %v4409_v18 = vld [vmem:[#allocation22_spill] sm:$0xff] }
 0x1dd   :  { %v809_v27 = vunpack.c.l.bf16 %v803_v14 }
 0x1de   :  { %4403 = vst [vmem:[#allocation26_spill] sm:$0xff] %v3680_v15 }
 0x1e2   :  { %v3682_v22 = vpop.permute.xlu1 %525 }
 0x1e3   :  { %4404 = vst [vmem:[#allocation27_spill] sm:$0xff] %v3682_v22 }
 0x20f   :  { %v753_v43 = vpop.xlane.xlu0 %752 }
 0x210   :  { %v3685_v29 = vmax.f32 %v4405_v6, %v753_v43 }
 0x212   :  { %4406 = vst [vmem:[#allocation20_spill] sm:$0xff] %v3685_v29  ;;  %v758_v0 = vsub.f32 %v4405_v6, %v3685_v29  ;;  %v764_v47 = vsub.f32 %v753_v43, %v3685_v29 }
 0x214   :  { %v760_v31 = vmul.f32 1.442695, %v758_v0  ;;  %v766_v61 = vmul.f32 1.442695, %v764_v47 }
 0x216   :  { %2848 = vpow2.f32 %v760_v31  ;;  %v807_v31 = vunpack.c.l.bf16 %v802_v55 }
 0x217   :  { %v755_v5 = vpop.xlane.xlu1 %754  ;;  %2850 = vpow2.f32 %v766_v61 }
 0x218   :  { %v3691_v4 = vmax.f32 %v4407_v60, %v755_v5 }
 0x21a   :  { %4408 = vst [vmem:[#allocation21_spill] sm:$0xff] %v3691_v4  ;;  %v759_v59 = vsub.f32 %v4407_v60, %v3691_v4  ;;  %v765_v63 = vsub.f32 %v755_v5, %v3691_v4  ;;  %v823_v48 = vpop.f32.mrf.mxu0  ;;  %v837_v11 = vpop.f32.mrf.mxu1  ;;  %v810_v5 = vunpack.c.h.bf16 %v803_v14 }
 0x21b   :  { %v870_v50 = vadd.f32 %v823_v48, %v805_v35  ;;  %v871_v40 = vadd.f32 %v837_v11, %v806_v23 }
 0x21c   :  { %v2849_v51 = vpop.eup %2848  ;;  %v762_v26 = vmul.f32 1.442695, %v759_v59  ;;  %v768_v52 = vmul.f32 1.442695, %v765_v63 }
 0x21d   :  { %v770_v43 = vmul.f32 %v2849_v51, %v4409_v18  ;;  %v2641_v6 = vmul.f32 -1.442695, %v870_v50  ;;  %v2642_v0 = vmul.f32 -1.442695, %v871_v40  ;;  %776 = vperm.xlu2 %2764, %v2849_v51   ;;  %v2851_v47 = vpop.eup %2850  ;;  %v804_v40 = vld [vmem:[#allocation7 + $0x58] sm:$0xff]  ;;  %v4411_v18 = vld [vmem:[#allocation23_spill] sm:$0xff] }
 0x21e   :  { %2852 = vpow2.f32 %v762_v26 }
 0x21f   :  { %v3697_v61 = vadd.f32 %v2851_v47, %v770_v43  ;;  %2854 = vpow2.f32 %v768_v52 }
 0x220   :  { %2856 = vpow2.f32 %v2641_v6 }
 0x221   :  { %4410 = vst [vmem:[#allocation22_spill] sm:$0xff] %v3697_v61  ;;  %2858 = vpow2.f32 %v2642_v0  ;;  %v851_v35 = vpop.f32.mrf.mxu2  ;;  %v865_v14 = vpop.f32.mrf.mxu3 }
 0x222   :  { %v872_v23 = vadd.f32 %v851_v35, %v807_v31  ;;  %v825_v60 = vpop.f32.mrf.mxu0  ;;  %v839_v59 = vpop.f32.mrf.mxu1 }
 0x223   :  { %v874_v63 = vadd.f32 %v825_v60, %v809_v27  ;;  %v875_v48 = vadd.f32 %v839_v59, %v810_v5  ;;  %v811_v27 = vunpack.c.l.bf16 %v804_v40 }
 0x224   :  { %v2853_v11 = vpop.eup %2852  ;;  %v2643_v50 = vmul.f32 -1.442695, %v872_v23  ;;  %v808_v23 = vunpack.c.h.bf16 %v802_v55 }
 0x225   :  { %v2855_v51 = vpop.eup %2854  ;;  %v771_v26 = vmul.f32 %v2853_v11, %v4411_v18  ;;  %v2644_v49 = vmul.f32 -1.442695, %v874_v63  ;;  %v2645_v43 = vmul.f32 -1.442695, %v875_v48  ;;  %788 = vperm.xlu2 %2764, %v2851_v47   ;;  %781 = vperm.xlu0 %2765, %v2853_v11  }
 0x226   :  { %v2857_v52 = vpop.eup %2856  ;;  %2860 = vpow2.f32 %v2643_v50 }
 0x227   :  { %v2859_v6 = vpop.eup %2858  ;;  %v3700_v0 = vadd.f32 %v2855_v51, %v771_v26  ;;  %v896_v31 = vadd.f32 1.0, %v2857_v52  ;;  %2862 = vpow2.f32 %v2644_v49  ;;  %v873_v49 = vadd.f32 %v865_v14, %v808_v23 }
 0x228   :  { %v897_v5 = vadd.f32 1.0, %v2859_v6  ;;  %2864 = vpow2.f32 %v2645_v43  ;;  %v812_v43 = vunpack.c.h.bf16 %v804_v40 }
 0x229   :  { %4412 = vst [vmem:[#allocation23_spill] sm:$0xff] %v3700_v0  ;;  %2866 = vrcp.f32 %v896_v31  ;;  %v853_v35 = vpop.f32.mrf.mxu2  ;;  %v867_v55 = vpop.f32.mrf.mxu3  ;;  %vm907_vm4 = vweird.f32 %v896_v31 }
 0x22a   :  { %2868 = vrcp.f32 %v897_v5  ;;  %v876_v60 = vadd.f32 %v853_v35, %v811_v27  ;;  %v911_v35 = vand.u32 2147483647, %v896_v31  ;;  %v877_v14 = vadd.f32 %v867_v55, %v812_v43 }
 0x22b   :  { %vm922_vm3 = vweird.f32 %v897_v5 }
 0x22c   :  { %v2861_v59 = vpop.eup %2860  ;;  %v2646_v50 = vmul.f32 -1.442695, %v876_v60  ;;  %v926_v60 = vand.u32 2147483647, %v897_v5  ;;  %vm3713_vm7 = vcmp.eq.f32.partialorder %v911_v35, 8.507059e+37 }
 0x22d   :  { %v2863_v63 = vpop.eup %2862  ;;  %v3702_v47 = vadd.f32 1.0, %v2861_v59  ;;  %793 = vperm.xlu2 %2764, %v2855_v51   ;;  %v913_v59 = vand.u32 2147483648, %v896_v31 }
 0x22e   :  { %v2865_v48 = vpop.eup %2864  ;;  %v3704_v11 = vadd.f32 1.0, %v2863_v63  ;;  %v928_v63 = vand.u32 2147483648, %v897_v5  ;;  %vm3719_vm8 = vcmp.eq.f32.partialorder %v926_v60, 8.507059e+37 }
 0x22f   :  { %v2867_v18 = vpop.eup %2866  ;;  %2870 = vrcp.f32 %v3702_v47  ;;  %v3707_v26 = vadd.f32 1.0, %v2865_v48  ;;  %v914_v61 = vor.u32 1.1754944e-38, %v913_v59 }
 0x230   :  { %v2869_v52 = vpop.eup %2868  ;;  %v903_v6 = vmul.f32 %v2867_v18, %v896_v31  ;;  %2872 = vrcp.f32 %v3704_v11  ;;  %vm908_vm5 = vweird.f32 %v2867_v18  ;;  %v929_v4 = vor.u32 1.1754944e-38, %v928_v63 }
 0x231   :  { %v918_v27 = vmul.f32 %v2869_v52, %v897_v5  ;;  %2874 = vrcp.f32 %v3707_v26  ;;  %vm923_vm6 = vweird.f32 %v2869_v52  ;;  %vm909_vm9 = vmor %vm907_vm4, %vm908_vm5  ;;  %v956_v60 = vand.u32 2147483647, %v3704_v11 }
 0x232   :  { %v904_v51 = vsub.f32 1.0, %v903_v6  ;;  %2876 = vpow2.f32 %v2646_v50  ;;  %vm924_vm11 = vmor %vm922_vm3, %vm923_vm6  ;;  %v958_v5 = vand.u32 2147483648, %v3704_v11  ;;  %vm952_vm14 = vweird.f32 %v3704_v11 }
 0x233   :  { %v919_v22 = vsub.f32 1.0, %v918_v27  ;;  %2878 = vtanh.f32 %v873_v49  ;;  %v973_v27 = vand.u32 2147483648, %v3707_v26  ;;  %vm967_vm15 = vweird.f32 %v3707_v26 }
 0x234   :  { %v905_v23 = vmul.f32 %v2867_v18, %v904_v51  ;;  %2880 = vtanh.f32 %v877_v14  ;;  %vm957_vm3 = vcmp.eq.f32.partialorder %v956_v60, 8.507059e+37  ;;  %vm937_vm5 = vweird.f32 %v3702_v47 }
 0x235   :  { %v3711_v40 = vpop.eup %2870  ;;  %v920_v48 = vmul.f32 %v2869_v52, %v919_v22 }
 0x236   :  { %v2873_v6 = vpop.eup %2872  ;;  %v933_v50 = vmul.f32 %v3711_v40, %v3702_v47  ;;  %v906_v49 = vadd.f32 %v2867_v18, %v905_v23  ;;  %vm938_vm1 = vweird.f32 %v3711_v40 }
 0x237   :  { %v2875_v31 = vpop.eup %2874  ;;  %v921_v55 = vadd.f32 %v2869_v52, %v920_v48  ;;  %v948_v22 = vmul.f32 %v2873_v6, %v3704_v11  ;;  %vm953_vm12 = vweird.f32 %v2873_v6  ;;  %vm939_vm6 = vmor %vm937_vm5, %vm938_vm1 }
 0x238   :  { %v2877_v35 = vpop.eup %2876  ;;  %v934_v59 = vsub.f32 1.0, %v933_v50  ;;  %v910_v51 = vsel %vm909_vm9, %v2867_v18, %v906_v49  ;;  %v963_v63 = vmul.f32 %v2875_v31, %v3707_v26  ;;  %vm968_vm13 = vweird.f32 %v2875_v31  ;;  %vm954_vm0 = vmor %vm952_vm14, %vm953_vm12 }
 0x239   :  { %v2879_v23 = vpop.eup %2878  ;;  %v915_v29 = vsel %vm3713_vm7, %v914_v61, %v910_v51  ;;  %v925_v48 = vsel %vm924_vm11, %v2869_v52, %v921_v55  ;;  %v949_v56 = vsub.f32 1.0, %v948_v22  ;;  %v901_v15 = vadd.f32 1.0, %v2877_v35  ;;  %vm969_vm2 = vmor %vm967_vm15, %vm968_vm13 }
 0x23a   :  { %v930_v14 = vsel %vm3719_vm8, %v929_v4, %v925_v48  ;;  %v996_v44 = vmul.f32 %v2879_v23, %v915_v29  ;;  %v964_v39 = vsub.f32 1.0, %v963_v63  ;;  %v935_v18 = vmul.f32 %v3711_v40, %v934_v59  ;;  %v2881_v52 = vpop.eup %2880 }
 0x23b   :  { %v994_v50 = vmul.f32 %v930_v14, %v3617_v13  ;;  %2882 = vrcp.f32 %v901_v15  ;;  %v950_v0 = vmul.f32 %v2873_v6, %v949_v56  ;;  %v971_v61 = vand.u32 2147483647, %v3707_v26 }
 0x23c   :  { %v965_v49 = vmul.f32 %v2875_v31, %v964_v39  ;;  %v943_v55 = vand.u32 2147483648, %v3702_v47  ;;  %v974_v29 = vor.u32 1.1754944e-38, %v973_v27  ;;  %v959_v39 = vor.u32 1.1754944e-38, %v958_v5 }
 0x23d   :  { %v3738_v43 = vadd.f32 %v996_v44, %v994_v50  ;;  %v951_v4 = vadd.f32 %v2873_v6, %v950_v0  ;;  %v936_v56 = vadd.f32 %v3711_v40, %v935_v18  ;;  %vm972_vm4 = vcmp.eq.f32.partialorder %v971_v61, 8.507059e+37 }
 0x23e   :  { %v966_v13 = vadd.f32 %v2875_v31, %v965_v49  ;;  %v941_v27 = vand.u32 2147483647, %v3702_v47  ;;  %v944_v48 = vor.u32 1.1754944e-38, %v943_v55  ;;  %v988_v60 = vand.u32 2147483648, %v901_v15 }
 0x23f   :  { %2884 = vtanh.f32 %v3738_v43  ;;  %v955_v22 = vsel %vm954_vm0, %v2873_v6, %v951_v4  ;;  %v940_v23 = vsel %vm939_vm6, %v3711_v40, %v936_v56  ;;  %v986_v47 = vand.u32 2147483647, %v901_v15  ;;  %v4421_v56 = vld [vmem:[#allocation18_spill] sm:$0xff] }
 0x240   :  { %v970_v44 = vsel %vm969_vm2, %v2875_v31, %v966_v13  ;;  %v960_v11 = vsel %vm957_vm3, %v959_v39, %v955_v22  ;;  %vm942_vm7 = vcmp.eq.f32.partialorder %v941_v27, 8.507059e+37  ;;  %vm982_vm9 = vweird.f32 %v901_v15  ;;  %v4420_v39 = vld [vmem:[#allocation17_spill] sm:$0xff] }
 0x241   :  { %v2883_v35 = vpop.eup %2882  ;;  %v975_v26 = vsel %vm972_vm4, %v974_v29, %v970_v44  ;;  %v997_v63 = vmul.f32 %v2881_v52, %v960_v11  ;;  %v945_v18 = vsel %vm942_vm7, %v944_v48, %v940_v23  ;;  %v989_v49 = vor.u32 1.1754944e-38, %v988_v60  ;;  %v4422_v44 = vld [vmem:[#allocation26_spill] sm:$0xff]  ;;  %v4426_v48 = vld [vmem:[#allocation20_spill] sm:$0xff] }
 0x242   :  { %v978_v59 = vmul.f32 %v2883_v35, %v901_v15  ;;  %v995_v51 = vmul.f32 %v975_v26, %v3631_v62  ;;  %vm983_vm8 = vweird.f32 %v2883_v35  ;;  %vm987_vm12 = vcmp.eq.f32.partialorder %v986_v47, 8.507059e+37  ;;  %v4423_v26 = vld [vmem:[#allocation24_spill] sm:$0xff] }
 0x243   :  { %vm984_vm11 = vmor %vm982_vm9, %vm983_vm8 }
 0x244   :  { %v979_v14 = vsub.f32 1.0, %v978_v59  ;;  %v3749_v6 = vadd.f32 %v997_v63, %v995_v51  ;;  %v1057_v63 = vld [vmem:[#allocation7 + $0x60] sm:$0xff] }
 0x245   :  { %v2885_v31 = vpop.eup %2884  ;;  %v1061_v60 = vunpack.c.l.bf16 %v1057_v63 }
 0x246   :  { %v980_v5 = vmul.f32 %v2883_v35, %v979_v14  ;;  %2886 = vtanh.f32 %v3749_v6  ;;  %v3752_v50 = vmul.f32 %v2885_v31, %v945_v18 }
 0x248   :  { %4417 = vst [vmem:[#allocation28_spill] sm:$0xff] %v3752_v50  ;;  %v981_v62 = vadd.f32 %v2883_v35, %v980_v5  ;;  %2888 = vtanh.f32 %v3752_v50  ;;  %v1062_v5 = vunpack.c.h.bf16 %v1057_v63 }
 0x24a   :  { %v985_v40 = vsel %vm984_vm11, %v2883_v35, %v981_v62  ;;  %v4428_v62 = vld [vmem:[#allocation21_spill] sm:$0xff] }
 0x24b   :  { %v990_v61 = vsel %vm987_vm12, %v989_v49, %v985_v40 }
 0x24c   :  { %v2887_v0 = vpop.eup %2886 }
 0x24d   :  { %v3755_v52 = vmul.f32 %v2887_v0, %v990_v61 }
 0x24e   :  { %v2889_v29 = vpop.eup %2888 }
 0x24f   :  { %4418 = vst [vmem:[#allocation29_spill] sm:$0xff] %v3755_v52  ;;  %v1069_v55 = vpack.c.bf16 %v3755_v52, %v3752_v50  ;;  %2890 = vtanh.f32 %v3755_v52  ;;  %v1006_v15 = vmul.f32 %v2889_v29, %v3524_v30 }
 0x251   :  { %1078 = vmatmul.bf16.vlgmr.msrb.gmra.mxu0 %v1069_v55  ;;  %1092 = vmatmul.bf16.vlgmr.msrb.gmra.mxu1 %v1069_v55 }
 0x252   :  { %1106 = vmatmul.bf16.vlgmr.msrb.gmra.mxu2 %v1069_v55  ;;  %1120 = vmatmul.bf16.vlgmr.msrb.gmra.mxu3 %v1069_v55 }
 0x253   :  { %1582 = vmatpush.bf16.msrb.mxu0 %v3285_v3  ;;  %1596 = vmatpush.bf16.msrb.mxu1 %v3287_v7 }
 0x254   :  { %1610 = vmatpush.bf16.msrb.mxu2 %v3289_v8  ;;  %1624 = vmatpush.bf16.msrb.mxu3 %v3300_v21 }
 0x255   :  { %v2891_v4 = vpop.eup %2890 }
 0x256   :  { %1008 = vadd.xlane.f32.xlu2 %v1006_v15  ;;  %v1007_v13 = vmul.f32 %v2891_v4, %v3524_v30  ;;  %v3790_v30 = vpop.permute.xlu2 %537 }
 0x257   :  { %1583 = vmatpush.bf16.msrb.mxu0 %v3292_v12  ;;  %1597 = vmatpush.bf16.msrb.mxu1 %v3296_v16  ;;  %4419 = vst [vmem:[#allocation30_spill] sm:$0xff] %v3790_v30 }
 0x258   :  { %1010 = vadd.xlane.f32.xlu1 %v1007_v13  ;;  %1611 = vmatpush.bf16.msrb.mxu2 %v3298_v17  ;;  %v1058_v13 = vld [vmem:[#allocation7 + $0x68] sm:$0xff] }
 0x259   :  { %1625 = vmatpush.bf16.msrb.mxu3 %v3312_v34 }
 0x25b   :  { %1584 = vmatpush.bf16.msrb.mxu0 %v3304_v28  ;;  %1598 = vmatpush.bf16.msrb.mxu1 %v3308_v32 }
 0x25c   :  { %1612 = vmatpush.bf16.msrb.mxu2 %v3310_v33 }
 0x25d   :  { %1626 = vmatpush.bf16.msrb.mxu3 %v3318_v42 }
 0x25f   :  { %1585 = vmatpush.bf16.msrb.mxu0 %v3316_v41  ;;  %1599 = vmatpush.bf16.msrb.mxu1 %v3322_v45 }
 0x260   :  { %1613 = vmatpush.bf16.msrb.mxu2 %v3324_v46 }
 0x261   :  { %1627 = vmatpush.bf16.msrb.mxu3 %v3330_v54 }
 0x263   :  { %1586 = vmatpush.bf16.msrb.mxu0 %v3328_v53  ;;  %1600 = vmatpush.bf16.msrb.mxu1 %v3334_v57 }
 0x264   :  { %1614 = vmatpush.bf16.msrb.mxu2 %v3336_v58 }
 0x265   :  { %1628 = vmatpush.bf16.msrb.mxu3 %v3342_v2 }
 0x267   :  { %1587 = vmatpush.bf16.msrb.mxu0 %v3340_v1  ;;  %1601 = vmatpush.bf16.msrb.mxu1 %v3346_v9 }
 0x268   :  { %1615 = vmatpush.bf16.msrb.mxu2 %v3348_v10 }
 0x269   :  { %1629 = vmatpush.bf16.msrb.mxu3 %v3354_v20 }
 0x26b   :  { %1588 = vmatpush.bf16.msrb.mxu0 %v3352_v19  ;;  %1602 = vmatpush.bf16.msrb.mxu1 %v3358_v24 }
 0x26c   :  { %1616 = vmatpush.bf16.msrb.mxu2 %v3360_v25 }
 0x26d   :  { %1630 = vmatpush.bf16.msrb.mxu3 %v3366_v37 }
 0x26f   :  { %1589 = vmatpush.bf16.msrb.mxu0 %v3364_v36  ;;  %1603 = vmatpush.bf16.msrb.mxu1 %v3370_v38 }
 0x270   :  { %1617 = vmatpush.bf16.msrb.mxu2 %v4420_v39 }
 0x271   :  { %1631 = vmatpush.bf16.msrb.mxu3 %v4421_v56 }
 0x277   :  { %v777_v22 = vpop.permute.xlu2 %776 }
 0x278   :  { %v784_v35 = vmul.f32 %v777_v22, %v4422_v44  ;;  %v1059_v44 = vld [vmem:[#allocation7 + $0x70] sm:$0xff] }
 0x279   :  { %v1066_v63 = vunpack.c.h.bf16 %v1059_v44 }
 0x27f   :  { %v789_v11 = vpop.permute.xlu2 %788 }
 0x280   :  { %v796_v27 = vmul.f32 %v789_v11, %v4423_v26  ;;  %v1063_v26 = vunpack.c.l.bf16 %v1058_v13 }
 0x282   :  { %v3798_v59 = vadd.f32 %v796_v27, %v784_v35  ;;  %v1065_v27 = vunpack.c.l.bf16 %v1059_v44 }
 0x284   :  { %4424 = vst [vmem:[#allocation17_spill] sm:$0xff] %v3798_v59 }
 0x287   :  { %v3800_v51 = vpop.permute.xlu2 %793 }
 0x288   :  { %4425 = vst [vmem:[#allocation18_spill] sm:$0xff] %v3800_v51 }
 0x2c9   :  { %v1009_v23 = vpop.xlane.xlu2 %1008 }
 0x2ca   :  { %v3803_v14 = vmax.f32 %v4426_v48, %v1009_v23 }
 0x2cb   :  { %v3805_v31 = vpop.xlane.xlu1 %1010 }
 0x2cc   :  { %4427 = vst [vmem:[#allocation26_spill] sm:$0xff] %v3803_v14  ;;  %v1014_v18 = vsub.f32 %v4426_v48, %v3803_v14  ;;  %v1020_v47 = vsub.f32 %v1009_v23, %v3803_v14  ;;  %v3812_v49 = vmax.f32 %v4428_v62, %v3805_v31 }
 0x2ce   :  { %v1016_v40 = vmul.f32 1.442695, %v1014_v18  ;;  %v1022_v0 = vmul.f32 1.442695, %v1020_v47  ;;  %v1015_v61 = vsub.f32 %v4428_v62, %v3812_v49  ;;  %v1079_v55 = vpop.f32.mrf.mxu0  ;;  %v1093_v29 = vpop.f32.mrf.mxu1 }
 0x2cf   :  { %v1126_v15 = vadd.f32 %v1079_v55, %v1061_v60  ;;  %v1127_v4 = vadd.f32 %v1093_v29, %v1062_v5  ;;  %v4429_v5 = vld [vmem:[#allocation22_spill] sm:$0xff] }
 0x2d0   :  { %2892 = vpow2.f32 %v1016_v40  ;;  %v1018_v22 = vmul.f32 1.442695, %v1015_v61 }
 0x2d1   :  { %2894 = vpow2.f32 %v1022_v0  ;;  %v2647_v35 = vmul.f32 -1.442695, %v1126_v15  ;;  %v2648_v11 = vmul.f32 -1.442695, %v1127_v4  ;;  %v1060_v15 = vld [vmem:[#allocation7 + $0x78] sm:$0xff] }
 0x2d2   :  { %2896 = vpow2.f32 %v1018_v22  ;;  %v4431_v22 = vld [vmem:[#allocation23_spill] sm:$0xff] }
 0x2d3   :  { %2898 = vpow2.f32 %v2647_v35 }
 0x2d4   :  { %2900 = vpow2.f32 %v2648_v11 }
 0x2d5   :  { %v1107_v23 = vpop.f32.mrf.mxu2 }
 0x2d6   :  { %v2893_v48 = vpop.eup %2892  ;;  %v1128_v18 = vadd.f32 %v1107_v23, %v1063_v26  ;;  %v1081_v47 = vpop.f32.mrf.mxu0 }
 0x2d7   :  { %v1095_v62 = vpop.f32.mrf.mxu1  ;;  %v2895_v60 = vpop.eup %2894  ;;  %v1026_v55 = vmul.f32 %v2893_v48, %v4429_v5  ;;  %v1130_v40 = vadd.f32 %v1081_v47, %v1065_v27  ;;  %1032 = vperm.xlu0 %2765, %v2893_v48   ;;  %v1067_v27 = vunpack.c.l.bf16 %v1060_v15 }
 0x2d8   :  { %v1131_v61 = vadd.f32 %v1095_v62, %v1066_v63  ;;  %v2897_v0 = vpop.eup %2896  ;;  %v2649_v29 = vmul.f32 -1.442695, %v1128_v18  ;;  %1044 = vperm.xlu2 %2764, %v2895_v60   ;;  %v1121_v23 = vpop.f32.mrf.mxu3  ;;  %v1064_v18 = vunpack.c.h.bf16 %v1058_v13 }
 0x2d9   :  { %v3817_v4 = vadd.f32 %v2895_v60, %v1026_v55  ;;  %v3820_v44 = vmul.f32 %v2897_v0, %v4431_v22  ;;  %v2650_v35 = vmul.f32 -1.442695, %v1130_v40  ;;  %1037 = vperm.xlu1 %2763, %v2897_v0   ;;  %v2899_v26 = vpop.eup %2898 }
 0x2da   :  { %v2651_v11 = vmul.f32 -1.442695, %v1131_v61  ;;  %2902 = vpow2.f32 %v2649_v29  ;;  %v2901_v52 = vpop.eup %2900  ;;  %v1152_v5 = vadd.f32 1.0, %v2899_v26  ;;  %v1129_v22 = vadd.f32 %v1121_v23, %v1064_v18 }
 0x2db   :  { %4430 = vst [vmem:[#allocation24_spill] sm:$0xff] %v3817_v4  ;;  %2904 = vpow2.f32 %v2650_v35  ;;  %v1153_v63 = vadd.f32 1.0, %v2901_v52  ;;  %v1068_v35 = vunpack.c.h.bf16 %v1060_v15 }
 0x2dc   :  { %4432 = vst [vmem:[#allocation20_spill] sm:$0xff] %v3820_v44  ;;  %2906 = vpow2.f32 %v2651_v11  ;;  %v1169_v50 = vand.u32 2147483648, %v1152_v5  ;;  %vm1163_vm13 = vweird.f32 %v1152_v5 }
 0x2dd   :  { %2908 = vrcp.f32 %v1152_v5  ;;  %v1109_v48 = vpop.f32.mrf.mxu2  ;;  %v1182_v44 = vand.u32 2147483647, %v1153_v63  ;;  %vm1178_vm15 = vweird.f32 %v1153_v63 }
 0x2de   :  { %2910 = vrcp.f32 %v1153_v63  ;;  %v1132_v47 = vadd.f32 %v1109_v48, %v1067_v27  ;;  %v1167_v48 = vand.u32 2147483647, %v1152_v5 }
 0x2df   :  { %vm3839_vm3 = vcmp.eq.f32.partialorder %v1182_v44, 8.507059e+37 }
 0x2e0   :  { %v2903_v62 = vpop.eup %2902  ;;  %v2652_v40 = vmul.f32 -1.442695, %v1132_v47  ;;  %v1123_v13 = vpop.f32.mrf.mxu3  ;;  %v1184_v47 = vand.u32 2147483648, %v1153_v63  ;;  %vm3833_vm1 = vcmp.eq.f32.partialorder %v1167_v48, 8.507059e+37 }
 0x2e1   :  { %v2905_v60 = vpop.eup %2904  ;;  %v3822_v55 = vadd.f32 1.0, %v2903_v62  ;;  %v1133_v23 = vadd.f32 %v1123_v13, %v1068_v35 }
 0x2e2   :  { %v2907_v61 = vpop.eup %2906  ;;  %v3824_v0 = vadd.f32 1.0, %v2905_v60 }
 0x2e3   :  { %v2909_v29 = vpop.eup %2908  ;;  %2912 = vrcp.f32 %v3822_v55  ;;  %v3828_v26 = vadd.f32 1.0, %v2907_v61  ;;  %vm1193_vm5 = vweird.f32 %v3822_v55 }
 0x2e4   :  { %v2911_v52 = vpop.eup %2910  ;;  %v1159_v11 = vmul.f32 %v2909_v29, %v1152_v5  ;;  %2914 = vrcp.f32 %v3824_v0  ;;  %vm1164_vm14 = vweird.f32 %v2909_v29  ;;  %v1214_v4 = vand.u32 2147483648, %v3824_v0 }
 0x2e5   :  { %v1174_v27 = vmul.f32 %v2911_v52, %v1153_v63  ;;  %2916 = vpow2.f32 %v2652_v40  ;;  %vm1179_vm0 = vweird.f32 %v2911_v52  ;;  %vm1165_vm2 = vmor %vm1163_vm13, %vm1164_vm14  ;;  %vm1208_vm9 = vweird.f32 %v3824_v0 }
 0x2e6   :  { %v1160_v62 = vsub.f32 1.0, %v1159_v11  ;;  %2918 = vrcp.f32 %v3828_v26  ;;  %v1185_v11 = vor.u32 1.1754944e-38, %v1184_v47  ;;  %vm1180_vm4 = vmor %vm1178_vm15, %vm1179_vm0  ;;  %vm1223_vm11 = vweird.f32 %v3828_v26 }
 0x2e7   :  { %v1175_v60 = vsub.f32 1.0, %v1174_v27  ;;  %2920 = vtanh.f32 %v1129_v22  ;;  %v1170_v22 = vor.u32 1.1754944e-38, %v1169_v50  ;;  %v1215_v13 = vor.u32 1.1754944e-38, %v1214_v4 }
 0x2e8   :  { %v1161_v15 = vmul.f32 %v2909_v29, %v1160_v62  ;;  %2922 = vtanh.f32 %v1133_v23  ;;  %v1199_v23 = vand.u32 2147483648, %v3822_v55 }
 0x2e9   :  { %v3831_v18 = vpop.eup %2912  ;;  %v1176_v61 = vmul.f32 %v2911_v52, %v1175_v60 }
 0x2ea   :  { %v2915_v40 = vpop.eup %2914  ;;  %v1189_v27 = vmul.f32 %v3831_v18, %v3822_v55  ;;  %v1162_v14 = vadd.f32 %v2909_v29, %v1161_v15  ;;  %vm1194_vm8 = vweird.f32 %v3831_v18 }
 0x2eb   :  { %v2917_v35 = vpop.eup %2916  ;;  %v1177_v5 = vadd.f32 %v2911_v52, %v1176_v61  ;;  %v1204_v62 = vmul.f32 %v2915_v40, %v3824_v0  ;;  %vm1209_vm6 = vweird.f32 %v2915_v40  ;;  %vm1195_vm15 = vmor %vm1193_vm5, %vm1194_vm8 }
 0x2ec   :  { %v2919_v48 = vpop.eup %2918  ;;  %v1190_v60 = vsub.f32 1.0, %v1189_v27  ;;  %v1166_v47 = vsel %vm1165_vm2, %v2909_v29, %v1162_v14  ;;  %v3846_v59 = vadd.f32 1.0, %v2917_v35  ;;  %v1212_v35 = vand.u32 2147483647, %v3824_v0  ;;  %vm1210_vm12 = vmor %vm1208_vm9, %vm1209_vm6 }
 0x2ed   :  { %v2921_v50 = vpop.eup %2920  ;;  %v1171_v15 = vsel %vm3833_vm1, %v1170_v22, %v1166_v47  ;;  %v1181_v44 = vsel %vm1180_vm4, %v2911_v52, %v1177_v5  ;;  %v1205_v61 = vsub.f32 1.0, %v1204_v62  ;;  %v1219_v51 = vmul.f32 %v2919_v48, %v3828_v26 }
 0x2ee   :  { %v1191_v30 = vmul.f32 %v3831_v18, %v1190_v60  ;;  %v1186_v63 = vsel %vm3839_vm3, %v1185_v11, %v1181_v44  ;;  %v1252_v27 = vmul.f32 %v2921_v50, %v1171_v15  ;;  %2924 = vrcp.f32 %v3846_v59  ;;  %v2923_v5 = vpop.eup %2922 }
 0x2ef   :  { %v1250_v14 = vmul.f32 %v1186_v63, %v3738_v43  ;;  %v1220_v29 = vsub.f32 1.0, %v1219_v51  ;;  %v1229_v52 = vand.u32 2147483648, %v3828_v26  ;;  %v1206_v22 = vmul.f32 %v2915_v40, %v1205_v61 }
 0x2f0   :  { %vm1224_vm7 = vweird.f32 %v2919_v48  ;;  %v1227_v11 = vand.u32 2147483647, %v3828_v26  ;;  %v1192_v43 = vadd.f32 %v3831_v18, %v1191_v30  ;;  %v1197_v50 = vand.u32 2147483647, %v3822_v55 }
 0x2f1   :  { %v3860_v62 = vadd.f32 %v1252_v27, %v1250_v14  ;;  %v1221_v60 = vmul.f32 %v2919_v48, %v1220_v29  ;;  %v1207_v51 = vadd.f32 %v2915_v40, %v1206_v22  ;;  %vm1225_vm13 = vmor %vm1223_vm11, %vm1224_vm7  ;;  %v1230_v15 = vor.u32 1.1754944e-38, %v1229_v52 }
 0x2f2   :  { %vm1213_vm14 = vcmp.eq.f32.partialorder %v1212_v35, 8.507059e+37  ;;  %vm1228_vm0 = vcmp.eq.f32.partialorder %v1227_v11, 8.507059e+37  ;;  %v1196_v14 = vsel %vm1195_vm15, %v3831_v18, %v1192_v43  ;;  %v1200_v29 = vor.u32 1.1754944e-38, %v1199_v23 }
 0x2f3   :  { %2926 = vtanh.f32 %v3860_v62  ;;  %v1222_v47 = vadd.f32 %v2919_v48, %v1221_v60  ;;  %v1211_v44 = vsel %vm1210_vm12, %v2915_v40, %v1207_v51  ;;  %vm1198_vm1 = vcmp.eq.f32.partialorder %v1197_v50, 8.507059e+37 }
 0x2f4   :  { %v2925_v61 = vpop.eup %2924  ;;  %v1216_v30 = vsel %vm1213_vm14, %v1215_v13, %v1211_v44  ;;  %v1201_v35 = vsel %vm1198_vm1, %v1200_v29, %v1196_v14  ;;  %vm1238_vm3 = vweird.f32 %v3846_v59  ;;  %v4441_v14 = vld [vmem:[#allocation30_spill] sm:$0xff] }
 0x2f5   :  { %v1226_v63 = vsel %vm1225_vm13, %v2919_v48, %v1222_v47  ;;  %v1234_v0 = vmul.f32 %v2925_v61, %v3846_v59  ;;  %v1253_v26 = vmul.f32 %v2923_v5, %v1216_v30  ;;  %vm1239_vm2 = vweird.f32 %v2925_v61  ;;  %v3888_v47 = vld [vmem:[%s4355_s2] ss:$0 sm:$0xff] }
 0x2f6   :  { %v1231_v27 = vsel %vm1228_vm0, %v1230_v15, %v1226_v63  ;;  %v1244_v48 = vand.u32 2147483648, %v3846_v59  ;;  %vm1240_vm4 = vmor %vm1238_vm3, %vm1239_vm2  ;;  %v4439_v63 = vld [vmem:[#allocation27_spill] sm:$0xff] }
 0x2f7   :  { %v1251_v4 = vmul.f32 %v1231_v27, %v3749_v6  ;;  %v1235_v22 = vsub.f32 1.0, %v1234_v0  ;;  %v1242_v6 = vand.u32 2147483647, %v3846_v59  ;;  %v529_v0 = vmul.f32 0.0, %v4439_v63  ;;  %v782_v27 = vpop.permute.xlu0 %781 }
 0x2f8   :  { %v1245_v5 = vor.u32 1.1754944e-38, %v1244_v48 }
 0x2f9   :  { %v2927_v40 = vpop.eup %2926  ;;  %v3874_v52 = vadd.f32 %v1253_v26, %v1251_v4  ;;  %v1236_v55 = vmul.f32 %v2925_v61, %v1235_v22  ;;  %vm1243_vm5 = vcmp.eq.f32.partialorder %v1242_v6, 8.507059e+37  ;;  %v4440_v26 = vld [vmem:[#allocation19_spill] sm:$0xff] }
 0x2fa   :  { %v3876_v60 = vmul.f32 %v2927_v40, %v1201_v35  ;;  %v541_v29 = vmul.f32 %v4441_v14, %v4440_v26  ;;  %v4442_v40 = vld [vmem:[#allocation25_spill] sm:$0xff]  ;;  %v4443_v35 = vld [vmem:[#allocation18_spill] sm:$0xff] }
 0x2fb   :  { %2928 = vtanh.f32 %v3874_v52  ;;  %v1237_v18 = vadd.f32 %v2925_v61, %v1236_v55  ;;  %v797_v55 = vmul.f32 %v4443_v35, %v4442_v40 }
 0x2fc   :  { %4437 = vst [vmem:[#allocation21_spill] sm:$0xff] %v3876_v60  ;;  %2930 = vtanh.f32 %v3876_v60  ;;  %v543_v4 = vadd.f32 %v541_v29, %v529_v0 }
 0x2fd   :  { %v1241_v23 = vsel %vm1240_vm4, %v2925_v61, %v1237_v18  ;;  %v1021_v61 = vsub.f32 %v3805_v31, %v3812_v49  ;;  %v4444_v18 = vld [vmem:[#allocation17_spill] sm:$0xff] }
 0x2fe   :  { %v1246_v43 = vsel %vm1243_vm5, %v1245_v5, %v1241_v23  ;;  %v785_v22 = vmul.f32 %v782_v27, %v543_v4 }
 0x2ff   :  { %v1024_v30 = vmul.f32 1.442695, %v1021_v61 }
 0x300   :  { %v799_v23 = vadd.f32 %v797_v55, %v785_v22  ;;  %v1314_v55 = vld [vmem:[#allocation7 + $0x88] sm:$0xff] }
 0x301   :  { %v2929_v11 = vpop.eup %2928 }
 0x302   :  { %v2931_v51 = vpop.eup %2930  ;;  %v3883_v13 = vmul.f32 %v2929_v11, %v1246_v43 }
 0x303   :  { %v1262_v50 = vmul.f32 %v3888_v47, %v2931_v51  ;;  %v4446_v51 = vld [vmem:[#allocation26_spill] sm:$0xff] }
 0x304   :  { %4438 = vst [vmem:[#allocation22_spill] sm:$0xff] %v3883_v13  ;;  %v1325_v15 = vpack.c.bf16 %v3883_v13, %v3876_v60  ;;  %2932 = vtanh.f32 %v3883_v13 }
 0x305   :  { %1264 = vadd.xlane.f32.xlu1 %v1262_v50  ;;  %2934 = vpow2.f32 %v1024_v30  ;;  %v1313_v30 = vld [vmem:[#allocation7 + $0x80] sm:$0xff] }
 0x306   :  { %1334 = vmatmul.bf16.vlgmr.msra.gmra.mxu0 %v1325_v15  ;;  %1348 = vmatmul.bf16.vlgmr.msra.gmra.mxu1 %v1325_v15  ;;  %v1317_v0 = vunpack.c.l.bf16 %v1313_v30  ;;  %v1318_v27 = vunpack.c.h.bf16 %v1313_v30 }
 0x307   :  { %1362 = vmatmul.bf16.vlgmr.msra.gmra.mxu2 %v1325_v15  ;;  %1376 = vmatmul.bf16.vlgmr.msra.gmra.mxu3 %v1325_v15 }
 0x308   :  { %1838 = vmatpush.bf16.msra.mxu0 %v3285_v3  ;;  %1852 = vmatpush.bf16.msra.mxu1 %v3287_v7 }
 0x309   :  { %1866 = vmatpush.bf16.msra.mxu2 %v3289_v8  ;;  %1880 = vmatpush.bf16.msra.mxu3 %v3300_v21 }
 0x30a   :  { %v2933_v59 = vpop.eup %2932 }
 0x30b   :  { %v1263_v44 = vmul.f32 %v3888_v47, %v2933_v59  ;;  %v3921_v31 = vpop.eup %2934 }
 0x30c   :  { %1839 = vmatpush.bf16.msra.mxu0 %v3292_v12  ;;  %1853 = vmatpush.bf16.msra.mxu1 %v3296_v16 }
 0x30d   :  { %1266 = vadd.xlane.f32.xlu0 %v1263_v44  ;;  %1867 = vmatpush.bf16.msra.mxu2 %v3298_v17 }
 0x30e   :  { %1881 = vmatpush.bf16.msra.mxu3 %v3312_v34 }
 0x310   :  { %1840 = vmatpush.bf16.msra.mxu0 %v3304_v28  ;;  %1854 = vmatpush.bf16.msra.mxu1 %v3308_v32 }
 0x311   :  { %1868 = vmatpush.bf16.msra.mxu2 %v3310_v33 }
 0x312   :  { %1882 = vmatpush.bf16.msra.mxu3 %v3318_v42 }
 0x314   :  { %1841 = vmatpush.bf16.msra.mxu0 %v3316_v41  ;;  %1855 = vmatpush.bf16.msra.mxu1 %v3322_v45 }
 0x315   :  { %1869 = vmatpush.bf16.msra.mxu2 %v3324_v46 }
 0x316   :  { %1883 = vmatpush.bf16.msra.mxu3 %v3330_v54 }
 0x318   :  { %1842 = vmatpush.bf16.msra.mxu0 %v3328_v53  ;;  %1856 = vmatpush.bf16.msra.mxu1 %v3334_v57 }
 0x319   :  { %1870 = vmatpush.bf16.msra.mxu2 %v3336_v58 }
 0x31a   :  { %1884 = vmatpush.bf16.msra.mxu3 %v3342_v2 }
 0x31c   :  { %1843 = vmatpush.bf16.msra.mxu0 %v3340_v1  ;;  %1857 = vmatpush.bf16.msra.mxu1 %v3346_v9 }
 0x31d   :  { %1871 = vmatpush.bf16.msra.mxu2 %v3348_v10 }
 0x31e   :  { %1885 = vmatpush.bf16.msra.mxu3 %v3354_v20 }
 0x320   :  { %1844 = vmatpush.bf16.msra.mxu0 %v3352_v19  ;;  %1858 = vmatpush.bf16.msra.mxu1 %v3358_v24 }
 0x321   :  { %1049 = vperm.xlu0 %2765, %v3921_v31   ;;  %1872 = vmatpush.bf16.msra.mxu2 %v3360_v25 }
 0x322   :  { %1886 = vmatpush.bf16.msra.mxu3 %v3366_v37 }
 0x324   :  { %1845 = vmatpush.bf16.msra.mxu0 %v3364_v36  ;;  %1859 = vmatpush.bf16.msra.mxu1 %v3370_v38 }
 0x325   :  { %1873 = vmatpush.bf16.msra.mxu2 %v4420_v39 }
 0x326   :  { %1887 = vmatpush.bf16.msra.mxu3 %v4421_v56 }
 0x349   :  { %v1033_v48 = vpop.permute.xlu0 %1032 }
 0x34a   :  { %v3938_v6 = vmul.f32 %v1033_v48, %v4444_v18 }
 0x34b   :  { %v1038_v5 = vpop.permute.xlu1 %1037 }
 0x34c   :  { %v3940_v11 = vmul.f32 %v1038_v5, %v799_v23  ;;  %v1315_v5 = vld [vmem:[#allocation7 + $0x90] sm:$0xff] }
 0x34d   :  { %v1321_v30 = vunpack.c.l.bf16 %v1315_v5 }
 0x34e   :  { %4445 = vst [vmem:[#allocation23_spill] sm:$0xff] %v3940_v11 }
 0x378   :  { %v1265_v43 = vpop.xlane.xlu1 %1264 }
 0x379   :  { %v3943_v50 = vmax.f32 %v4446_v51, %v1265_v43 }
 0x37b   :  { %4447 = vst [vmem:[#allocation27_spill] sm:$0xff] %v3943_v50  ;;  %v1270_v15 = vsub.f32 %v4446_v51, %v3943_v50  ;;  %v1276_v59 = vsub.f32 %v1265_v43, %v3943_v50  ;;  %v4449_v51 = vld [vmem:[#allocation24_spill] sm:$0xff] }
 0x37d   :  { %v1272_v44 = vmul.f32 1.442695, %v1270_v15  ;;  %v1278_v61 = vmul.f32 1.442695, %v1276_v59 }
 0x37f   :  { %2936 = vpow2.f32 %v1272_v44 }
 0x380   :  { %2938 = vpow2.f32 %v1278_v61  ;;  %v1267_v63 = vpop.xlane.xlu0 %1266 }
 0x381   :  { %v3949_v26 = vmax.f32 %v3812_v49, %v1267_v63 }
 0x383   :  { %4448 = vst [vmem:[#allocation19_spill] sm:$0xff] %v3949_v26  ;;  %v1271_v14 = vsub.f32 %v3812_v49, %v3949_v26  ;;  %v1277_v29 = vsub.f32 %v1267_v63, %v3949_v26  ;;  %v1335_v4 = vpop.f32.mrf.mxu0  ;;  %v1349_v22 = vpop.f32.mrf.mxu1  ;;  %v1319_v49 = vunpack.c.l.bf16 %v1314_v55  ;;  %v1322_v63 = vunpack.c.h.bf16 %v1315_v5 }
 0x384   :  { %v1382_v40 = vadd.f32 %v1335_v4, %v1317_v0  ;;  %v1383_v35 = vadd.f32 %v1349_v22, %v1318_v27  ;;  %v4451_v4 = vld [vmem:[#allocation20_spill] sm:$0xff] }
 0x385   :  { %v2937_v48 = vpop.eup %2936  ;;  %v1274_v18 = vmul.f32 1.442695, %v1271_v14  ;;  %v1280_v23 = vmul.f32 1.442695, %v1277_v29  ;;  %v1029_v22 = vadd.f32 %v3921_v31, %v4451_v4 }
 0x386   :  { %v2939_v43 = vpop.eup %2938  ;;  %v1282_v15 = vmul.f32 %v2937_v48, %v4449_v51  ;;  %v2653_v59 = vmul.f32 -1.442695, %v1382_v40  ;;  %v2654_v44 = vmul.f32 -1.442695, %v1383_v35  ;;  %1288 = vperm.xlu1 %2763, %v2937_v48   ;;  %v1316_v51 = vld [vmem:[#allocation7 + $0x98] sm:$0xff] }
 0x387   :  { %2940 = vpow2.f32 %v1274_v18  ;;  %1300 = vperm.xlu2 %2764, %v2939_v43   ;;  %v1323_v31 = vunpack.c.l.bf16 %v1316_v51 }
 0x388   :  { %v3955_v61 = vadd.f32 %v2939_v43, %v1282_v15  ;;  %2942 = vpow2.f32 %v1280_v23 }
 0x389   :  { %2944 = vpow2.f32 %v2653_v59 }
 0x38a   :  { %4450 = vst [vmem:[#allocation30_spill] sm:$0xff] %v3955_v61  ;;  %2946 = vpow2.f32 %v2654_v44  ;;  %v1363_v0 = vpop.f32.mrf.mxu2  ;;  %v1377_v59 = vpop.f32.mrf.mxu3 }
 0x38b   :  { %v1384_v27 = vadd.f32 %v1363_v0, %v1319_v49  ;;  %v1337_v14 = vpop.f32.mrf.mxu0  ;;  %v1351_v29 = vpop.f32.mrf.mxu1 }
 0x38c   :  { %v1386_v40 = vadd.f32 %v1337_v14, %v1321_v30  ;;  %v1387_v35 = vadd.f32 %v1351_v29, %v1322_v63 }
 0x38d   :  { %v2941_v48 = vpop.eup %2940  ;;  %v2655_v18 = vmul.f32 -1.442695, %v1384_v27  ;;  %v1320_v27 = vunpack.c.h.bf16 %v1314_v55 }
 0x38e   :  { %v2943_v60 = vpop.eup %2942  ;;  %v1283_v43 = vmul.f32 %v2941_v48, %v1029_v22  ;;  %v2656_v15 = vmul.f32 -1.442695, %v1386_v40  ;;  %v2657_v23 = vmul.f32 -1.442695, %v1387_v35  ;;  %1293 = vperm.xlu0 %2765, %v2941_v48  }
 0x38f   :  { %v2945_v5 = vpop.eup %2944  ;;  %2948 = vpow2.f32 %v2655_v18  ;;  %1305 = vperm.xlu1 %2763, %v2943_v60   ;;  %v1385_v18 = vadd.f32 %v1377_v59, %v1320_v27 }
 0x390   :  { %v2947_v44 = vpop.eup %2946  ;;  %v3959_v49 = vadd.f32 %v2943_v60, %v1283_v43  ;;  %v1408_v0 = vadd.f32 1.0, %v2945_v5  ;;  %2950 = vpow2.f32 %v2656_v15  ;;  %v1324_v43 = vunpack.c.h.bf16 %v1316_v51 }
 0x391   :  { %v1409_v30 = vadd.f32 1.0, %v2947_v44  ;;  %2952 = vpow2.f32 %v2657_v23 }
 0x392   :  { %4452 = vst [vmem:[#allocation25_spill] sm:$0xff] %v3959_v49  ;;  %2954 = vrcp.f32 %v1408_v0  ;;  %v1365_v63 = vpop.f32.mrf.mxu2  ;;  %v1379_v55 = vpop.f32.mrf.mxu3  ;;  %vm1419_vm6 = vweird.f32 %v1408_v0 }
 0x393   :  { %2956 = vrcp.f32 %v1409_v30  ;;  %v1388_v14 = vadd.f32 %v1365_v63, %v1323_v31  ;;  %v1423_v31 = vand.u32 2147483647, %v1408_v0  ;;  %v1438_v61 = vand.u32 2147483647, %v1409_v30 }
 0x394   :  { %v1389_v59 = vadd.f32 %v1379_v55, %v1324_v43  ;;  %vm1434_vm8 = vweird.f32 %v1409_v30 }
 0x395   :  { %v2949_v29 = vpop.eup %2948  ;;  %v2658_v40 = vmul.f32 -1.442695, %v1388_v14  ;;  %v1440_v14 = vand.u32 2147483648, %v1409_v30  ;;  %vm3972_vm11 = vcmp.eq.f32.partialorder %v1423_v31, 8.507059e+37  ;;  %vm3978_vm13 = vcmp.eq.f32.partialorder %v1438_v61, 8.507059e+37 }
 0x396   :  { %v2951_v4 = vpop.eup %2950  ;;  %v3961_v22 = vadd.f32 1.0, %v2949_v29  ;;  %v1425_v29 = vand.u32 2147483648, %v1408_v0 }
 0x397   :  { %v2953_v35 = vpop.eup %2952  ;;  %v3963_v48 = vadd.f32 1.0, %v2951_v4 }
 0x398   :  { %v2955_v60 = vpop.eup %2954  ;;  %2958 = vrcp.f32 %v3961_v22  ;;  %v3967_v5 = vadd.f32 1.0, %v2953_v35  ;;  %vm1449_vm15 = vweird.f32 %v3961_v22 }
 0x399   :  { %v2957_v15 = vpop.eup %2956  ;;  %v1415_v23 = vmul.f32 %v2955_v60, %v1408_v0  ;;  %2960 = vrcp.f32 %v3963_v48  ;;  %vm1420_vm7 = vweird.f32 %v2955_v60  ;;  %v1470_v50 = vand.u32 2147483648, %v3963_v48 }
 0x39a   :  { %v1430_v44 = vmul.f32 %v2957_v15, %v1409_v30  ;;  %2962 = vpow2.f32 %v2658_v40  ;;  %vm1435_vm9 = vweird.f32 %v2957_v15  ;;  %vm1421_vm12 = vmor %vm1419_vm6, %vm1420_vm7  ;;  %vm1464_vm3 = vweird.f32 %v3963_v48 }
 0x39b   :  { %v1416_v63 = vsub.f32 1.0, %v1415_v23  ;;  %2964 = vrcp.f32 %v3967_v5  ;;  %v1441_v23 = vor.u32 1.1754944e-38, %v1440_v14  ;;  %vm1436_vm14 = vmor %vm1434_vm8, %vm1435_vm9  ;;  %vm1479_vm4 = vweird.f32 %v3967_v5 }
 0x39c   :  { %v1431_v4 = vsub.f32 1.0, %v1430_v44  ;;  %2966 = vtanh.f32 %v1385_v18  ;;  %v1426_v18 = vor.u32 1.1754944e-38, %v1425_v29  ;;  %v1471_v55 = vor.u32 1.1754944e-38, %v1470_v50 }
 0x39d   :  { %v1417_v51 = vmul.f32 %v2955_v60, %v1416_v63  ;;  %2968 = vtanh.f32 %v1389_v59  ;;  %v1455_v59 = vand.u32 2147483648, %v3961_v22 }
 0x39e   :  { %v3970_v27 = vpop.eup %2958  ;;  %v1432_v35 = vmul.f32 %v2957_v15, %v1431_v4 }
 0x39f   :  { %v2961_v40 = vpop.eup %2960  ;;  %v1445_v44 = vmul.f32 %v3970_v27, %v3961_v22  ;;  %v1418_v49 = vadd.f32 %v2955_v60, %v1417_v51  ;;  %vm1450_vm2 = vweird.f32 %v3970_v27 }
 0x3a0   :  { %v2963_v43 = vpop.eup %2962  ;;  %v1433_v0 = vadd.f32 %v2957_v15, %v1432_v35  ;;  %v1460_v63 = vmul.f32 %v2961_v40, %v3963_v48  ;;  %vm1465_vm0 = vweird.f32 %v2961_v40  ;;  %vm1451_vm8 = vmor %vm1449_vm15, %vm1450_vm2 }
 0x3a1   :  { %v2965_v31 = vpop.eup %2964  ;;  %v1446_v4 = vsub.f32 1.0, %v1445_v44  ;;  %v1422_v14 = vsel %vm1421_vm12, %v2955_v60, %v1418_v49  ;;  %v3985_v26 = vadd.f32 1.0, %v2963_v43  ;;  %v1468_v43 = vand.u32 2147483647, %v3963_v48  ;;  %vm1466_vm5 = vmor %vm1464_vm3, %vm1465_vm0 }
 0x3a2   :  { %v2967_v29 = vpop.eup %2966  ;;  %v1427_v51 = vsel %vm3972_vm11, %v1426_v18, %v1422_v14  ;;  %v1437_v61 = vsel %vm1436_vm14, %v2957_v15, %v1433_v0  ;;  %v1461_v35 = vsub.f32 1.0, %v1460_v63  ;;  %v1475_v13 = vmul.f32 %v2965_v31, %v3967_v5 }
 0x3a3   :  { %v1447_v11 = vmul.f32 %v3970_v27, %v1446_v4  ;;  %v1442_v30 = vsel %vm3978_vm13, %v1441_v23, %v1437_v61  ;;  %v1508_v44 = vmul.f32 %v2967_v29, %v1427_v51  ;;  %2970 = vrcp.f32 %v3985_v26  ;;  %v2969_v0 = vpop.eup %2968 }
 0x3a4   :  { %v1506_v49 = vmul.f32 %v1442_v30, %v3860_v62  ;;  %v1476_v60 = vsub.f32 1.0, %v1475_v13  ;;  %v1485_v15 = vand.u32 2147483648, %v3967_v5  ;;  %v1462_v18 = vmul.f32 %v2961_v40, %v1461_v35 }
 0x3a5   :  { %vm1480_vm1 = vweird.f32 %v2965_v31  ;;  %v1483_v23 = vand.u32 2147483647, %v3967_v5  ;;  %v1448_v62 = vadd.f32 %v3970_v27, %v1447_v11  ;;  %v1453_v29 = vand.u32 2147483647, %v3961_v22 }
 0x3a6   :  { %v3999_v63 = vadd.f32 %v1508_v44, %v1506_v49  ;;  %v1477_v4 = vmul.f32 %v2965_v31, %v1476_v60  ;;  %v1463_v13 = vadd.f32 %v2961_v40, %v1462_v18  ;;  %vm1481_vm6 = vmor %vm1479_vm4, %vm1480_vm1  ;;  %v1486_v51 = vor.u32 1.1754944e-38, %v1485_v15 }
 0x3a7   :  { %vm1469_vm7 = vcmp.eq.f32.partialorder %v1468_v43, 8.507059e+37  ;;  %vm1484_vm9 = vcmp.eq.f32.partialorder %v1483_v23, 8.507059e+37  ;;  %v1452_v49 = vsel %vm1451_vm8, %v3970_v27, %v1448_v62  ;;  %v1456_v60 = vor.u32 1.1754944e-38, %v1455_v59 }
 0x3a8   :  { %2972 = vtanh.f32 %v3999_v63  ;;  %v1478_v14 = vadd.f32 %v2965_v31, %v1477_v4  ;;  %v1467_v61 = vsel %vm1466_vm5, %v2961_v40, %v1463_v13  ;;  %vm1454_vm11 = vcmp.eq.f32.partialorder %v1453_v29, 8.507059e+37 }
 0x3a9   :  { %v2971_v35 = vpop.eup %2970  ;;  %v1472_v11 = vsel %vm1469_vm7, %v1471_v55, %v1467_v61  ;;  %v1457_v43 = vsel %vm1454_vm11, %v1456_v60, %v1452_v49  ;;  %vm1494_vm13 = vweird.f32 %v3985_v26 }
 0x3aa   :  { %v1482_v30 = vsel %vm1481_vm6, %v2965_v31, %v1478_v14  ;;  %v1490_v48 = vmul.f32 %v2971_v35, %v3985_v26  ;;  %v1509_v5 = vmul.f32 %v2969_v0, %v1472_v11  ;;  %vm1495_vm12 = vweird.f32 %v2971_v35 }
 0x3ab   :  { %v1487_v44 = vsel %vm1484_vm9, %v1486_v51, %v1482_v30  ;;  %v1500_v31 = vand.u32 2147483648, %v3985_v26  ;;  %vm1496_vm14 = vmor %vm1494_vm13, %vm1495_vm12 }
 0x3ac   :  { %v1507_v50 = vmul.f32 %v1487_v44, %v3874_v52  ;;  %v1491_v18 = vsub.f32 1.0, %v1490_v48  ;;  %v1498_v52 = vand.u32 2147483647, %v3985_v26 }
 0x3ad   :  { %v1501_v0 = vor.u32 1.1754944e-38, %v1500_v31 }
 0x3ae   :  { %v2973_v40 = vpop.eup %2972  ;;  %v4013_v15 = vadd.f32 %v1509_v5, %v1507_v50  ;;  %v1492_v22 = vmul.f32 %v2971_v35, %v1491_v18  ;;  %vm1499_vm15 = vcmp.eq.f32.partialorder %v1498_v52, 8.507059e+37 }
 0x3af   :  { %v4015_v4 = vmul.f32 %v2973_v40, %v1457_v43  ;;  %v1572_v43 = vld [vmem:[#allocation7 + $0xb8] sm:$0xff] }
 0x3b0   :  { %2974 = vtanh.f32 %v4013_v15  ;;  %v1493_v27 = vadd.f32 %v2971_v35, %v1492_v22  ;;  %v4462_v22 = vld [vmem:[#allocation25_spill] sm:$0xff] }
 0x3b1   :  { %2976 = vtanh.f32 %v4015_v4 }
 0x3b2   :  { %v1497_v59 = vsel %vm1496_vm14, %v2971_v35, %v1493_v27 }
 0x3b3   :  { %v1502_v62 = vsel %vm1499_vm15, %v1501_v0, %v1497_v59 }
 0x3b6   :  { %v2975_v23 = vpop.eup %2974 }
 0x3b7   :  { %v2977_v13 = vpop.eup %2976  ;;  %v4022_v55 = vmul.f32 %v2975_v23, %v1502_v62 }
 0x3b8   :  { %v1518_v14 = vmul.f32 %v3888_v47, %v2977_v13  ;;  %v1579_v13 = vunpack.c.l.bf16 %v1572_v43 }
 0x3b9   :  { %v1581_v29 = vpack.c.bf16 %v4022_v55, %v4015_v4  ;;  %2978 = vtanh.f32 %v4022_v55 }
 0x3ba   :  { %1520 = vadd.xlane.f32.xlu1 %v1518_v14 }
 0x3bb   :  { %1590 = vmatmul.bf16.vlgmr.msrb.gmra.mxu0 %v1581_v29  ;;  %1604 = vmatmul.bf16.vlgmr.msrb.gmra.mxu1 %v1581_v29 }
 0x3bc   :  { %1618 = vmatmul.bf16.vlgmr.msrb.gmra.mxu2 %v1581_v29  ;;  %1632 = vmatmul.bf16.vlgmr.msrb.gmra.mxu3 %v1581_v29 }
 0x3bd   :  { %2094 = vmatpush.bf16.msrb.mxu0 %v3285_v3  ;;  %2108 = vmatpush.bf16.msrb.mxu1 %v3287_v7  ;;  %v1045_v3 = vpop.permute.xlu2 %1044  ;;  %v4457_v7 = vld [vmem:[#allocation28_spill] sm:$0xff] }
 0x3be   :  { %2122 = vmatpush.bf16.msrb.mxu2 %v3289_v8  ;;  %2136 = vmatpush.bf16.msrb.mxu3 %v3300_v21  ;;  %v1052_v8 = vmul.f32 %v1045_v3, %v4457_v7 }
 0x3bf   :  { %v2979_v26 = vpop.eup %2978 }
 0x3c0   :  { %v1519_v51 = vmul.f32 %v3888_v47, %v2979_v26 }
 0x3c1   :  { %2095 = vmatpush.bf16.msrb.mxu0 %v3292_v12  ;;  %2109 = vmatpush.bf16.msrb.mxu1 %v3296_v16  ;;  %v1054_v12 = vadd.f32 %v1052_v8, %v3938_v6  ;;  %v1050_v16 = vpop.permute.xlu0 %1049 }
 0x3c2   :  { %1522 = vadd.xlane.f32.xlu2 %v1519_v51  ;;  %2123 = vmatpush.bf16.msrb.mxu2 %v3298_v17 }
 0x3c3   :  { %2137 = vmatpush.bf16.msrb.mxu3 %v3312_v34 }
 0x3c5   :  { %2096 = vmatpush.bf16.msrb.mxu0 %v3304_v28  ;;  %2110 = vmatpush.bf16.msrb.mxu1 %v3308_v32  ;;  %v4458_v28 = vld [vmem:[#allocation29_spill] sm:$0xff] }
 0x3c6   :  { %2124 = vmatpush.bf16.msrb.mxu2 %v3310_v33  ;;  %v1053_v32 = vmul.f32 %v1050_v16, %v4458_v28  ;;  %v4459_v33 = vld [vmem:[#allocation23_spill] sm:$0xff] }
 0x3c7   :  { %2138 = vmatpush.bf16.msrb.mxu3 %v3318_v42 }
 0x3c8   :  { %v1055_v34 = vadd.f32 %v1053_v32, %v4459_v33  ;;  %v1580_v33 = vunpack.c.h.bf16 %v1572_v43 }
 0x3c9   :  { %2097 = vmatpush.bf16.msrb.mxu0 %v3316_v41  ;;  %2111 = vmatpush.bf16.msrb.mxu1 %v3322_v45 }
 0x3ca   :  { %2125 = vmatpush.bf16.msrb.mxu2 %v3324_v46  ;;  %v4460_v46 = vld [vmem:[#allocation22_spill] sm:$0xff] }
 0x3cb   :  { %2139 = vmatpush.bf16.msrb.mxu3 %v3330_v54 }
 0x3cd   :  { %2098 = vmatpush.bf16.msrb.mxu0 %v3328_v53  ;;  %2112 = vmatpush.bf16.msrb.mxu1 %v3334_v57 }
 0x3ce   :  { %2126 = vmatpush.bf16.msrb.mxu2 %v3336_v58  ;;  %v1569_v58 = vld [vmem:[#allocation7 + $0xa0] sm:$0xff] }
 0x3cf   :  { %2140 = vmatpush.bf16.msrb.mxu3 %v3342_v2  ;;  %v1573_v2 = vunpack.c.l.bf16 %v1569_v58 }
 0x3d1   :  { %2099 = vmatpush.bf16.msrb.mxu0 %v3340_v1  ;;  %2113 = vmatpush.bf16.msrb.mxu1 %v3346_v9  ;;  %v1574_v9 = vunpack.c.h.bf16 %v1569_v58 }
 0x3d2   :  { %2127 = vmatpush.bf16.msrb.mxu2 %v3348_v10  ;;  %v4461_v10 = vld [vmem:[#allocation19_spill] sm:$0xff] }
 0x3d3   :  { %2141 = vmatpush.bf16.msrb.mxu3 %v3354_v20 }
 0x3d5   :  { %2100 = vmatpush.bf16.msrb.mxu0 %v3352_v19  ;;  %2114 = vmatpush.bf16.msrb.mxu1 %v3358_v24 }
 0x3d6   :  { %2128 = vmatpush.bf16.msrb.mxu2 %v3360_v25 }
 0x3d7   :  { %2142 = vmatpush.bf16.msrb.mxu3 %v3366_v37 }
 0x3d9   :  { %2101 = vmatpush.bf16.msrb.mxu0 %v3364_v36  ;;  %2115 = vmatpush.bf16.msrb.mxu1 %v3370_v38  ;;  %v1570_v38 = vld [vmem:[#allocation7 + $0xa8] sm:$0xff] }
 0x3da   :  { %2129 = vmatpush.bf16.msrb.mxu2 %v4420_v39  ;;  %v1575_v35 = vunpack.c.l.bf16 %v1570_v38  ;;  %v1576_v26 = vunpack.c.h.bf16 %v1570_v38 }
 0x3db   :  { %2143 = vmatpush.bf16.msrb.mxu3 %v4421_v56  ;;  %v1571_v56 = vld [vmem:[#allocation7 + $0xb0] sm:$0xff] }
 0x3dc   :  { %v1577_v11 = vunpack.c.l.bf16 %v1571_v56  ;;  %v1578_v30 = vunpack.c.h.bf16 %v1571_v56 }
 0x3e1   :  { %v4070_v57 = vpop.permute.xlu2 %1300 }
 0x3f8   :  { %v1289_v17 = vpop.permute.xlu1 %1288 }
 0x3f9   :  { %v4063_v21 = vmul.f32 %v1289_v17, %v1054_v12 }
 0x400   :  { %v1294_v41 = vpop.permute.xlu0 %1293 }
 0x401   :  { %v1297_v42 = vmul.f32 %v1294_v41, %v1055_v34  ;;  %v1306_v45 = vpop.permute.xlu1 %1305 }
 0x402   :  { %v1309_v53 = vmul.f32 %v1306_v45, %v4460_v46 }
 0x404   :  { %v4068_v54 = vadd.f32 %v1309_v53, %v1297_v42 }
 0x435   :  { %v4072_v1 = vpop.xlane.xlu2 %1522 }
 0x436   :  { %v4076_v19 = vmax.f32 %v4461_v10, %v4072_v1 }
 0x438   :  { %v1527_v20 = vsub.f32 %v4461_v10, %v4076_v19  ;;  %v1591_v24 = vpop.f32.mrf.mxu0  ;;  %v1605_v25 = vpop.f32.mrf.mxu1 }
 0x439   :  { %v1638_v36 = vadd.f32 %v1591_v24, %v1573_v2  ;;  %v1639_v37 = vadd.f32 %v1605_v25, %v1574_v9 }
 0x43a   :  { %v1530_v39 = vmul.f32 1.442695, %v1527_v20 }
 0x43b   :  { %v2659_v6 = vmul.f32 -1.442695, %v1638_v36  ;;  %v2660_v61 = vmul.f32 -1.442695, %v1639_v37 }
 0x43c   :  { %2980 = vpow2.f32 %v1530_v39 }
 0x43d   :  { %2982 = vpow2.f32 %v2659_v6 }
 0x43e   :  { %2984 = vpow2.f32 %v2660_v61 }
 0x43f   :  { %v1619_v48 = vpop.f32.mrf.mxu2  ;;  %v1633_v0 = vpop.f32.mrf.mxu3 }
 0x440   :  { %v1640_v44 = vadd.f32 %v1619_v48, %v1575_v35  ;;  %v1593_v5 = vpop.f32.mrf.mxu0  ;;  %v1607_v49 = vpop.f32.mrf.mxu1  ;;  %v1641_v32 = vadd.f32 %v1633_v0, %v1576_v26 }
 0x441   :  { %v1642_v60 = vadd.f32 %v1593_v5, %v1577_v11  ;;  %v1643_v50 = vadd.f32 %v1607_v49, %v1578_v30 }
 0x442   :  { %v2981_v18 = vpop.eup %2980  ;;  %v2661_v40 = vmul.f32 -1.442695, %v1640_v44 }
 0x443   :  { %v4081_v31 = vmul.f32 %v2981_v18, %v4462_v22  ;;  %v2662_v27 = vmul.f32 -1.442695, %v1642_v60  ;;  %v2663_v52 = vmul.f32 -1.442695, %v1643_v50  ;;  %1549 = vperm.xlu0 %2765, %v2981_v18   ;;  %v2983_v59 = vpop.eup %2982 }
 0x444   :  { %2986 = vpow2.f32 %v2661_v40  ;;  %v2985_v23 = vpop.eup %2984  ;;  %v1664_v62 = vadd.f32 1.0, %v2983_v59 }
 0x445   :  { %2988 = vpow2.f32 %v2662_v27  ;;  %v1665_v14 = vadd.f32 1.0, %v2985_v23 }
 0x446   :  { %2990 = vpow2.f32 %v2663_v52  ;;  %v1679_v53 = vand.u32 2147483647, %v1664_v62  ;;  %v1681_v9 = vand.u32 2147483648, %v1664_v62  ;;  %vm1675_vm0 = vweird.f32 %v1664_v62 }
 0x447   :  { %2992 = vrcp.f32 %v1664_v62  ;;  %v1621_v29 = vpop.f32.mrf.mxu2  ;;  %v1635_v45 = vpop.f32.mrf.mxu3  ;;  %v1696_v2 = vand.u32 2147483648, %v1665_v14  ;;  %v1694_v20 = vand.u32 2147483647, %v1665_v14  ;;  %vm1690_vm2 = vweird.f32 %v1665_v14 }
 0x448   :  { %2994 = vrcp.f32 %v1665_v14  ;;  %v1644_v51 = vadd.f32 %v1621_v29, %v1579_v13  ;;  %v1645_v24 = vadd.f32 %v1635_v45, %v1580_v33  ;;  %vm4094_vm4 = vcmp.eq.f32.partialorder %v1679_v53, 8.507059e+37 }
 0x449   :  { %v1697_v56 = vor.u32 1.1754944e-38, %v1696_v2  ;;  %v1682_v35 = vor.u32 1.1754944e-38, %v1681_v9  ;;  %vm4100_vm6 = vcmp.eq.f32.partialorder %v1694_v20, 8.507059e+37 }
 0x44a   :  { %v2987_v3 = vpop.eup %2986  ;;  %v2664_v12 = vmul.f32 -1.442695, %v1644_v51 }
 0x44b   :  { %v2989_v7 = vpop.eup %2988  ;;  %v4083_v8 = vadd.f32 1.0, %v2987_v3 }
 0x44c   :  { %v2991_v16 = vpop.eup %2990  ;;  %v4085_v17 = vadd.f32 1.0, %v2989_v7 }
 0x44d   :  { %v2993_v28 = vpop.eup %2992  ;;  %2996 = vrcp.f32 %v4083_v8  ;;  %v4089_v42 = vadd.f32 1.0, %v2991_v16  ;;  %vm1705_vm8 = vweird.f32 %v4083_v8  ;;  %v1711_v59 = vand.u32 2147483648, %v4083_v8 }
 0x44e   :  { %v2995_v34 = vpop.eup %2994  ;;  %v1671_v41 = vmul.f32 %v2993_v28, %v1664_v62  ;;  %2998 = vrcp.f32 %v4085_v17  ;;  %vm1676_vm1 = vweird.f32 %v2993_v28  ;;  %v1724_v51 = vand.u32 2147483647, %v4085_v17 }
 0x44f   :  { %v1686_v46 = vmul.f32 %v2995_v34, %v1665_v14  ;;  %3000 = vpow2.f32 %v2664_v12  ;;  %vm1691_vm3 = vweird.f32 %v2995_v34  ;;  %vm1677_vm5 = vmor %vm1675_vm0, %vm1676_vm1  ;;  %v1726_v14 = vand.u32 2147483648, %v4085_v17 }
 0x450   :  { %v1672_v58 = vsub.f32 1.0, %v1671_v41  ;;  %3002 = vrcp.f32 %v4089_v42  ;;  %vm1692_vm7 = vmor %vm1690_vm2, %vm1691_vm3  ;;  %v1741_v29 = vand.u32 2147483648, %v4089_v42  ;;  %v1739_v16 = vand.u32 2147483647, %v4089_v42 }
 0x451   :  { %v1687_v10 = vsub.f32 1.0, %v1686_v46  ;;  %3004 = vtanh.f32 %v1641_v32  ;;  %vm1720_vm13 = vweird.f32 %v4085_v17  ;;  %vm1735_vm14 = vweird.f32 %v4089_v42 }
 0x452   :  { %v1673_v25 = vmul.f32 %v2993_v28, %v1672_v58  ;;  %3006 = vtanh.f32 %v1645_v24  ;;  %v1727_v32 = vor.u32 1.1754944e-38, %v1726_v14  ;;  %v1742_v41 = vor.u32 1.1754944e-38, %v1741_v29  ;;  %v1825_v14 = vld [vmem:[#allocation7 + $0xc0] sm:$0xff]  ;;  %v4468_v29 = vld [vmem:[#allocation30_spill] sm:$0xff] }
 0x453   :  { %v4092_v36 = vpop.eup %2996  ;;  %v1688_v37 = vmul.f32 %v2995_v34, %v1687_v10  ;;  %vm1725_vm1 = vcmp.eq.f32.partialorder %v1724_v51, 8.507059e+37  ;;  %vm1740_vm3 = vcmp.eq.f32.partialorder %v1739_v16, 8.507059e+37  ;;  %v1712_v10 = vor.u32 1.1754944e-38, %v1711_v59 }
 0x454   :  { %v2999_v39 = vpop.eup %2998  ;;  %v1701_v6 = vmul.f32 %v4092_v36, %v4083_v8  ;;  %v1674_v61 = vadd.f32 %v2993_v28, %v1673_v25  ;;  %vm1706_vm12 = vweird.f32 %v4092_v36 }
 0x455   :  { %v3001_v11 = vpop.eup %3000  ;;  %v1689_v30 = vadd.f32 %v2995_v34, %v1688_v37  ;;  %v1716_v44 = vmul.f32 %v2999_v39, %v4085_v17  ;;  %vm1721_vm9 = vweird.f32 %v2999_v39  ;;  %vm1707_vm2 = vmor %vm1705_vm8, %vm1706_vm12 }
 0x456   :  { %v3003_v5 = vpop.eup %3002  ;;  %v1702_v49 = vsub.f32 1.0, %v1701_v6  ;;  %v1678_v60 = vsel %vm1677_vm5, %v2993_v28, %v1674_v61  ;;  %v4107_v50 = vadd.f32 1.0, %v3001_v11  ;;  %vm1722_vm15 = vmor %vm1720_vm13, %vm1721_vm9 }
 0x457   :  { %v3005_v18 = vpop.eup %3004  ;;  %v1683_v40 = vsel %vm4094_vm4, %v1682_v35, %v1678_v60  ;;  %v1693_v43 = vsel %vm1692_vm7, %v2995_v34, %v1689_v30  ;;  %v1717_v22 = vsub.f32 1.0, %v1716_v44  ;;  %v1731_v27 = vmul.f32 %v3003_v5, %v4089_v42 }
 0x458   :  { %v1703_v52 = vmul.f32 %v4092_v36, %v1702_v49  ;;  %v1698_v0 = vsel %vm4100_vm6, %v1697_v56, %v1693_v43  ;;  %v1764_v23 = vmul.f32 %v3005_v18, %v1683_v40  ;;  %3008 = vrcp.f32 %v4107_v50  ;;  %v3007_v3 = vpop.eup %3006  ;;  %v4467_v18 = vld [vmem:[#allocation27_spill] sm:$0xff] }
 0x459   :  { %v1762_v62 = vmul.f32 %v1698_v0, %v3999_v63  ;;  %v1732_v13 = vsub.f32 1.0, %v1731_v27  ;;  %v1718_v26 = vmul.f32 %v2999_v39, %v1717_v22  ;;  %vm1736_vm11 = vweird.f32 %v3003_v5 }
 0x45a   :  { %v1704_v63 = vadd.f32 %v4092_v36, %v1703_v52  ;;  %v1709_v34 = vand.u32 2147483647, %v4083_v8  ;;  %vm1737_vm0 = vmor %vm1735_vm14, %vm1736_vm11  ;;  %v1756_v56 = vand.u32 2147483648, %v4107_v50  ;;  %vm1750_vm6 = vweird.f32 %v4107_v50 }
 0x45b   :  { %v4121_v7 = vadd.f32 %v1764_v23, %v1762_v62  ;;  %v1733_v12 = vmul.f32 %v3003_v5, %v1732_v13  ;;  %v1719_v28 = vadd.f32 %v2999_v39, %v1718_v26 }
 0x45c   :  { %v1708_v9 = vsel %vm1707_vm2, %v4092_v36, %v1704_v63  ;;  %vm1710_vm4 = vcmp.eq.f32.partialorder %v1709_v34, 8.507059e+37  ;;  %v1757_v61 = vor.u32 1.1754944e-38, %v1756_v56 }
 0x45d   :  { %3010 = vtanh.f32 %v4121_v7  ;;  %v1734_v33 = vadd.f32 %v3003_v5, %v1733_v12  ;;  %v1723_v45 = vsel %vm1722_vm15, %v2999_v39, %v1719_v28  ;;  %v1713_v38 = vsel %vm1710_vm4, %v1712_v10, %v1708_v9 }
 0x45e   :  { %v3009_v46 = vpop.eup %3008  ;;  %v1728_v53 = vsel %vm1725_vm1, %v1727_v32, %v1723_v45  ;;  %v1830_v12 = vunpack.c.h.bf16 %v1825_v14 }
 0x45f   :  { %v1738_v58 = vsel %vm1737_vm0, %v3003_v5, %v1734_v33  ;;  %v1746_v17 = vmul.f32 %v3009_v46, %v4107_v50  ;;  %v1765_v42 = vmul.f32 %v3007_v3, %v1728_v53  ;;  %vm1751_vm5 = vweird.f32 %v3009_v46  ;;  %v1826_v53 = vld [vmem:[#allocation7 + $0xc8] sm:$0xff] }
 0x460   :  { %v1743_v2 = vsel %vm1740_vm3, %v1742_v41, %v1738_v58  ;;  %vm1752_vm7 = vmor %vm1750_vm6, %vm1751_vm5  ;;  %v1829_v3 = vunpack.c.l.bf16 %v1825_v14 }
 0x461   :  { %v1763_v20 = vmul.f32 %v1743_v2, %v4013_v15  ;;  %v1747_v24 = vsub.f32 1.0, %v1746_v17  ;;  %v1754_v15 = vand.u32 2147483647, %v4107_v50  ;;  %v1521_v50 = vpop.xlane.xlu1 %1520 }
 0x462   :  { %v1524_v40 = vmax.f32 %v4467_v18, %v1521_v50 }
 0x463   :  { %v3011_v25 = vpop.eup %3010  ;;  %v4135_v37 = vadd.f32 %v1765_v42, %v1763_v20  ;;  %v1748_v8 = vmul.f32 %v3009_v46, %v1747_v24  ;;  %vm1755_vm8 = vcmp.eq.f32.partialorder %v1754_v15, 8.507059e+37  ;;  %v1827_v42 = vld [vmem:[#allocation7 + $0xd0] sm:$0xff] }
 0x464   :  { %v4137_v39 = vmul.f32 %v3011_v25, %v1713_v38  ;;  %v1526_v43 = vsub.f32 %v4467_v18, %v1524_v40  ;;  %v1532_v27 = vsub.f32 %v1521_v50, %v1524_v40  ;;  %v1833_v24 = vunpack.c.l.bf16 %v1827_v42 }
 0x465   :  { %3012 = vtanh.f32 %v4135_v37  ;;  %v1749_v36 = vadd.f32 %v3009_v46, %v1748_v8  ;;  %v1834_v25 = vunpack.c.h.bf16 %v1827_v42 }
 0x466   :  { %3014 = vtanh.f32 %v4137_v39  ;;  %v1528_v22 = vmul.f32 1.442695, %v1526_v43  ;;  %v1534_v59 = vmul.f32 1.442695, %v1532_v27 }
 0x467   :  { %v1753_v6 = vsel %vm1752_vm7, %v3009_v46, %v1749_v36 }
 0x468   :  { %v1758_v11 = vsel %vm1755_vm8, %v1757_v61, %v1753_v6 }
 0x46b   :  { %v3013_v35 = vpop.eup %3012 }
 0x46c   :  { %v3015_v30 = vpop.eup %3014  ;;  %v4144_v48 = vmul.f32 %v3013_v35, %v1758_v11 }
 0x46d   :  { %v1774_v44 = vmul.f32 %v3888_v47, %v3015_v30 }
 0x46e   :  { %v1837_v5 = vpack.c.bf16 %v4144_v48, %v4137_v39  ;;  %3016 = vtanh.f32 %v4144_v48 }
 0x46f   :  { %1776 = vadd.xlane.f32.xlu1 %v1774_v44  ;;  %3018 = vpow2.f32 %v1528_v22  ;;  %v1828_v44 = vld [vmem:[#allocation7 + $0xd8] sm:$0xff] }
 0x470   :  { %1846 = vmatmul.bf16.vlgmr.msra.gmra.mxu0 %v1837_v5  ;;  %1860 = vmatmul.bf16.vlgmr.msra.gmra.mxu1 %v1837_v5  ;;  %3020 = vpow2.f32 %v1534_v59 }
 0x471   :  { %1874 = vmatmul.bf16.vlgmr.msra.gmra.mxu2 %v1837_v5  ;;  %1888 = vmatmul.bf16.vlgmr.msra.gmra.mxu3 %v1837_v5 }
 0x474   :  { %v3017_v49 = vpop.eup %3016 }
 0x475   :  { %v1775_v60 = vmul.f32 %v3888_v47, %v3017_v49  ;;  %v4159_v62 = vpop.eup %3018  ;;  %v1533_v47 = vsub.f32 %v4072_v1, %v4076_v19 }
 0x476   :  { %v1538_v26 = vmul.f32 %v4159_v62, %v4468_v29  ;;  %v4168_v28 = vpop.eup %3020 }
 0x477   :  { %1778 = vadd.xlane.f32.xlu2 %v1775_v60  ;;  %v1536_v16 = vmul.f32 1.442695, %v1533_v47  ;;  %v1832_v47 = vunpack.c.h.bf16 %v1826_v53 }
 0x478   :  { %v1540_v41 = vadd.f32 %v4168_v28, %v1538_v26 }
 0x4e2   :  { %v4153_v52 = vpop.xlane.xlu1 %1776 }
 0x4e3   :  { %v4156_v0 = vmax.f32 %v1524_v40, %v4153_v52 }
 0x4e5   :  { %v1782_v23 = vsub.f32 %v1524_v40, %v4156_v0 }
 0x4e7   :  { %v1784_v13 = vmul.f32 1.442695, %v1782_v23 }
 0x4e9   :  { %3022 = vpow2.f32 %v1784_v13 }
 0x4ea   :  { %v1779_v51 = vpop.xlane.xlu2 %1778  ;;  %3024 = vpow2.f32 %v1536_v16 }
 0x4eb   :  { %v4166_v63 = vmax.f32 %v4076_v19, %v1779_v51 }
 0x4ed   :  { %v1783_v32 = vsub.f32 %v4076_v19, %v4166_v63  ;;  %v1789_v1 = vsub.f32 %v1779_v51, %v4166_v63  ;;  %v1847_v33 = vpop.f32.mrf.mxu0  ;;  %v1861_v34 = vpop.f32.mrf.mxu1  ;;  %v1831_v19 = vunpack.c.l.bf16 %v1826_v53 }
 0x4ee   :  { %v1894_v45 = vadd.f32 %v1847_v33, %v1829_v3  ;;  %v1895_v46 = vadd.f32 %v1861_v34, %v1830_v12 }
 0x4ef   :  { %v3023_v58 = vpop.eup %3022  ;;  %v1786_v17 = vmul.f32 1.442695, %v1783_v32  ;;  %v1792_v2 = vmul.f32 1.442695, %v1789_v1  ;;  %v1836_v1 = vunpack.c.h.bf16 %v1828_v44 }
 0x4f0   :  { %v4174_v9 = vmul.f32 %v3023_v58, %v1540_v41  ;;  %v2665_v10 = vmul.f32 -1.442695, %v1894_v45  ;;  %v2666_v20 = vmul.f32 -1.442695, %v1895_v46  ;;  %1800 = vperm.xlu0 %2765, %v3023_v58   ;;  %v4176_v8 = vpop.eup %3024 }
 0x4f1   :  { %3026 = vpow2.f32 %v1786_v17  ;;  %v1541_v6 = vadd.f32 %v4176_v8, %v4081_v31  ;;  %v1835_v31 = vunpack.c.l.bf16 %v1828_v44 }
 0x4f2   :  { %3028 = vpow2.f32 %v1792_v2 }
 0x4f3   :  { %3030 = vpow2.f32 %v2665_v10 }
 0x4f4   :  { %3032 = vpow2.f32 %v2666_v20  ;;  %v1875_v38 = vpop.f32.mrf.mxu2  ;;  %v1889_v40 = vpop.f32.mrf.mxu3 }
 0x4f5   :  { %v1896_v56 = vadd.f32 %v1875_v38, %v1831_v19  ;;  %v1849_v36 = vpop.f32.mrf.mxu0  ;;  %v1863_v15 = vpop.f32.mrf.mxu1  ;;  %v1897_v32 = vadd.f32 %v1889_v40, %v1832_v47 }
 0x4f6   :  { %v1898_v61 = vadd.f32 %v1849_v36, %v1833_v24  ;;  %v1899_v35 = vadd.f32 %v1863_v15, %v1834_v25 }
 0x4f7   :  { %v4180_v11 = vpop.eup %3026  ;;  %v2667_v30 = vmul.f32 -1.442695, %v1896_v56 }
 0x4f8   :  { %v3029_v5 = vpop.eup %3028  ;;  %v1795_v49 = vmul.f32 %v4180_v11, %v1541_v6  ;;  %v2668_v60 = vmul.f32 -1.442695, %v1898_v61  ;;  %v2669_v50 = vmul.f32 -1.442695, %v1899_v35 }
 0x4f9   :  { %v3031_v18 = vpop.eup %3030  ;;  %3034 = vpow2.f32 %v2667_v30  ;;  %1817 = vperm.xlu0 %2765, %v3029_v5  }
 0x4fa   :  { %v3033_v43 = vpop.eup %3032  ;;  %v4183_v22 = vadd.f32 %v3029_v5, %v1795_v49  ;;  %v1920_v27 = vadd.f32 1.0, %v3031_v18  ;;  %3036 = vpow2.f32 %v2668_v60 }
 0x4fb   :  { %v1921_v59 = vadd.f32 1.0, %v3033_v43  ;;  %3038 = vpow2.f32 %v2669_v50 }
 0x4fc   :  { %3040 = vrcp.f32 %v1920_v27  ;;  %v1877_v23 = vpop.f32.mrf.mxu2  ;;  %v1891_v45 = vpop.f32.mrf.mxu3  ;;  %v1935_v53 = vand.u32 2147483647, %v1920_v27  ;;  %v1937_v2 = vand.u32 2147483648, %v1920_v27  ;;  %vm1931_vm9 = vweird.f32 %v1920_v27 }
 0x4fd   :  { %3042 = vrcp.f32 %v1921_v59  ;;  %v1900_v13 = vadd.f32 %v1877_v23, %v1835_v31  ;;  %v1952_v17 = vand.u32 2147483648, %v1921_v59  ;;  %v1950_v10 = vand.u32 2147483647, %v1921_v59 }
 0x4fe   :  { %v1901_v20 = vadd.f32 %v1891_v45, %v1836_v1  ;;  %vm1946_vm12 = vweird.f32 %v1921_v59  ;;  %vm4196_vm14 = vcmp.eq.f32.partialorder %v1935_v53, 8.507059e+37  ;;  %v1938_v61 = vor.u32 1.1754944e-38, %v1937_v2 }
 0x4ff   :  { %v3035_v14 = vpop.eup %3034  ;;  %v2670_v51 = vmul.f32 -1.442695, %v1900_v13  ;;  %v1953_v36 = vor.u32 1.1754944e-38, %v1952_v17  ;;  %vm4202_vm0 = vcmp.eq.f32.partialorder %v1950_v10, 8.507059e+37 }
 0x500   :  { %v3037_v29 = vpop.eup %3036  ;;  %v4185_v26 = vadd.f32 1.0, %v3035_v14 }
 0x501   :  { %v3039_v3 = vpop.eup %3038  ;;  %v4187_v12 = vadd.f32 1.0, %v3037_v29 }
 0x502   :  { %v3041_v16 = vpop.eup %3040  ;;  %3044 = vrcp.f32 %v4185_v26  ;;  %v4191_v41 = vadd.f32 1.0, %v3039_v3  ;;  %vm1961_vm2 = vweird.f32 %v4185_v26  ;;  %v1967_v13 = vand.u32 2147483648, %v4185_v26 }
 0x503   :  { %v3043_v33 = vpop.eup %3042  ;;  %v1927_v34 = vmul.f32 %v3041_v16, %v1920_v27  ;;  %3046 = vrcp.f32 %v4187_v12  ;;  %vm1932_vm11 = vweird.f32 %v3041_v16  ;;  %v1982_v3 = vand.u32 2147483648, %v4187_v12 }
 0x504   :  { %v1942_v46 = vmul.f32 %v3043_v33, %v1921_v59  ;;  %3048 = vpow2.f32 %v2670_v51  ;;  %vm1947_vm13 = vweird.f32 %v3043_v33  ;;  %vm1933_vm15 = vmor %vm1931_vm9, %vm1932_vm11  ;;  %v1980_v1 = vand.u32 2147483647, %v4187_v12 }
 0x505   :  { %v1928_v58 = vsub.f32 1.0, %v1927_v34  ;;  %3050 = vrcp.f32 %v4191_v41  ;;  %vm1948_vm1 = vmor %vm1946_vm12, %vm1947_vm13  ;;  %vm1976_vm6 = vweird.f32 %v4187_v12  ;;  %vm1991_vm7 = vweird.f32 %v4191_v41 }
 0x506   :  { %v1943_v42 = vsub.f32 1.0, %v1942_v46  ;;  %3052 = vtanh.f32 %v1897_v32  ;;  %v1995_v46 = vand.u32 2147483647, %v4191_v41  ;;  %v1965_v2 = vand.u32 2147483647, %v4185_v26 }
 0x507   :  { %v1929_v19 = vmul.f32 %v3041_v16, %v1928_v58  ;;  %3054 = vtanh.f32 %v1901_v20  ;;  %v1983_v58 = vor.u32 1.1754944e-38, %v1982_v3  ;;  %vm1981_vm11 = vcmp.eq.f32.partialorder %v1980_v1, 8.507059e+37  ;;  %v2082_v1 = vld [vmem:[#allocation7 + $0xe8] sm:$0xff] }
 0x508   :  { %v4194_v24 = vpop.eup %3044  ;;  %v1944_v25 = vmul.f32 %v3043_v33, %v1943_v42  ;;  %vm1996_vm13 = vcmp.eq.f32.partialorder %v1995_v46, 8.507059e+37 }
 0x509   :  { %v3047_v56 = vpop.eup %3046  ;;  %v1957_v15 = vmul.f32 %v4194_v24, %v4185_v26  ;;  %v1930_v6 = vadd.f32 %v3041_v16, %v1929_v19  ;;  %vm1962_vm5 = vweird.f32 %v4194_v24 }
 0x50a   :  { %v3049_v35 = vpop.eup %3048  ;;  %v1945_v30 = vadd.f32 %v3043_v33, %v1944_v25  ;;  %v1972_v5 = vmul.f32 %v3047_v56, %v4187_v12  ;;  %vm1977_vm3 = vweird.f32 %v3047_v56  ;;  %vm1963_vm12 = vmor %vm1961_vm2, %vm1962_vm5 }
 0x50b   :  { %v3051_v49 = vpop.eup %3050  ;;  %v1958_v60 = vsub.f32 1.0, %v1957_v15  ;;  %v1934_v50 = vsel %vm1933_vm15, %v3041_v16, %v1930_v6  ;;  %v4209_v18 = vadd.f32 1.0, %v3049_v35  ;;  %v1997_v16 = vand.u32 2147483648, %v4191_v41  ;;  %vm1978_vm8 = vmor %vm1976_vm6, %vm1977_vm3 }
 0x50c   :  { %v3053_v40 = vpop.eup %3052  ;;  %v1939_v43 = vsel %vm4196_vm14, %v1938_v61, %v1934_v50  ;;  %v1949_v27 = vsel %vm1948_vm1, %v3043_v33, %v1945_v30  ;;  %v1973_v31 = vsub.f32 1.0, %v1972_v5  ;;  %v1987_v23 = vmul.f32 %v3051_v49, %v4191_v41 }
 0x50d   :  { %v1959_v47 = vmul.f32 %v4194_v24, %v1958_v60  ;;  %v1954_v59 = vsel %vm4202_vm0, %v1953_v36, %v1949_v27  ;;  %v2020_v14 = vmul.f32 %v3053_v40, %v1939_v43  ;;  %3056 = vrcp.f32 %v4209_v18  ;;  %v3055_v33 = vpop.eup %3054 }
 0x50e   :  { %v2018_v29 = vmul.f32 %v1954_v59, %v4121_v7  ;;  %v1988_v51 = vsub.f32 1.0, %v1987_v23  ;;  %v1974_v32 = vmul.f32 %v3047_v56, %v1973_v31  ;;  %vm1992_vm4 = vweird.f32 %v3051_v49  ;;  %v4251_v31 = vld [vmem:[%s4355_s2] ss:$0 sm:$0xff] }
 0x50f   :  { %v1960_v7 = vadd.f32 %v4194_v24, %v1959_v47  ;;  %vm1993_vm9 = vmor %vm1991_vm7, %vm1992_vm4  ;;  %v1998_v42 = vor.u32 1.1754944e-38, %v1997_v16  ;;  %v1968_v15 = vor.u32 1.1754944e-38, %v1967_v13  ;;  %vm1966_vm14 = vcmp.eq.f32.partialorder %v1965_v2, 8.507059e+37  ;;  %v2081_v59 = vld [vmem:[#allocation7 + $0xe0] sm:$0xff] }
 0x510   :  { %v4223_v34 = vadd.f32 %v2020_v14, %v2018_v29  ;;  %v1989_v45 = vmul.f32 %v3051_v49, %v1988_v51  ;;  %v1975_v53 = vadd.f32 %v3047_v56, %v1974_v32  ;;  %v2012_v5 = vand.u32 2147483648, %v4209_v18 }
 0x511   :  { %v1964_v36 = vsel %vm1963_vm12, %v4194_v24, %v1960_v7  ;;  %vm2006_vm0 = vweird.f32 %v4209_v18  ;;  %v2085_v14 = vunpack.c.l.bf16 %v2081_v59  ;;  %v2086_v29 = vunpack.c.h.bf16 %v2081_v59 }
 0x512   :  { %3058 = vtanh.f32 %v4223_v34  ;;  %v1990_v17 = vadd.f32 %v3051_v49, %v1989_v45  ;;  %v1979_v10 = vsel %vm1978_vm8, %v3047_v56, %v1975_v53  ;;  %v1969_v30 = vsel %vm1966_vm14, %v1968_v15, %v1964_v36 }
 0x513   :  { %v3057_v20 = vpop.eup %3056  ;;  %v1984_v19 = vsel %vm1981_vm11, %v1983_v58, %v1979_v10  ;;  %v2013_v60 = vor.u32 1.1754944e-38, %v2012_v5  ;;  %v2087_v7 = vunpack.c.l.bf16 %v2082_v1  ;;  %v2088_v5 = vunpack.c.h.bf16 %v2082_v1 }
 0x514   :  { %v1994_v25 = vsel %vm1993_vm9, %v3051_v49, %v1990_v17  ;;  %v2002_v12 = vmul.f32 %v3057_v20, %v4209_v18  ;;  %v2021_v41 = vmul.f32 %v3055_v33, %v1984_v19  ;;  %vm2007_vm15 = vweird.f32 %v3057_v20  ;;  %v2083_v33 = vld [vmem:[#allocation7 + $0xf0] sm:$0xff] }
 0x515   :  { %v1999_v38 = vsel %vm1996_vm13, %v1998_v42, %v1994_v25  ;;  %vm2008_vm1 = vmor %vm2006_vm0, %vm2007_vm15  ;;  %v2089_v53 = vunpack.c.l.bf16 %v2083_v33  ;;  %v2090_v58 = vunpack.c.h.bf16 %v2083_v33 }
 0x516   :  { %v2019_v6 = vmul.f32 %v1999_v38, %v4135_v37  ;;  %v2003_v61 = vsub.f32 1.0, %v2002_v12  ;;  %v2010_v37 = vand.u32 2147483647, %v4209_v18  ;;  %v2084_v12 = vld [vmem:[#allocation7 + $0xf8] sm:$0xff] }
 0x518   :  { %v3059_v56 = vpop.eup %3058  ;;  %v4237_v35 = vadd.f32 %v2021_v41, %v2019_v6  ;;  %v2004_v26 = vmul.f32 %v3057_v20, %v2003_v61  ;;  %vm2011_vm2 = vcmp.eq.f32.partialorder %v2010_v37, 8.507059e+37 }
 0x519   :  { %v4239_v44 = vmul.f32 %v3059_v56, %v1969_v30  ;;  %v2091_v56 = vunpack.c.l.bf16 %v2084_v12 }
 0x51a   :  { %3060 = vtanh.f32 %v4237_v35  ;;  %v2005_v24 = vadd.f32 %v3057_v20, %v2004_v26 }
 0x51b   :  { %3062 = vtanh.f32 %v4239_v44 }
 0x51c   :  { %v2009_v49 = vsel %vm2008_vm1, %v3057_v20, %v2005_v24 }
 0x51d   :  { %v2014_v40 = vsel %vm2011_vm2, %v2013_v60, %v2009_v49 }
 0x520   :  { %v3061_v50 = vpop.eup %3060 }
 0x521   :  { %v3063_v43 = vpop.eup %3062  ;;  %v4246_v27 = vmul.f32 %v3061_v50, %v2014_v40 }
 0x522   :  { %v2030_v23 = vmul.f32 %v4251_v31, %v3063_v43 }
 0x523   :  { %v2093_v47 = vpack.c.bf16 %v4246_v27, %v4239_v44  ;;  %3064 = vtanh.f32 %v4246_v27 }
 0x524   :  { %2032 = vadd.xlane.f32.xlu1 %v2030_v23 }
 0x525   :  { %2102 = vmatmul.bf16.vlgmr.msrb.gmra.mxu0 %v2093_v47  ;;  %2116 = vmatmul.bf16.vlgmr.msrb.gmra.mxu1 %v2093_v47 }
 0x526   :  { %2130 = vmatmul.bf16.vlgmr.msrb.gmra.mxu2 %v2093_v47  ;;  %2144 = vmatmul.bf16.vlgmr.msrb.gmra.mxu3 %v2093_v47 }
 0x529   :  { %v3065_v18 = vpop.eup %3064 }
 0x52a   :  { %v2031_v13 = vmul.f32 %v4251_v31, %v3065_v18 }
 0x52c   :  { %2034 = vadd.xlane.f32.xlu2 %v2031_v13  ;;  %v2092_v13 = vunpack.c.h.bf16 %v2084_v12 }
 0x5a2   :  { %v2103_v51 = vpop.f32.mrf.mxu0  ;;  %v2117_v3 = vpop.f32.mrf.mxu1 }
 0x5a3   :  { %v2150_v16 = vadd.f32 %v2103_v51, %v2085_v14  ;;  %v2151_v32 = vadd.f32 %v2117_v3, %v2086_v29 }
 0x5a5   :  { %v2671_v45 = vmul.f32 -1.442695, %v2150_v16  ;;  %v2672_v46 = vmul.f32 -1.442695, %v2151_v32 }
 0x5a7   :  { %3066 = vpow2.f32 %v2671_v45 }
 0x5a8   :  { %3068 = vpow2.f32 %v2672_v46 }
 0x5a9   :  { %v2131_v17 = vpop.f32.mrf.mxu2  ;;  %v2145_v15 = vpop.f32.mrf.mxu3 }
 0x5aa   :  { %v2152_v2 = vadd.f32 %v2131_v17, %v2087_v7  ;;  %v2105_v42 = vpop.f32.mrf.mxu0  ;;  %v2119_v10 = vpop.f32.mrf.mxu1  ;;  %v2153_v47 = vadd.f32 %v2145_v15, %v2088_v5 }
 0x5ab   :  { %v2154_v20 = vadd.f32 %v2105_v42, %v2089_v53  ;;  %v2155_v19 = vadd.f32 %v2119_v10, %v2090_v58 }
 0x5ac   :  { %v2673_v25 = vmul.f32 -1.442695, %v2152_v2 }
 0x5ad   :  { %v2674_v38 = vmul.f32 -1.442695, %v2154_v20  ;;  %v2675_v41 = vmul.f32 -1.442695, %v2155_v19  ;;  %v3067_v36 = vpop.eup %3066 }
 0x5ae   :  { %3070 = vpow2.f32 %v2673_v25  ;;  %v3069_v6 = vpop.eup %3068  ;;  %v2176_v61 = vadd.f32 1.0, %v3067_v36 }
 0x5af   :  { %3072 = vpow2.f32 %v2674_v38  ;;  %v2177_v30 = vadd.f32 1.0, %v3069_v6 }
 0x5b0   :  { %3074 = vpow2.f32 %v2675_v41  ;;  %v2191_v3 = vand.u32 2147483647, %v2176_v61  ;;  %v2193_v16 = vand.u32 2147483648, %v2176_v61  ;;  %vm2187_vm4 = vweird.f32 %v2176_v61 }
 0x5b1   :  { %3076 = vrcp.f32 %v2176_v61  ;;  %v2133_v26 = vpop.f32.mrf.mxu2  ;;  %v2147_v29 = vpop.f32.mrf.mxu3  ;;  %v2208_v1 = vand.u32 2147483648, %v2177_v30  ;;  %v2206_v33 = vand.u32 2147483647, %v2177_v30  ;;  %vm2202_vm3 = vweird.f32 %v2177_v30 }
 0x5b2   :  { %3078 = vrcp.f32 %v2177_v30  ;;  %v2156_v24 = vadd.f32 %v2133_v26, %v2091_v56  ;;  %v2157_v46 = vadd.f32 %v2147_v29, %v2092_v13  ;;  %vm4269_vm7 = vcmp.eq.f32.partialorder %v2191_v3, 8.507059e+37 }
 0x5b3   :  { %v2194_v2 = vor.u32 1.1754944e-38, %v2193_v16  ;;  %v2209_v10 = vor.u32 1.1754944e-38, %v2208_v1  ;;  %vm4275_vm8 = vcmp.eq.f32.partialorder %v2206_v33, 8.507059e+37 }
 0x5b4   :  { %v3071_v37 = vpop.eup %3070  ;;  %v2676_v43 = vmul.f32 -1.442695, %v2156_v24 }
 0x5b5   :  { %v3073_v49 = vpop.eup %3072  ;;  %v4258_v60 = vadd.f32 1.0, %v3071_v37 }
 0x5b6   :  { %v3075_v50 = vpop.eup %3074  ;;  %v4260_v40 = vadd.f32 1.0, %v3073_v49 }
 0x5b7   :  { %v3077_v23 = vpop.eup %3076  ;;  %3080 = vrcp.f32 %v4258_v60  ;;  %v4263_v18 = vadd.f32 1.0, %v3075_v50  ;;  %vm2217_vm12 = vweird.f32 %v4258_v60  ;;  %v2223_v16 = vand.u32 2147483648, %v4258_v60 }
 0x5b8   :  { %v3079_v59 = vpop.eup %3078  ;;  %v2183_v14 = vmul.f32 %v3077_v23, %v2176_v61  ;;  %3082 = vrcp.f32 %v4260_v40  ;;  %vm2188_vm5 = vweird.f32 %v3077_v23  ;;  %v2236_v26 = vand.u32 2147483647, %v4260_v40 }
 0x5b9   :  { %v2198_v51 = vmul.f32 %v3079_v59, %v2177_v30  ;;  %3084 = vrcp.f32 %v4263_v18  ;;  %vm2203_vm6 = vweird.f32 %v3079_v59  ;;  %vm2189_vm9 = vmor %vm2187_vm4, %vm2188_vm5  ;;  %v2253_v36 = vand.u32 2147483648, %v4263_v18 }
 0x5ba   :  { %v2184_v32 = vsub.f32 1.0, %v2183_v14  ;;  %3086 = vpow2.f32 %v2676_v43  ;;  %vm2204_vm11 = vmor %vm2202_vm3, %vm2203_vm6  ;;  %v2238_v14 = vand.u32 2147483648, %v4260_v40  ;;  %vm2247_vm15 = vweird.f32 %v4263_v18 }
 0x5bb   :  { %v2199_v45 = vsub.f32 1.0, %v2198_v51  ;;  %3088 = vtanh.f32 %v2153_v47  ;;  %vm2232_vm0 = vweird.f32 %v4260_v40  ;;  %vm2237_vm4 = vcmp.eq.f32.partialorder %v2236_v26, 8.507059e+37 }
 0x5bc   :  { %v2185_v7 = vmul.f32 %v3077_v23, %v2184_v32  ;;  %3090 = vtanh.f32 %v2157_v46  ;;  %v2239_v46 = vor.u32 1.1754944e-38, %v2238_v14 }
 0x5bd   :  { %v4267_v53 = vpop.eup %3080  ;;  %v2200_v58 = vmul.f32 %v3079_v59, %v2199_v45  ;;  %v2254_v45 = vor.u32 1.1754944e-38, %v2253_v36 }
 0x5be   :  { %v3083_v42 = vpop.eup %3082  ;;  %v2213_v20 = vmul.f32 %v4267_v53, %v4258_v60  ;;  %v2186_v19 = vadd.f32 %v3077_v23, %v2185_v7  ;;  %vm2218_vm2 = vweird.f32 %v4267_v53  ;;  %v2221_v7 = vand.u32 2147483647, %v4258_v60 }
 0x5bf   :  { %v3085_v12 = vpop.eup %3084  ;;  %v2201_v38 = vadd.f32 %v3079_v59, %v2200_v58  ;;  %v2228_v41 = vmul.f32 %v3083_v42, %v4260_v40  ;;  %vm2233_vm13 = vweird.f32 %v3083_v42  ;;  %vm2219_vm6 = vmor %vm2217_vm12, %vm2218_vm2 }
 0x5c0   :  { %v3087_v15 = vpop.eup %3086  ;;  %v2214_v6 = vsub.f32 1.0, %v2213_v20  ;;  %v2190_v61 = vsel %vm2189_vm9, %v3077_v23, %v2186_v19  ;;  %v2243_v56 = vmul.f32 %v3085_v12, %v4263_v18  ;;  %vm2248_vm14 = vweird.f32 %v3085_v12  ;;  %vm2234_vm1 = vmor %vm2232_vm0, %vm2233_vm13 }
 0x5c1   :  { %v3089_v5 = vpop.eup %3088  ;;  %v2195_v24 = vsel %vm4269_vm7, %v2194_v2, %v2190_v61  ;;  %v2205_v37 = vsel %vm2204_vm11, %v3079_v59, %v2201_v38  ;;  %v2229_v49 = vsub.f32 1.0, %v2228_v41  ;;  %v2181_v50 = vadd.f32 1.0, %v3087_v15  ;;  %vm2249_vm3 = vmor %vm2247_vm15, %vm2248_vm14 }
 0x5c2   :  { %v2215_v43 = vmul.f32 %v4267_v53, %v2214_v6  ;;  %v2210_v30 = vsel %vm4275_vm8, %v2209_v10, %v2205_v37  ;;  %v2276_v47 = vmul.f32 %v3089_v5, %v2195_v24  ;;  %v2244_v13 = vsub.f32 1.0, %v2243_v56  ;;  %v3091_v3 = vpop.eup %3090 }
 0x5c3   :  { %v2274_v23 = vmul.f32 %v2210_v30, %v4223_v34  ;;  %3092 = vrcp.f32 %v2181_v50  ;;  %v2230_v51 = vmul.f32 %v3083_v42, %v2229_v49  ;;  %v2251_v59 = vand.u32 2147483647, %v4263_v18  ;;  %v2033_v30 = vpop.xlane.xlu1 %2032 }
 0x5c4   :  { %v2245_v29 = vmul.f32 %v3085_v12, %v2244_v13  ;;  %v2216_v33 = vadd.f32 %v4267_v53, %v2215_v43  ;;  %v2224_v38 = vor.u32 1.1754944e-38, %v2223_v16  ;;  %vm2222_vm7 = vcmp.eq.f32.partialorder %v2221_v7, 8.507059e+37  ;;  %v2035_v13 = vpop.xlane.xlu2 %2034 }
 0x5c5   :  { %v2278_v32 = vadd.f32 %v2276_v47, %v2274_v23  ;;  %v2231_v1 = vadd.f32 %v3083_v42, %v2230_v51  ;;  %vm2252_vm5 = vcmp.eq.f32.partialorder %v2251_v59, 8.507059e+37  ;;  %v2268_v15 = vand.u32 2147483648, %v2181_v50 }
 0x5c6   :  { %v2246_v34 = vadd.f32 %v3085_v12, %v2245_v29  ;;  %v2220_v25 = vsel %vm2219_vm6, %v4267_v53, %v2216_v33  ;;  %v2266_v60 = vand.u32 2147483647, %v2181_v50  ;;  %vm2262_vm9 = vweird.f32 %v2181_v50 }
 0x5c7   :  { %3094 = vtanh.f32 %v2278_v32  ;;  %v2235_v58 = vsel %vm2234_vm1, %v3083_v42, %v2231_v1  ;;  %v2269_v53 = vor.u32 1.1754944e-38, %v2268_v15  ;;  %v1788_v47 = vsub.f32 %v4153_v52, %v4156_v0 }
 0x5c8   :  { %v2250_v17 = vsel %vm2249_vm3, %v3085_v12, %v2246_v34  ;;  %v2240_v2 = vsel %vm2237_vm4, %v2239_v46, %v2235_v58  ;;  %v2225_v12 = vsel %vm2222_vm7, %v2224_v38, %v2220_v25  ;;  %vm2267_vm12 = vcmp.eq.f32.partialorder %v2266_v60, 8.507059e+37 }
 0x5c9   :  { %v3093_v18 = vpop.eup %3092  ;;  %v2255_v40 = vsel %vm2252_vm5, %v2254_v45, %v2250_v17  ;;  %v2277_v19 = vmul.f32 %v3091_v3, %v2240_v2  ;;  %v2036_v23 = vmax.f32 %v4156_v0, %v2033_v30  ;;  %v1790_v14 = vmul.f32 1.442695, %v1788_v47 }
 0x5ca   :  { %v2258_v10 = vmul.f32 %v3093_v18, %v2181_v50  ;;  %v2275_v20 = vmul.f32 %v2255_v40, %v4237_v35  ;;  %vm2263_vm8 = vweird.f32 %v3093_v18  ;;  %v2037_v29 = vmax.f32 %v4166_v63, %v2035_v13 }
 0x5cb   :  { %vm2264_vm11 = vmor %vm2262_vm9, %vm2263_vm8  ;;  %v2038_v51 = vsub.f32 %v4156_v0, %v2036_v23 }
 0x5cc   :  { %v2259_v41 = vsub.f32 1.0, %v2258_v10  ;;  %v2279_v36 = vadd.f32 %v2277_v19, %v2275_v20 }
 0x5cd   :  { %v3095_v42 = vpop.eup %3094  ;;  %v2040_v59 = vmul.f32 1.442695, %v2038_v51 }
 0x5ce   :  { %v2260_v6 = vmul.f32 %v3093_v18, %v2259_v41  ;;  %3096 = vtanh.f32 %v2279_v36  ;;  %v4304_v61 = vmul.f32 %v3095_v42, %v2225_v12 }
 0x5d0   :  { %3098 = vtanh.f32 %v4304_v61  ;;  %v2261_v35 = vadd.f32 %v3093_v18, %v2260_v6 }
 0x5d2   :  { %v2265_v56 = vsel %vm2264_vm11, %v3093_v18, %v2261_v35 }
 0x5d3   :  { %v2270_v5 = vsel %vm2267_vm12, %v2269_v53, %v2265_v56 }
 0x5d4   :  { %v3097_v26 = vpop.eup %3096 }
 0x5d5   :  { %v4307_v24 = vmul.f32 %v3097_v26, %v2270_v5 }
 0x5d6   :  { %v3099_v37 = vpop.eup %3098 }
 0x5d7   :  { %v2286_v49 = vmul.f32 %v4251_v31, %v3099_v37  ;;  %3100 = vtanh.f32 %v4307_v24  ;;  %v2748_v37 = vld [vmem:[#allocation12 + $0x38] sm:$0xff] }
 0x5d8   :  { %3102 = vpow2.f32 %v1790_v14  ;;  %2465 = vmatpush.bf16.msra.mxu0 %v2748_v37 }
 0x5d9   :  { %2288 = vadd.xlane.f32.xlu1 %v2286_v49  ;;  %3104 = vpow2.f32 %v2040_v59  ;;  %v1550_v49 = vpop.permute.xlu0 %1549 }
 0x5dd   :  { %v3101_v43 = vpop.eup %3100 }
 0x5de   :  { %v2287_v50 = vmul.f32 %v4251_v31, %v3101_v43  ;;  %v2039_v31 = vsub.f32 %v4166_v63, %v2037_v29  ;;  %v3103_v52 = vpop.eup %3102  ;;  %v2045_v63 = vsub.f32 %v2035_v13, %v2037_v29  ;;  %v2747_v43 = vld [vmem:[#allocation12 + $0x30] sm:$0xff] }
 0x5df   :  { %v3105_v3 = vpop.eup %3104  ;;  %v1796_v45 = vadd.f32 %v3103_v52, %v4174_v9  ;;  %2466 = vmatpush.bf16.msra.mxu0 %v2747_v43 }
 0x5e0   :  { %2290 = vadd.xlane.f32.xlu2 %v2287_v50  ;;  %v2048_v58 = vmul.f32 1.442695, %v2045_v63 }
 0x5e1   :  { %v2050_v7 = vmul.f32 %v3105_v3, %v1796_v45  ;;  %v1801_v13 = vpop.permute.xlu0 %1800 }
 0x5f2   :  { %1544 = vperm.xlu1 %2763, %v4159_v62   ;;  %v2042_v62 = vmul.f32 1.442695, %v2039_v31  ;;  %v4477_v31 = vld [vmem:[#allocation21_spill] sm:$0xff] }
 0x5f3   :  { %v1308_v59 = vmul.f32 %v4070_v57, %v4477_v31  ;;  %v1553_v57 = vmul.f32 %v1550_v49, %v4068_v54 }
 0x5f4   :  { %3106 = vpow2.f32 %v2042_v62  ;;  %v2743_v62 = vld [vmem:[#allocation12 + $0x10] sm:$0xff] }
 0x5f8   :  { %1556 = vperm.xlu2 %2764, %v4168_v28   ;;  %v2044_v28 = vsub.f32 %v2033_v30, %v2036_v23  ;;  %v2746_v30 = vld [vmem:[#allocation12 + $0x28] sm:$0xff] }
 0x5f9   :  { %2467 = vmatpush.bf16.msra.mxu0 %v2746_v30 }
 0x5fa   :  { %1561 = vperm.xlu1 %2763, %v4176_v8   ;;  %v3107_v16 = vpop.eup %3106  ;;  %v2046_v0 = vmul.f32 1.442695, %v2044_v28 }
 0x5fb   :  { %v2051_v41 = vmul.f32 %v3107_v16, %v4183_v22 }
 0x5fc   :  { %3108 = vpow2.f32 %v2046_v0 }
 0x600   :  { %1805 = vperm.xlu2 %2764, %v4180_v11  }
 0x602   :  { %1812 = vperm.xlu1 %2763, %v3103_v52   ;;  %v3109_v40 = vpop.eup %3108  ;;  %v1818_v52 = vpop.permute.xlu0 %1817 }
 0x603   :  { %v2052_v10 = vadd.f32 %v3109_v40, %v2050_v7 }
 0x608   :  { %2056 = vperm.xlu2 %2764, %v3105_v3   ;;  %v1310_v3 = vadd.f32 %v1308_v59, %v4063_v21  ;;  %v2767_v59 = vld [vmem:[%s4357_s4] ss:$0 sm:$0xff] }
 0x60a   :  { %2061 = vperm.xlu1 %2763, %v3107_v16   ;;  %v2742_v16 = vld [vmem:[#allocation12 + $0x8] sm:$0xff] }
 0x64c   :  { %v2289_v32 = vpop.xlane.xlu1 %2288 }
 0x64d   :  { %v2292_v1 = vmax.f32 %v2036_v23, %v2289_v32 }
 0x64f   :  { %v2294_v8 = vsub.f32 %v2036_v23, %v2292_v1  ;;  %v2300_v34 = vsub.f32 %v2289_v32, %v2292_v1  ;;  %2341 = vst.msk [vmem:[#allocation4] sm:$0xff] %vm76_vm10, %v2292_v1  ;;  %v2745_v23 = vld [vmem:[#allocation12 + $0x20] sm:$0xff] }
 0x650   :  { %2468 = vmatpush.bf16.msra.mxu0 %v2745_v23  ;;  %v2741_v1 = vld [vmem:[#allocation12] sm:$0xff] }
 0x651   :  { %v2296_v33 = vmul.f32 1.442695, %v2294_v8  ;;  %v2302_v11 = vmul.f32 1.442695, %v2300_v34 }
 0x653   :  { %3110 = vpow2.f32 %v2296_v33  ;;  %v2291_v46 = vpop.xlane.xlu2 %2290 }
 0x654   :  { %v2293_v17 = vmax.f32 %v2037_v29, %v2291_v46  ;;  %3112 = vpow2.f32 %v2302_v11 }
 0x655   :  { %3114 = vpow2.f32 %v2048_v58 }
 0x656   :  { %v2295_v18 = vsub.f32 %v2037_v29, %v2293_v17  ;;  %v2301_v2 = vsub.f32 %v2291_v46, %v2293_v17  ;;  %2342 = vst.msk [vmem:[#allocation4 + $0x8] sm:$0xff] %vm76_vm10, %v2293_v17  ;;  %v2744_v29 = vld [vmem:[#allocation12 + $0x18] sm:$0xff] }
 0x657   :  { %2469 = vmatpush.bf16.msra.mxu0 %v2744_v29 }
 0x658   :  { %v2298_v20 = vmul.f32 1.442695, %v2295_v18  ;;  %v2304_v19 = vmul.f32 1.442695, %v2301_v2 }
 0x659   :  { %v3111_v25 = vpop.eup %3110 }
 0x65a   :  { %v2306_v38 = vmul.f32 %v3111_v25, %v2052_v10  ;;  %3116 = vpow2.f32 %v2298_v20  ;;  %2312 = vperm.xlu1 %2763, %v3111_v25   ;;  %v3113_v9 = vpop.eup %3112 }
 0x65b   :  { %3118 = vpow2.f32 %v2304_v19  ;;  %v3115_v42 = vpop.eup %3114  ;;  %v1557_v22 = vpop.permute.xlu2 %1556  ;;  %2470 = vmatpush.bf16.msra.mxu0 %v2743_v62 }
 0x65c   :  { %v2308_v36 = vadd.f32 %v3113_v9, %v2306_v38  ;;  %v2053_v15 = vadd.f32 %v3115_v42, %v2051_v41  ;;  %v1564_v0 = vmul.f32 %v1557_v22, %v4015_v4 }
 0x65e   :  { %2343 = vst.msk [vmem:[#allocation5] sm:$0xff] %vm76_vm10, %v2308_v36 }
 0x65f   :  { %2471 = vmatpush.bf16.msra.mxu0 %v2742_v16 }
 0x660   :  { %v3117_v12 = vpop.eup %3116 }
 0x661   :  { %v3119_v6 = vpop.eup %3118  ;;  %v2307_v60 = vmul.f32 %v3117_v12, %v2053_v15 }
 0x662   :  { %2329 = vperm.xlu1 %2763, %v3119_v6  }
 0x663   :  { %v2309_v35 = vadd.f32 %v3119_v6, %v2307_v60  ;;  %v1806_v5 = vpop.permute.xlu2 %1805  ;;  %2472 = vmatpush.bf16.msra.mxu0 %v2741_v1 }
 0x664   :  { %v1545_v26 = vpop.permute.xlu1 %1544 }
 0x665   :  { %2344 = vst.msk [vmem:[#allocation5 + $0x8] sm:$0xff] %vm76_vm10, %v2309_v35  ;;  %v2352_v56 = vld [vmem:[#allocation5] sm:$0xff]  ;;  %v1552_v28 = vmul.f32 %v1545_v26, %v1310_v3 }
 0x666   :  { %2356 = vperm.xlu0 %2765, %v2352_v56  }
 0x667   :  { %v1566_v63 = vadd.f32 %v1564_v0, %v1552_v28 }
 0x669   :  { %v1808_v7 = vmul.f32 %v1801_v13, %v1566_v63 }
 0x66b   :  { %v2057_v47 = vpop.permute.xlu2 %2056 }
 0x66c   :  { %v2353_v53 = vld [vmem:[#allocation5 + $0x8] sm:$0xff]  ;;  %v1562_v50 = vpop.permute.xlu1 %1561 }
 0x66d   :  { %2361 = vperm.xlu2 %2764, %v2353_v53   ;;  %v1565_v34 = vmul.f32 %v1562_v50, %v4022_v55  ;;  %v1821_v55 = vmul.f32 %v1818_v52, %v4144_v48 }
 0x66e   :  { %2068 = vperm.xlu0 %2765, %v3109_v40  }
 0x66f   :  { %v1567_v46 = vadd.f32 %v1565_v34, %v1553_v57 }
 0x671   :  { %v1809_v18 = vmul.f32 %v1806_v5, %v1567_v46 }
 0x674   :  { %v1813_v14 = vpop.permute.xlu1 %1812 }
 0x675   :  { %2073 = vperm.xlu2 %2764, %v3115_v42   ;;  %v1820_v45 = vmul.f32 %v1813_v14, %v4137_v39  ;;  %v1823_v39 = vadd.f32 %v1821_v55, %v1809_v18 }
 0x676   :  { %2317 = vperm.xlu0 %2765, %v3117_v12  }
 0x677   :  { %v1822_v4 = vadd.f32 %v1820_v45, %v1808_v7 }
 0x679   :  { %v2064_v20 = vmul.f32 %v2057_v47, %v1822_v4 }
 0x67c   :  { %v2062_v32 = vpop.permute.xlu1 %2061 }
 0x67d   :  { %2324 = vperm.xlu2 %2764, %v3113_v9   ;;  %v2065_v42 = vmul.f32 %v2062_v32, %v1823_v39 }
 0x6c7   :  { %v4328_v51 = vpop.permute.xlu2 %2361 }
 0x6c8   :  { %3120 = vrcp.f32 %v4328_v51  ;;  %vm2384_vm14 = vweird.f32 %v4328_v51  ;;  %v2388_v26 = vand.u32 2147483647, %v4328_v51 }
 0x6ca   :  { %vm2389_vm3 = vcmp.eq.f32.partialorder %v2388_v26, 8.507059e+37 }
 0x6cc   :  { %v2313_v58 = vpop.permute.xlu1 %2312 }
 0x6ce   :  { %v3121_v8 = vpop.eup %3120 }
 0x6cf   :  { %v2074_v33 = vpop.permute.xlu2 %2073  ;;  %v2380_v21 = vmul.f32 %v3121_v8, %v4328_v51  ;;  %vm2385_vm13 = vweird.f32 %v3121_v8 }
 0x6d0   :  { %v2077_v9 = vmul.f32 %v2074_v33, %v4246_v27  ;;  %vm2386_vm1 = vmor %vm2384_vm14, %vm2385_vm13 }
 0x6d1   :  { %v2381_v17 = vsub.f32 1.0, %v2380_v21 }
 0x6d2   :  { %v2079_v22 = vadd.f32 %v2077_v9, %v2065_v42 }
 0x6d3   :  { %v2382_v54 = vmul.f32 %v3121_v8, %v2381_v17 }
 0x6d4   :  { %v2330_v35 = vpop.permute.xlu1 %2329 }
 0x6d5   :  { %v2383_v60 = vadd.f32 %v3121_v8, %v2382_v54 }
 0x6d7   :  { %v2325_v25 = vpop.permute.xlu2 %2324  ;;  %v2387_v43 = vsel %vm2386_vm1, %v3121_v8, %v2383_v60 }
 0x6d8   :  { %v2357_v11 = vpop.permute.xlu0 %2356  ;;  %v2332_v48 = vmul.f32 %v2325_v25, %v4304_v61  ;;  %v2333_v61 = vmul.f32 %v2330_v35, %v4307_v24 }
 0x6d9   :  { %3122 = vrcp.f32 %v2357_v11  ;;  %v2375_v41 = vand.u32 2147483648, %v2357_v11  ;;  %v2373_v12 = vand.u32 2147483647, %v2357_v11  ;;  %vm2369_vm15 = vweird.f32 %v2357_v11 }
 0x6db   :  { %v2376_v27 = vor.u32 1.1754944e-38, %v2375_v41  ;;  %vm2374_vm2 = vcmp.eq.f32.partialorder %v2373_v12, 8.507059e+37 }
 0x6df   :  { %v3123_v2 = vpop.eup %3122 }
 0x6e0   :  { %v2365_v40 = vmul.f32 %v3123_v2, %v2357_v11  ;;  %v2069_v10 = vpop.permute.xlu0 %2068  ;;  %vm2370_vm10 = vweird.f32 %v3123_v2 }
 0x6e1   :  { %v2076_v19 = vmul.f32 %v2069_v10, %v4239_v44  ;;  %v2390_v44 = vand.u32 2147483648, %v4328_v51  ;;  %vm2371_vm0 = vmor %vm2369_vm15, %vm2370_vm10 }
 0x6e2   :  { %v2366_v38 = vsub.f32 1.0, %v2365_v40 }
 0x6e3   :  { %v2078_v36 = vadd.f32 %v2076_v19, %v2064_v20  ;;  %v2391_v30 = vor.u32 1.1754944e-38, %v2390_v44 }
 0x6e4   :  { %v2367_v15 = vmul.f32 %v3123_v2, %v2366_v38 }
 0x6e5   :  { %v2320_v6 = vmul.f32 %v2313_v58, %v2078_v36  ;;  %v2392_v23 = vsel %vm2389_vm3, %v2391_v30, %v2387_v43 }
 0x6e6   :  { %v2368_v56 = vadd.f32 %v3123_v2, %v2367_v15 }
 0x6e7   :  { %v2334_v53 = vadd.f32 %v2332_v48, %v2320_v6 }
 0x6e8   :  { %v2372_v5 = vsel %vm2371_vm0, %v3123_v2, %v2368_v56  ;;  %v2318_v37 = vpop.permute.xlu0 %2317 }
 0x6e9   :  { %v2377_v49 = vsel %vm2374_vm2, %v2376_v27, %v2372_v5  ;;  %v2321_v50 = vmul.f32 %v2318_v37, %v2079_v22 }
 0x6ea   :  { %v2378_v47 = vmul.f32 %v2377_v49, %v2334_v53 }
 0x6eb   :  { %v2335_v13 = vadd.f32 %v2333_v61, %v2321_v50 }
 0x6ec   :  { %3124 = vtanh.f32 %v2378_v47 }
 0x6ed   :  { %v2393_v14 = vmul.f32 %v2392_v23, %v2335_v13 }
 0x6ef   :  { %3126 = vtanh.f32 %v2393_v14 }
 0x6f2   :  { %v3125_v29 = vpop.eup %3124 }
 0x6f5   :  { %v3127_v31 = vpop.eup %3126 }
 0x6f6   :  { %v2396_v51 = vpack.c.bf16 %v3127_v31, %v3125_v29 }
 0x6f8   :  { %2473 = vmatmul.bf16.vlgmr.msra.gmra.mxu0 %v2396_v51 }
 0x775   :  { %v2474_v24 = vpop.f32.mrf.mxu0 }
 0x776   :  { %v2475_v62 = vadd.f32 %v2767_v59, %v2474_v24 }
 0x778   :  { %2479 = vst [vmem:[#allocation13] sm:$0xff] %v2475_v62 }
 0x77d   :  { %v2476_v52 = vpop.f32.mrf.mxu0 }
 0x77e   :  { %v2477_v3 = vadd.f32 %v2767_v59, %v2476_v52 }
 0x780   :  { %2480 = vst [vmem:[#allocation13 + $0x8] sm:$0xff] %v2477_v3 }
 0x781   :  { %2493 = dma.vmem_to_hbm [thread:$0]  %s2486_s17, 256, %s2488_s20, [#allocation9], %s3244_s21, %s3244_s21, %s3245_s22  }
 0x782   :  { %3230 = dma.done.wait [#allocation9], 256  }
 0x783   :  { %3231 = vsyncadd [#allocation9], 4294967040 }
 0x784   :  { %2498 = vsyncpa [#allocation8], 1 }
 0x785   :  { %2499 = vsyncpa [#allocation11], 1 }
 0x786   :  { %2500 = vsyncpa [#allocation9], 1 }

</bundles_post_ra>
